<compile_context>
chip_gen: v5e
topology: v5e:2x2
jax: 0.10.0
libtpu: 0.0.40
codegen_flags: <defaults>
</compile_context>

<pallas_src>
import functools

import jax
import jax.numpy as jnp
from jax import lax
from jax.experimental import pallas as pl
from jax.experimental.pallas import tpu as pltpu


_INV_SQRT2 = 0.7071067811865476


def _erf(x):
    # Abramowitz & Stegun 7.1.26 rational approximation (max abs err ~1.5e-7).
    # PyTorch nn.GELU() default is the exact erf form.  The 1/(1 + p*|x|)
    # divide goes to the EUP approximate reciprocal (that slot is otherwise
    # idle); its ~2^-12 relative error is far below the bf16 matmul error
    # floor of this kernel.
    a1, a2, a3, a4, a5 = (0.254829592, -0.284496736, 1.421413741,
                          -1.453152027, 1.061405429)
    p = 0.3275911
    sign = jnp.where(x < 0.0, -1.0, 1.0)
    ax = jnp.abs(x)
    t = pl.reciprocal(1.0 + p * ax, approx=True)
    poly = ((((a5 * t + a4) * t + a3) * t + a2) * t + a1) * t
    return sign * (1.0 - poly * jnp.exp(-ax * ax))


def _gelu_exact(x):
    return 0.5 * x * (1.0 + _erf(x * _INV_SQRT2))


def _maskcnn_kernel(x_ref, keep_ref, tapmask_ref, w_ref, lnw_ref, lnb_ref,
                    out_ref, *, H, W, depth, eps):
    """One batch element per grid step; lane-dense (C, P) layout throughout."""
    P = H * W
    C = x_ref.shape[1]
    taps = [(di, dj) for di in (-1, 0, 1) for dj in (-1, 0, 1)]

    keep = keep_ref[0]                     # (1, P): 1.0 at valid positions
    x = x_ref[0]                           # (C, P): current activation `x`
    res = x                                # running `_x` of MaskCNN.forward

    for layer in range(depth):
        # --- MaskConv2d: x.masked_fill(mask, 0) + 3x3 SAME conv (no bias) ---
        # One fused MXU matmul per layer: Wcat (9C, C) @ xm (C, P) -> z (9C, P)
        # with z[k*C:(k+1)*C] == W_tap(k) applied to xm (bf16 ops, f32 acc).
        xm = (x * keep).astype(jnp.bfloat16)
        z = jnp.dot(w_ref[layer], xm, preferred_element_type=jnp.float32)

        # Shift-and-add of the per-tap output blocks.  Tap (di, dj)'s
        # contribution at output position p is z_tap[p + di*W + dj], realised
        # as a static lane roll; the per-tap (1, P) validity mask zeroes both
        # the conv border and the circular wrap of the roll.
        acc = z[4 * C:5 * C, :]                         # centre tap, no shift
        for k, (di, dj) in enumerate(taps):
            if k == 4:
                continue
            delta = di * W + dj
            blk = z[k * C:(k + 1) * C, :]               # sublane-aligned slice
            shifted = pltpu.roll(blk, (-delta) % P, 1)  # shifted[:,p]=blk[:,p+delta]
            acc = acc + shifted * tapmask_ref[k]

        # --- x = x + _x ; LayerNorm over the channel (sublane) axis ----------
        y = acc + res
        u = jnp.mean(y, axis=0, keepdims=True)
        var = jnp.mean((y - u) ** 2, axis=0, keepdims=True)
        y = (y - u) * lax.rsqrt(var + eps)
        y = y * lnw_ref[layer] + lnb_ref[layer]
        res = y                                         # _x = x

        # --- GELU (exact erf form).  After the last LayerNorm it never feeds
        # `_x` (MaskCNN.forward returns `_x`), so the dead work is skipped.
        if layer + 1 < depth:
            x = _gelu_exact(y)

    # NOTE: the trailing GELU and the final MaskConv2d(in_ch -> out_ch) never
    # reach `_x`, the value MaskCNN.forward returns, so they are dead code.
    out_ref[0] = res


def mask_cnn_forward(x_nchw, mask_b1hw, w_oihw, ln_w, ln_b, eps=1e-6):
    """x_nchw: (B,C,H,W) f32; mask_b1hw: (B,1,H,W) bool (True = pad)."""
    B, C, H, W = x_nchw.shape
    depth = w_oihw.shape[0]
    P = H * W

    # glue: NCHW already has channels leading, so the lane-dense (C, P) layout
    # is a pure reshape (no transpose).
    x_bcp = x_nchw.reshape(B, C, P)

    # keep-mask (1.0 at valid positions), broadcastable (B, 1, P)
    keep_bp = jnp.logical_not(mask_b1hw[:, 0]).astype(jnp.float32).reshape(B, 1, P)

    # conv weights: (depth, O, I, kh, kw) -> fused (depth, 9*O, I) bf16 with
    # tap k = kh*3 + kw occupying rows [k*O, (k+1)*O):
    #   z[k*O + o, p] = sum_i W[o, i, kh, kw] * x[i, p]
    w_cat = jnp.transpose(w_oihw, (0, 3, 4, 1, 2)).reshape(depth, 9 * C, C)
    w_cat = w_cat.astype(jnp.bfloat16)

    lnw = ln_w.reshape(depth, C, 1)
    lnb = ln_b.reshape(depth, C, 1)

    # per-tap validity masks (shape-derived): tap (di, dj) may only contribute
    # at output (i, j) with 0 <= i+di < H and 0 <= j+dj < W.  These also kill
    # the circular wrap of the static lane rolls inside the kernel.
    idx = jnp.arange(P, dtype=jnp.int32)
    row, col = idx // W, idx % W
    tap_rows = []
    for di in (-1, 0, 1):
        for dj in (-1, 0, 1):
            ok = jnp.ones((P,), dtype=bool)
            if di == -1:
                ok = ok & (row > 0)
            elif di == 1:
                ok = ok & (row < H - 1)
            if dj == -1:
                ok = ok & (col > 0)
            elif dj == 1:
                ok = ok & (col < W - 1)
            tap_rows.append(ok)
    tapmask = jnp.stack(tap_rows).astype(jnp.float32).reshape(9, 1, P)

    kernel = functools.partial(_maskcnn_kernel, H=H, W=W, depth=depth, eps=eps)

    # advisory cost hint so XLA schedules this tiny custom call sensibly
    cost = pl.CostEstimate(
        flops=2 * B * depth * (9 * C) * C * P + 40 * B * depth * C * P,
        transcendentals=2 * B * depth * C * P,
        bytes_accessed=(2 * B * C * P * 4 + B * P * 4 + 9 * P * 4
                        + depth * 9 * C * C * 2 + 2 * depth * C * 4))

    out_bcp = pl.pallas_call(
        kernel,
        out_shape=jax.ShapeDtypeStruct((B, C, P), jnp.float32),
        grid_spec=pltpu.PrefetchScalarGridSpec(
            num_scalar_prefetch=0,
            grid=(B,),
            in_specs=[
                pl.BlockSpec((1, C, P), lambda b: (b, 0, 0)),          # x
                pl.BlockSpec((1, 1, P), lambda b: (b, 0, 0)),          # keep
                pl.BlockSpec((9, 1, P), lambda b: (0, 0, 0)),          # tap masks
                pl.BlockSpec((depth, 9 * C, C), lambda b: (0, 0, 0)),  # conv w
                pl.BlockSpec((depth, C, 1), lambda b: (0, 0, 0)),      # LN weight
                pl.BlockSpec((depth, C, 1), lambda b: (0, 0, 0)),      # LN bias
            ],
            out_specs=pl.BlockSpec((1, C, P), lambda b: (b, 0, 0)),
        ),
        compiler_params=pltpu.CompilerParams(
            dimension_semantics=("parallel",)),   # v7x: one batch per core
        cost_estimate=cost,
    )(x_bcp, keep_bp, tapmask, w_cat, lnw, lnb)

    # glue: back to NCHW (pure reshape)
    return out_bcp.reshape(B, C, H, W)


def reference_forward(x, mask, w_oihw, ln_w, ln_b, eps=1e-6):
    """Pure-JAX (f32) transliteration of MaskCNN.forward (returns `_x`)."""
    _x = x
    cur = x
    depth = w_oihw.shape[0]
    for l in range(depth):
        xm = jnp.where(mask, 0.0, cur)
        conv = lax.conv_general_dilated(
            xm, w_oihw[l], window_strides=(1, 1), padding="SAME",
            dimension_numbers=("NCHW", "OIHW", "NCHW"))
        y = conv + _x
        u = jnp.mean(y, axis=1, keepdims=True)
        s = jnp.mean((y - u) ** 2, axis=1, keepdims=True)
        y = (y - u) / jnp.sqrt(s + eps)
        y = ln_w[l][None, :, None, None] * y + ln_b[l][None, :, None, None]
        _x = y
        cur = jax.nn.gelu(y, approximate=False)
    # final MaskConv2d output is discarded by MaskCNN.forward (it returns _x)
    return _x


if __name__ == "__main__":
    B, C_in, C_out, H, W = 2, 32, 16, 16, 16
    depth = 3
    P = H * W

    key = jax.random.PRNGKey(0)
    kx, kw, kwf = jax.random.split(key, 3)

    # input (conceptually NCHW, matching the PyTorch module)
    x_nchw = jax.random.normal(kx, (B, C_in, H, W), jnp.float32)

    # pad mask: positions (i, j) with i >= len_b or j >= len_b are padding (True)
    lens = jnp.array([13, 9], dtype=jnp.int32)
    pad_1d = jnp.arange(H)[None, :] >= lens[:, None]                 # (B, H)
    mask_b1hw = pad_1d[:, None, :, None] | pad_1d[:, None, None, :]  # (B,1,H,W)

    # deterministic parameters (shapes follow MaskCNN.__init__)
    w_oihw = 0.1 * jax.random.normal(kw, (depth, C_in, C_in, 3, 3), jnp.float32)
    ln_w = jnp.ones((depth, C_in), jnp.float32)    # LayerNorm weight init = ones
    ln_b = jnp.zeros((depth, C_in), jnp.float32)   # LayerNorm bias init = zeros
    # Final MaskConv2d(C_in -> C_out) exists in the module, but its output never
    # reaches MaskCNN's return value (_x); created for shape parity, unused.
    w_final_oihw = 0.1 * jax.random.normal(kwf, (C_out, C_in, 3, 3), jnp.float32)
    del w_final_oihw

    out = mask_cnn_forward(x_nchw, mask_b1hw, w_oihw, ln_w, ln_b)
    out = jax.block_until_ready(out)

    ref = reference_forward(x_nchw, mask_b1hw, w_oihw, ln_w, ln_b)
    # 5e-2 tolerance: the kernel uses bf16 MXU operands (f32 accumulation) for
    # the conv matmuls, which shifts the error floor vs the pure-f32 reference.
    if not bool(jnp.allclose(out, ref, atol=5e-2, rtol=5e-2)):
        raise AssertionError("Pallas MaskCNN output mismatches JAX reference")

    print("KERNEL_OK")
</pallas_src>

<mosaic_0001>
module attributes {stable_mosaic.version = 11 : i64} {
  func.func @_maskcnn_kernel(%arg0: i32, %arg1: memref<1x32x256xf32, #tpu.memory_space<vmem>>, %arg2: memref<1x1x256xf32, #tpu.memory_space<vmem>>, %arg3: memref<9x1x256xf32, #tpu.memory_space<vmem>>, %arg4: memref<3x288x32xbf16, #tpu.memory_space<vmem>>, %arg5: memref<3x32x1xf32, #tpu.memory_space<vmem>>, %arg6: memref<3x32x1xf32, #tpu.memory_space<vmem>>, %arg7: memref<1x32x256xf32, #tpu.memory_space<vmem>>) attributes {dimension_semantics = [#tpu.dimension_semantics<parallel>], iteration_bounds = array<i64: 2>, scalar_prefetch = 0 : i64, scratch_operands = 0 : i64, tpu.core_type = #tpu.core_type<tc>, window_params = [{transform_indices = @transform_0, window_bounds = array<i64: 1, 32, 256>}, {transform_indices = @transform_1, window_bounds = array<i64: 1, 1, 256>}, {pipeline_mode = #tpu.pipeline_mode<synchronous>, transform_indices = @transform_2, window_bounds = array<i64: 9, 1, 256>}, {pipeline_mode = #tpu.pipeline_mode<synchronous>, transform_indices = @transform_3, window_bounds = array<i64: 3, 288, 32>}, {pipeline_mode = #tpu.pipeline_mode<synchronous>, transform_indices = @transform_4, window_bounds = array<i64: 3, 32, 1>}, {pipeline_mode = #tpu.pipeline_mode<synchronous>, transform_indices = @transform_5, window_bounds = array<i64: 3, 32, 1>}, {transform_indices = @transform_6, window_bounds = array<i64: 1, 32, 256>}]} {
    %c0 = arith.constant 0 : index
    %c0_0 = arith.constant 0 : index
    %c0_1 = arith.constant 0 : index
    %0 = vector.load %arg2[%c0, %c0_0, %c0_1] : memref<1x1x256xf32, #tpu.memory_space<vmem>>, vector<1x1x256xf32>
    %1 = vector.shape_cast %0 : vector<1x1x256xf32> to vector<1x256xf32>
    %c0_2 = arith.constant 0 : index
    %c0_3 = arith.constant 0 : index
    %c0_4 = arith.constant 0 : index
    %2 = vector.load %arg1[%c0_2, %c0_3, %c0_4] : memref<1x32x256xf32, #tpu.memory_space<vmem>>, vector<1x32x256xf32>
    %3 = vector.shape_cast %2 : vector<1x32x256xf32> to vector<32x256xf32>
    %4 = vector.broadcast %1 : vector<1x256xf32> to vector<32x256xf32>
    %5 = arith.mulf %3, %4 : vector<32x256xf32>
    %6 = arith.truncf %5 : vector<32x256xf32> to vector<32x256xbf16>
    %c0_5 = arith.constant 0 : index
    %c0_6 = arith.constant 0 : index
    %c0_7 = arith.constant 0 : index
    %7 = vector.load %arg4[%c0_5, %c0_6, %c0_7] : memref<3x288x32xbf16, #tpu.memory_space<vmem>>, vector<1x288x32xbf16>
    %8 = vector.shape_cast %7 : vector<1x288x32xbf16> to vector<288x32xbf16>
    %cst = arith.constant dense<0.000000e+00> : vector<288x256xf32>
    %9 = tpu.matmul %8, %6, %cst {dimension_numbers = #tpu.dot_dimension_numbers<[1], [0], [0], [1], [0, 0, 1, 1], [], []>} : vector<288x32xbf16>, vector<32x256xbf16>, vector<288x256xf32> -> vector<288x256xf32>
    %10 = vector.extract_strided_slice %9 {offsets = [128, 0], sizes = [32, 256], strides = [1, 1]} : vector<288x256xf32> to vector<32x256xf32>
    %11 = vector.extract_strided_slice %9 {offsets = [0, 0], sizes = [32, 256], strides = [1, 1]} : vector<288x256xf32> to vector<32x256xf32>
    %c17_i32 = arith.constant 17 : i32
    %12 = tpu.dynamic_rotate %11 by %c17_i32 dim 1 : vector<32x256xf32>, i32 -> vector<32x256xf32>
    %c0_8 = arith.constant 0 : index
    %c0_9 = arith.constant 0 : index
    %c0_10 = arith.constant 0 : index
    %13 = vector.load %arg3[%c0_8, %c0_9, %c0_10] : memref<9x1x256xf32, #tpu.memory_space<vmem>>, vector<1x1x256xf32>
    %14 = vector.shape_cast %13 : vector<1x1x256xf32> to vector<1x256xf32>
    %15 = vector.broadcast %14 : vector<1x256xf32> to vector<32x256xf32>
    %16 = arith.mulf %12, %15 : vector<32x256xf32>
    %17 = arith.addf %10, %16 : vector<32x256xf32>
    %18 = vector.extract_strided_slice %9 {offsets = [32, 0], sizes = [32, 256], strides = [1, 1]} : vector<288x256xf32> to vector<32x256xf32>
    %c16_i32 = arith.constant 16 : i32
    %19 = tpu.dynamic_rotate %18 by %c16_i32 dim 1 : vector<32x256xf32>, i32 -> vector<32x256xf32>
    %c1 = arith.constant 1 : index
    %c0_11 = arith.constant 0 : index
    %c0_12 = arith.constant 0 : index
    %20 = vector.load %arg3[%c1, %c0_11, %c0_12] : memref<9x1x256xf32, #tpu.memory_space<vmem>>, vector<1x1x256xf32>
    %21 = vector.shape_cast %20 : vector<1x1x256xf32> to vector<1x256xf32>
    %22 = vector.broadcast %21 : vector<1x256xf32> to vector<32x256xf32>
    %23 = arith.mulf %19, %22 : vector<32x256xf32>
    %24 = arith.addf %17, %23 : vector<32x256xf32>
    %25 = vector.extract_strided_slice %9 {offsets = [64, 0], sizes = [32, 256], strides = [1, 1]} : vector<288x256xf32> to vector<32x256xf32>
    %c15_i32 = arith.constant 15 : i32
    %26 = tpu.dynamic_rotate %25 by %c15_i32 dim 1 : vector<32x256xf32>, i32 -> vector<32x256xf32>
    %c2 = arith.constant 2 : index
    %c0_13 = arith.constant 0 : index
    %c0_14 = arith.constant 0 : index
    %27 = vector.load %arg3[%c2, %c0_13, %c0_14] : memref<9x1x256xf32, #tpu.memory_space<vmem>>, vector<1x1x256xf32>
    %28 = vector.shape_cast %27 : vector<1x1x256xf32> to vector<1x256xf32>
    %29 = vector.broadcast %28 : vector<1x256xf32> to vector<32x256xf32>
    %30 = arith.mulf %26, %29 : vector<32x256xf32>
    %31 = arith.addf %24, %30 : vector<32x256xf32>
    %32 = vector.extract_strided_slice %9 {offsets = [96, 0], sizes = [32, 256], strides = [1, 1]} : vector<288x256xf32> to vector<32x256xf32>
    %c1_i32 = arith.constant 1 : i32
    %33 = tpu.dynamic_rotate %32 by %c1_i32 dim 1 : vector<32x256xf32>, i32 -> vector<32x256xf32>
    %c3 = arith.constant 3 : index
    %c0_15 = arith.constant 0 : index
    %c0_16 = arith.constant 0 : index
    %34 = vector.load %arg3[%c3, %c0_15, %c0_16] : memref<9x1x256xf32, #tpu.memory_space<vmem>>, vector<1x1x256xf32>
    %35 = vector.shape_cast %34 : vector<1x1x256xf32> to vector<1x256xf32>
    %36 = vector.broadcast %35 : vector<1x256xf32> to vector<32x256xf32>
    %37 = arith.mulf %33, %36 : vector<32x256xf32>
    %38 = arith.addf %31, %37 : vector<32x256xf32>
    %39 = vector.extract_strided_slice %9 {offsets = [160, 0], sizes = [32, 256], strides = [1, 1]} : vector<288x256xf32> to vector<32x256xf32>
    %c255_i32 = arith.constant 255 : i32
    %40 = tpu.dynamic_rotate %39 by %c255_i32 dim 1 : vector<32x256xf32>, i32 -> vector<32x256xf32>
    %c5 = arith.constant 5 : index
    %c0_17 = arith.constant 0 : index
    %c0_18 = arith.constant 0 : index
    %41 = vector.load %arg3[%c5, %c0_17, %c0_18] : memref<9x1x256xf32, #tpu.memory_space<vmem>>, vector<1x1x256xf32>
    %42 = vector.shape_cast %41 : vector<1x1x256xf32> to vector<1x256xf32>
    %43 = vector.broadcast %42 : vector<1x256xf32> to vector<32x256xf32>
    %44 = arith.mulf %40, %43 : vector<32x256xf32>
    %45 = arith.addf %38, %44 : vector<32x256xf32>
    %46 = vector.extract_strided_slice %9 {offsets = [192, 0], sizes = [32, 256], strides = [1, 1]} : vector<288x256xf32> to vector<32x256xf32>
    %c241_i32 = arith.constant 241 : i32
    %47 = tpu.dynamic_rotate %46 by %c241_i32 dim 1 : vector<32x256xf32>, i32 -> vector<32x256xf32>
    %c6 = arith.constant 6 : index
    %c0_19 = arith.constant 0 : index
    %c0_20 = arith.constant 0 : index
    %48 = vector.load %arg3[%c6, %c0_19, %c0_20] : memref<9x1x256xf32, #tpu.memory_space<vmem>>, vector<1x1x256xf32>
    %49 = vector.shape_cast %48 : vector<1x1x256xf32> to vector<1x256xf32>
    %50 = vector.broadcast %49 : vector<1x256xf32> to vector<32x256xf32>
    %51 = arith.mulf %47, %50 : vector<32x256xf32>
    %52 = arith.addf %45, %51 : vector<32x256xf32>
    %53 = vector.extract_strided_slice %9 {offsets = [224, 0], sizes = [32, 256], strides = [1, 1]} : vector<288x256xf32> to vector<32x256xf32>
    %c240_i32 = arith.constant 240 : i32
    %54 = tpu.dynamic_rotate %53 by %c240_i32 dim 1 : vector<32x256xf32>, i32 -> vector<32x256xf32>
    %c7 = arith.constant 7 : index
    %c0_21 = arith.constant 0 : index
    %c0_22 = arith.constant 0 : index
    %55 = vector.load %arg3[%c7, %c0_21, %c0_22] : memref<9x1x256xf32, #tpu.memory_space<vmem>>, vector<1x1x256xf32>
    %56 = vector.shape_cast %55 : vector<1x1x256xf32> to vector<1x256xf32>
    %57 = vector.broadcast %56 : vector<1x256xf32> to vector<32x256xf32>
    %58 = arith.mulf %54, %57 : vector<32x256xf32>
    %59 = arith.addf %52, %58 : vector<32x256xf32>
    %60 = vector.extract_strided_slice %9 {offsets = [256, 0], sizes = [32, 256], strides = [1, 1]} : vector<288x256xf32> to vector<32x256xf32>
    %c239_i32 = arith.constant 239 : i32
    %61 = tpu.dynamic_rotate %60 by %c239_i32 dim 1 : vector<32x256xf32>, i32 -> vector<32x256xf32>
    %c8 = arith.constant 8 : index
    %c0_23 = arith.constant 0 : index
    %c0_24 = arith.constant 0 : index
    %62 = vector.load %arg3[%c8, %c0_23, %c0_24] : memref<9x1x256xf32, #tpu.memory_space<vmem>>, vector<1x1x256xf32>
    %63 = vector.shape_cast %62 : vector<1x1x256xf32> to vector<1x256xf32>
    %64 = vector.broadcast %63 : vector<1x256xf32> to vector<32x256xf32>
    %65 = arith.mulf %61, %64 : vector<32x256xf32>
    %66 = arith.addf %59, %65 : vector<32x256xf32>
    %67 = arith.addf %66, %3 : vector<32x256xf32>
    %cst_25 = arith.constant dense<0.000000e+00> : vector<256xf32>
    %68 = vector.multi_reduction <add>, %67, %cst_25 [0] : vector<32x256xf32> to vector<256xf32>
    %69 = vector.shape_cast %68 : vector<256xf32> to vector<1x256xf32>
    %cst_26 = arith.constant 3.200000e+01 : f32
    %70 = vector.broadcast %cst_26 : f32 to vector<1x256xf32>
    %71 = arith.divf %69, %70 : vector<1x256xf32>
    %72 = vector.broadcast %71 : vector<1x256xf32> to vector<32x256xf32>
    %73 = arith.subf %67, %72 : vector<32x256xf32>
    %74 = arith.mulf %73, %73 : vector<32x256xf32>
    %cst_27 = arith.constant dense<0.000000e+00> : vector<256xf32>
    %75 = vector.multi_reduction <add>, %74, %cst_27 [0] : vector<32x256xf32> to vector<256xf32>
    %76 = vector.shape_cast %75 : vector<256xf32> to vector<1x256xf32>
    %cst_28 = arith.constant 3.200000e+01 : f32
    %77 = vector.broadcast %cst_28 : f32 to vector<1x256xf32>
    %78 = arith.divf %76, %77 : vector<1x256xf32>
    %79 = vector.broadcast %71 : vector<1x256xf32> to vector<32x256xf32>
    %80 = arith.subf %67, %79 : vector<32x256xf32>
    %cst_29 = arith.constant 9.99999997E-7 : f32
    %81 = vector.broadcast %cst_29 : f32 to vector<1x256xf32>
    %82 = arith.addf %78, %81 : vector<1x256xf32>
    %83 = math.rsqrt %82 : vector<1x256xf32>
    %84 = vector.broadcast %83 : vector<1x256xf32> to vector<32x256xf32>
    %85 = arith.mulf %80, %84 : vector<32x256xf32>
    %c0_30 = arith.constant 0 : index
    %c0_31 = arith.constant 0 : index
    %c0_32 = arith.constant 0 : index
    %86 = vector.load %arg5[%c0_30, %c0_31, %c0_32] : memref<3x32x1xf32, #tpu.memory_space<vmem>>, vector<1x32x1xf32>
    %87 = vector.shape_cast %86 : vector<1x32x1xf32> to vector<32x1xf32>
    %88 = vector.broadcast %87 : vector<32x1xf32> to vector<32x256xf32>
    %89 = arith.mulf %85, %88 : vector<32x256xf32>
    %c0_33 = arith.constant 0 : index
    %c0_34 = arith.constant 0 : index
    %c0_35 = arith.constant 0 : index
    %90 = vector.load %arg6[%c0_33, %c0_34, %c0_35] : memref<3x32x1xf32, #tpu.memory_space<vmem>>, vector<1x32x1xf32>
    %91 = vector.shape_cast %90 : vector<1x32x1xf32> to vector<32x1xf32>
    %92 = vector.broadcast %91 : vector<32x1xf32> to vector<32x256xf32>
    %93 = arith.addf %89, %92 : vector<32x256xf32>
    %cst_36 = arith.constant 5.000000e-01 : f32
    %94 = vector.broadcast %cst_36 : f32 to vector<32x256xf32>
    %95 = arith.mulf %94, %93 : vector<32x256xf32>
    %cst_37 = arith.constant 0.707106769 : f32
    %96 = vector.broadcast %cst_37 : f32 to vector<32x256xf32>
    %97 = arith.mulf %93, %96 : vector<32x256xf32>
    %cst_38 = arith.constant 0.000000e+00 : f32
    %98 = vector.broadcast %cst_38 : f32 to vector<32x256xf32>
    %99 = arith.cmpf olt, %97, %98 : vector<32x256xf32>
    %cst_39 = arith.constant -1.000000e+00 : f32
    %cst_40 = arith.constant 1.000000e+00 : f32
    %100 = vector.broadcast %cst_39 : f32 to vector<32x256xf32>
    %101 = vector.broadcast %cst_40 : f32 to vector<32x256xf32>
    %102 = arith.select %99, %100, %101 : vector<32x256xi1>, vector<32x256xf32>
    %103 = math.absf %97 : vector<32x256xf32>
    %cst_41 = arith.constant 0.327591091 : f32
    %104 = vector.broadcast %cst_41 : f32 to vector<32x256xf32>
    %105 = arith.mulf %104, %103 : vector<32x256xf32>
    %cst_42 = arith.constant 1.000000e+00 : f32
    %106 = vector.broadcast %cst_42 : f32 to vector<32x256xf32>
    %107 = arith.addf %106, %105 : vector<32x256xf32>
    %108 = tpu.reciprocal %107 {approx = true} : vector<32x256xf32> -> vector<32x256xf32>
    %cst_43 = arith.constant 1.06140542 : f32
    %109 = vector.broadcast %cst_43 : f32 to vector<32x256xf32>
    %110 = arith.mulf %109, %108 : vector<32x256xf32>
    %cst_44 = arith.constant -1.45315206 : f32
    %111 = vector.broadcast %cst_44 : f32 to vector<32x256xf32>
    %112 = arith.addf %110, %111 : vector<32x256xf32>
    %113 = arith.mulf %112, %108 : vector<32x256xf32>
    %cst_45 = arith.constant 1.42141378 : f32
    %114 = vector.broadcast %cst_45 : f32 to vector<32x256xf32>
    %115 = arith.addf %113, %114 : vector<32x256xf32>
    %116 = arith.mulf %115, %108 : vector<32x256xf32>
    %cst_46 = arith.constant -0.284496725 : f32
    %117 = vector.broadcast %cst_46 : f32 to vector<32x256xf32>
    %118 = arith.addf %116, %117 : vector<32x256xf32>
    %119 = arith.mulf %118, %108 : vector<32x256xf32>
    %cst_47 = arith.constant 0.254829586 : f32
    %120 = vector.broadcast %cst_47 : f32 to vector<32x256xf32>
    %121 = arith.addf %119, %120 : vector<32x256xf32>
    %122 = arith.mulf %121, %108 : vector<32x256xf32>
    %cst_48 = arith.constant 0.000000e+00 : f32
    %123 = vector.broadcast %cst_48 : f32 to vector<32x256xf32>
    %124 = arith.subf %123, %103 : vector<32x256xf32>
    %125 = arith.mulf %124, %103 : vector<32x256xf32>
    %126 = math.exp %125 : vector<32x256xf32>
    %127 = arith.mulf %122, %126 : vector<32x256xf32>
    %cst_49 = arith.constant 1.000000e+00 : f32
    %128 = vector.broadcast %cst_49 : f32 to vector<32x256xf32>
    %129 = arith.subf %128, %127 : vector<32x256xf32>
    %130 = arith.mulf %102, %129 : vector<32x256xf32>
    %cst_50 = arith.constant 1.000000e+00 : f32
    %131 = vector.broadcast %cst_50 : f32 to vector<32x256xf32>
    %132 = arith.addf %131, %130 : vector<32x256xf32>
    %133 = arith.mulf %95, %132 : vector<32x256xf32>
    %134 = vector.broadcast %1 : vector<1x256xf32> to vector<32x256xf32>
    %135 = arith.mulf %133, %134 : vector<32x256xf32>
    %136 = arith.truncf %135 : vector<32x256xf32> to vector<32x256xbf16>
    %c1_51 = arith.constant 1 : index
    %c0_52 = arith.constant 0 : index
    %c0_53 = arith.constant 0 : index
    %137 = vector.load %arg4[%c1_51, %c0_52, %c0_53] : memref<3x288x32xbf16, #tpu.memory_space<vmem>>, vector<1x288x32xbf16>
    %138 = vector.shape_cast %137 : vector<1x288x32xbf16> to vector<288x32xbf16>
    %cst_54 = arith.constant dense<0.000000e+00> : vector<288x256xf32>
    %139 = tpu.matmul %138, %136, %cst_54 {dimension_numbers = #tpu.dot_dimension_numbers<[1], [0], [0], [1], [0, 0, 1, 1], [], []>} : vector<288x32xbf16>, vector<32x256xbf16>, vector<288x256xf32> -> vector<288x256xf32>
    %140 = vector.extract_strided_slice %139 {offsets = [128, 0], sizes = [32, 256], strides = [1, 1]} : vector<288x256xf32> to vector<32x256xf32>
    %141 = vector.extract_strided_slice %139 {offsets = [0, 0], sizes = [32, 256], strides = [1, 1]} : vector<288x256xf32> to vector<32x256xf32>
    %c17_i32_55 = arith.constant 17 : i32
    %142 = tpu.dynamic_rotate %141 by %c17_i32_55 dim 1 : vector<32x256xf32>, i32 -> vector<32x256xf32>
    %c0_56 = arith.constant 0 : index
    %c0_57 = arith.constant 0 : index
    %c0_58 = arith.constant 0 : index
    %143 = vector.load %arg3[%c0_56, %c0_57, %c0_58] : memref<9x1x256xf32, #tpu.memory_space<vmem>>, vector<1x1x256xf32>
    %144 = vector.shape_cast %143 : vector<1x1x256xf32> to vector<1x256xf32>
    %145 = vector.broadcast %144 : vector<1x256xf32> to vector<32x256xf32>
    %146 = arith.mulf %142, %145 : vector<32x256xf32>
    %147 = arith.addf %140, %146 : vector<32x256xf32>
    %148 = vector.extract_strided_slice %139 {offsets = [32, 0], sizes = [32, 256], strides = [1, 1]} : vector<288x256xf32> to vector<32x256xf32>
    %c16_i32_59 = arith.constant 16 : i32
    %149 = tpu.dynamic_rotate %148 by %c16_i32_59 dim 1 : vector<32x256xf32>, i32 -> vector<32x256xf32>
    %c1_60 = arith.constant 1 : index
    %c0_61 = arith.constant 0 : index
    %c0_62 = arith.constant 0 : index
    %150 = vector.load %arg3[%c1_60, %c0_61, %c0_62] : memref<9x1x256xf32, #tpu.memory_space<vmem>>, vector<1x1x256xf32>
    %151 = vector.shape_cast %150 : vector<1x1x256xf32> to vector<1x256xf32>
    %152 = vector.broadcast %151 : vector<1x256xf32> to vector<32x256xf32>
    %153 = arith.mulf %149, %152 : vector<32x256xf32>
    %154 = arith.addf %147, %153 : vector<32x256xf32>
    %155 = vector.extract_strided_slice %139 {offsets = [64, 0], sizes = [32, 256], strides = [1, 1]} : vector<288x256xf32> to vector<32x256xf32>
    %c15_i32_63 = arith.constant 15 : i32
    %156 = tpu.dynamic_rotate %155 by %c15_i32_63 dim 1 : vector<32x256xf32>, i32 -> vector<32x256xf32>
    %c2_64 = arith.constant 2 : index
    %c0_65 = arith.constant 0 : index
    %c0_66 = arith.constant 0 : index
    %157 = vector.load %arg3[%c2_64, %c0_65, %c0_66] : memref<9x1x256xf32, #tpu.memory_space<vmem>>, vector<1x1x256xf32>
    %158 = vector.shape_cast %157 : vector<1x1x256xf32> to vector<1x256xf32>
    %159 = vector.broadcast %158 : vector<1x256xf32> to vector<32x256xf32>
    %160 = arith.mulf %156, %159 : vector<32x256xf32>
    %161 = arith.addf %154, %160 : vector<32x256xf32>
    %162 = vector.extract_strided_slice %139 {offsets = [96, 0], sizes = [32, 256], strides = [1, 1]} : vector<288x256xf32> to vector<32x256xf32>
    %c1_i32_67 = arith.constant 1 : i32
    %163 = tpu.dynamic_rotate %162 by %c1_i32_67 dim 1 : vector<32x256xf32>, i32 -> vector<32x256xf32>
    %c3_68 = arith.constant 3 : index
    %c0_69 = arith.constant 0 : index
    %c0_70 = arith.constant 0 : index
    %164 = vector.load %arg3[%c3_68, %c0_69, %c0_70] : memref<9x1x256xf32, #tpu.memory_space<vmem>>, vector<1x1x256xf32>
    %165 = vector.shape_cast %164 : vector<1x1x256xf32> to vector<1x256xf32>
    %166 = vector.broadcast %165 : vector<1x256xf32> to vector<32x256xf32>
    %167 = arith.mulf %163, %166 : vector<32x256xf32>
    %168 = arith.addf %161, %167 : vector<32x256xf32>
    %169 = vector.extract_strided_slice %139 {offsets = [160, 0], sizes = [32, 256], strides = [1, 1]} : vector<288x256xf32> to vector<32x256xf32>
    %c255_i32_71 = arith.constant 255 : i32
    %170 = tpu.dynamic_rotate %169 by %c255_i32_71 dim 1 : vector<32x256xf32>, i32 -> vector<32x256xf32>
    %c5_72 = arith.constant 5 : index
    %c0_73 = arith.constant 0 : index
    %c0_74 = arith.constant 0 : index
    %171 = vector.load %arg3[%c5_72, %c0_73, %c0_74] : memref<9x1x256xf32, #tpu.memory_space<vmem>>, vector<1x1x256xf32>
    %172 = vector.shape_cast %171 : vector<1x1x256xf32> to vector<1x256xf32>
    %173 = vector.broadcast %172 : vector<1x256xf32> to vector<32x256xf32>
    %174 = arith.mulf %170, %173 : vector<32x256xf32>
    %175 = arith.addf %168, %174 : vector<32x256xf32>
    %176 = vector.extract_strided_slice %139 {offsets = [192, 0], sizes = [32, 256], strides = [1, 1]} : vector<288x256xf32> to vector<32x256xf32>
    %c241_i32_75 = arith.constant 241 : i32
    %177 = tpu.dynamic_rotate %176 by %c241_i32_75 dim 1 : vector<32x256xf32>, i32 -> vector<32x256xf32>
    %c6_76 = arith.constant 6 : index
    %c0_77 = arith.constant 0 : index
    %c0_78 = arith.constant 0 : index
    %178 = vector.load %arg3[%c6_76, %c0_77, %c0_78] : memref<9x1x256xf32, #tpu.memory_space<vmem>>, vector<1x1x256xf32>
    %179 = vector.shape_cast %178 : vector<1x1x256xf32> to vector<1x256xf32>
    %180 = vector.broadcast %179 : vector<1x256xf32> to vector<32x256xf32>
    %181 = arith.mulf %177, %180 : vector<32x256xf32>
    %182 = arith.addf %175, %181 : vector<32x256xf32>
    %183 = vector.extract_strided_slice %139 {offsets = [224, 0], sizes = [32, 256], strides = [1, 1]} : vector<288x256xf32> to vector<32x256xf32>
    %c240_i32_79 = arith.constant 240 : i32
    %184 = tpu.dynamic_rotate %183 by %c240_i32_79 dim 1 : vector<32x256xf32>, i32 -> vector<32x256xf32>
    %c7_80 = arith.constant 7 : index
    %c0_81 = arith.constant 0 : index
    %c0_82 = arith.constant 0 : index
    %185 = vector.load %arg3[%c7_80, %c0_81, %c0_82] : memref<9x1x256xf32, #tpu.memory_space<vmem>>, vector<1x1x256xf32>
    %186 = vector.shape_cast %185 : vector<1x1x256xf32> to vector<1x256xf32>
    %187 = vector.broadcast %186 : vector<1x256xf32> to vector<32x256xf32>
    %188 = arith.mulf %184, %187 : vector<32x256xf32>
    %189 = arith.addf %182, %188 : vector<32x256xf32>
    %190 = vector.extract_strided_slice %139 {offsets = [256, 0], sizes = [32, 256], strides = [1, 1]} : vector<288x256xf32> to vector<32x256xf32>
    %c239_i32_83 = arith.constant 239 : i32
    %191 = tpu.dynamic_rotate %190 by %c239_i32_83 dim 1 : vector<32x256xf32>, i32 -> vector<32x256xf32>
    %c8_84 = arith.constant 8 : index
    %c0_85 = arith.constant 0 : index
    %c0_86 = arith.constant 0 : index
    %192 = vector.load %arg3[%c8_84, %c0_85, %c0_86] : memref<9x1x256xf32, #tpu.memory_space<vmem>>, vector<1x1x256xf32>
    %193 = vector.shape_cast %192 : vector<1x1x256xf32> to vector<1x256xf32>
    %194 = vector.broadcast %193 : vector<1x256xf32> to vector<32x256xf32>
    %195 = arith.mulf %191, %194 : vector<32x256xf32>
    %196 = arith.addf %189, %195 : vector<32x256xf32>
    %197 = arith.addf %196, %93 : vector<32x256xf32>
    %cst_87 = arith.constant dense<0.000000e+00> : vector<256xf32>
    %198 = vector.multi_reduction <add>, %197, %cst_87 [0] : vector<32x256xf32> to vector<256xf32>
    %199 = vector.shape_cast %198 : vector<256xf32> to vector<1x256xf32>
    %cst_88 = arith.constant 3.200000e+01 : f32
    %200 = vector.broadcast %cst_88 : f32 to vector<1x256xf32>
    %201 = arith.divf %199, %200 : vector<1x256xf32>
    %202 = vector.broadcast %201 : vector<1x256xf32> to vector<32x256xf32>
    %203 = arith.subf %197, %202 : vector<32x256xf32>
    %204 = arith.mulf %203, %203 : vector<32x256xf32>
    %cst_89 = arith.constant dense<0.000000e+00> : vector<256xf32>
    %205 = vector.multi_reduction <add>, %204, %cst_89 [0] : vector<32x256xf32> to vector<256xf32>
    %206 = vector.shape_cast %205 : vector<256xf32> to vector<1x256xf32>
    %cst_90 = arith.constant 3.200000e+01 : f32
    %207 = vector.broadcast %cst_90 : f32 to vector<1x256xf32>
    %208 = arith.divf %206, %207 : vector<1x256xf32>
    %209 = vector.broadcast %201 : vector<1x256xf32> to vector<32x256xf32>
    %210 = arith.subf %197, %209 : vector<32x256xf32>
    %cst_91 = arith.constant 9.99999997E-7 : f32
    %211 = vector.broadcast %cst_91 : f32 to vector<1x256xf32>
    %212 = arith.addf %208, %211 : vector<1x256xf32>
    %213 = math.rsqrt %212 : vector<1x256xf32>
    %214 = vector.broadcast %213 : vector<1x256xf32> to vector<32x256xf32>
    %215 = arith.mulf %210, %214 : vector<32x256xf32>
    %c1_92 = arith.constant 1 : index
    %c0_93 = arith.constant 0 : index
    %c0_94 = arith.constant 0 : index
    %216 = vector.load %arg5[%c1_92, %c0_93, %c0_94] : memref<3x32x1xf32, #tpu.memory_space<vmem>>, vector<1x32x1xf32>
    %217 = vector.shape_cast %216 : vector<1x32x1xf32> to vector<32x1xf32>
    %218 = vector.broadcast %217 : vector<32x1xf32> to vector<32x256xf32>
    %219 = arith.mulf %215, %218 : vector<32x256xf32>
    %c1_95 = arith.constant 1 : index
    %c0_96 = arith.constant 0 : index
    %c0_97 = arith.constant 0 : index
    %220 = vector.load %arg6[%c1_95, %c0_96, %c0_97] : memref<3x32x1xf32, #tpu.memory_space<vmem>>, vector<1x32x1xf32>
    %221 = vector.shape_cast %220 : vector<1x32x1xf32> to vector<32x1xf32>
    %222 = vector.broadcast %221 : vector<32x1xf32> to vector<32x256xf32>
    %223 = arith.addf %219, %222 : vector<32x256xf32>
    %cst_98 = arith.constant 5.000000e-01 : f32
    %224 = vector.broadcast %cst_98 : f32 to vector<32x256xf32>
    %225 = arith.mulf %224, %223 : vector<32x256xf32>
    %cst_99 = arith.constant 0.707106769 : f32
    %226 = vector.broadcast %cst_99 : f32 to vector<32x256xf32>
    %227 = arith.mulf %223, %226 : vector<32x256xf32>
    %cst_100 = arith.constant 0.000000e+00 : f32
    %228 = vector.broadcast %cst_100 : f32 to vector<32x256xf32>
    %229 = arith.cmpf olt, %227, %228 : vector<32x256xf32>
    %cst_101 = arith.constant -1.000000e+00 : f32
    %cst_102 = arith.constant 1.000000e+00 : f32
    %230 = vector.broadcast %cst_101 : f32 to vector<32x256xf32>
    %231 = vector.broadcast %cst_102 : f32 to vector<32x256xf32>
    %232 = arith.select %229, %230, %231 : vector<32x256xi1>, vector<32x256xf32>
    %233 = math.absf %227 : vector<32x256xf32>
    %cst_103 = arith.constant 0.327591091 : f32
    %234 = vector.broadcast %cst_103 : f32 to vector<32x256xf32>
    %235 = arith.mulf %234, %233 : vector<32x256xf32>
    %cst_104 = arith.constant 1.000000e+00 : f32
    %236 = vector.broadcast %cst_104 : f32 to vector<32x256xf32>
    %237 = arith.addf %236, %235 : vector<32x256xf32>
    %238 = tpu.reciprocal %237 {approx = true} : vector<32x256xf32> -> vector<32x256xf32>
    %cst_105 = arith.constant 1.06140542 : f32
    %239 = vector.broadcast %cst_105 : f32 to vector<32x256xf32>
    %240 = arith.mulf %239, %238 : vector<32x256xf32>
    %cst_106 = arith.constant -1.45315206 : f32
    %241 = vector.broadcast %cst_106 : f32 to vector<32x256xf32>
    %242 = arith.addf %240, %241 : vector<32x256xf32>
    %243 = arith.mulf %242, %238 : vector<32x256xf32>
    %cst_107 = arith.constant 1.42141378 : f32
    %244 = vector.broadcast %cst_107 : f32 to vector<32x256xf32>
    %245 = arith.addf %243, %244 : vector<32x256xf32>
    %246 = arith.mulf %245, %238 : vector<32x256xf32>
    %cst_108 = arith.constant -0.284496725 : f32
    %247 = vector.broadcast %cst_108 : f32 to vector<32x256xf32>
    %248 = arith.addf %246, %247 : vector<32x256xf32>
    %249 = arith.mulf %248, %238 : vector<32x256xf32>
    %cst_109 = arith.constant 0.254829586 : f32
    %250 = vector.broadcast %cst_109 : f32 to vector<32x256xf32>
    %251 = arith.addf %249, %250 : vector<32x256xf32>
    %252 = arith.mulf %251, %238 : vector<32x256xf32>
    %cst_110 = arith.constant 0.000000e+00 : f32
    %253 = vector.broadcast %cst_110 : f32 to vector<32x256xf32>
    %254 = arith.subf %253, %233 : vector<32x256xf32>
    %255 = arith.mulf %254, %233 : vector<32x256xf32>
    %256 = math.exp %255 : vector<32x256xf32>
    %257 = arith.mulf %252, %256 : vector<32x256xf32>
    %cst_111 = arith.constant 1.000000e+00 : f32
    %258 = vector.broadcast %cst_111 : f32 to vector<32x256xf32>
    %259 = arith.subf %258, %257 : vector<32x256xf32>
    %260 = arith.mulf %232, %259 : vector<32x256xf32>
    %cst_112 = arith.constant 1.000000e+00 : f32
    %261 = vector.broadcast %cst_112 : f32 to vector<32x256xf32>
    %262 = arith.addf %261, %260 : vector<32x256xf32>
    %263 = arith.mulf %225, %262 : vector<32x256xf32>
    %264 = vector.broadcast %1 : vector<1x256xf32> to vector<32x256xf32>
    %265 = arith.mulf %263, %264 : vector<32x256xf32>
    %266 = arith.truncf %265 : vector<32x256xf32> to vector<32x256xbf16>
    %c2_113 = arith.constant 2 : index
    %c0_114 = arith.constant 0 : index
    %c0_115 = arith.constant 0 : index
    %267 = vector.load %arg4[%c2_113, %c0_114, %c0_115] : memref<3x288x32xbf16, #tpu.memory_space<vmem>>, vector<1x288x32xbf16>
    %268 = vector.shape_cast %267 : vector<1x288x32xbf16> to vector<288x32xbf16>
    %cst_116 = arith.constant dense<0.000000e+00> : vector<288x256xf32>
    %269 = tpu.matmul %268, %266, %cst_116 {dimension_numbers = #tpu.dot_dimension_numbers<[1], [0], [0], [1], [0, 0, 1, 1], [], []>} : vector<288x32xbf16>, vector<32x256xbf16>, vector<288x256xf32> -> vector<288x256xf32>
    %270 = vector.extract_strided_slice %269 {offsets = [128, 0], sizes = [32, 256], strides = [1, 1]} : vector<288x256xf32> to vector<32x256xf32>
    %271 = vector.extract_strided_slice %269 {offsets = [0, 0], sizes = [32, 256], strides = [1, 1]} : vector<288x256xf32> to vector<32x256xf32>
    %c17_i32_117 = arith.constant 17 : i32
    %272 = tpu.dynamic_rotate %271 by %c17_i32_117 dim 1 : vector<32x256xf32>, i32 -> vector<32x256xf32>
    %c0_118 = arith.constant 0 : index
    %c0_119 = arith.constant 0 : index
    %c0_120 = arith.constant 0 : index
    %273 = vector.load %arg3[%c0_118, %c0_119, %c0_120] : memref<9x1x256xf32, #tpu.memory_space<vmem>>, vector<1x1x256xf32>
    %274 = vector.shape_cast %273 : vector<1x1x256xf32> to vector<1x256xf32>
    %275 = vector.broadcast %274 : vector<1x256xf32> to vector<32x256xf32>
    %276 = arith.mulf %272, %275 : vector<32x256xf32>
    %277 = arith.addf %270, %276 : vector<32x256xf32>
    %278 = vector.extract_strided_slice %269 {offsets = [32, 0], sizes = [32, 256], strides = [1, 1]} : vector<288x256xf32> to vector<32x256xf32>
    %c16_i32_121 = arith.constant 16 : i32
    %279 = tpu.dynamic_rotate %278 by %c16_i32_121 dim 1 : vector<32x256xf32>, i32 -> vector<32x256xf32>
    %c1_122 = arith.constant 1 : index
    %c0_123 = arith.constant 0 : index
    %c0_124 = arith.constant 0 : index
    %280 = vector.load %arg3[%c1_122, %c0_123, %c0_124] : memref<9x1x256xf32, #tpu.memory_space<vmem>>, vector<1x1x256xf32>
    %281 = vector.shape_cast %280 : vector<1x1x256xf32> to vector<1x256xf32>
    %282 = vector.broadcast %281 : vector<1x256xf32> to vector<32x256xf32>
    %283 = arith.mulf %279, %282 : vector<32x256xf32>
    %284 = arith.addf %277, %283 : vector<32x256xf32>
    %285 = vector.extract_strided_slice %269 {offsets = [64, 0], sizes = [32, 256], strides = [1, 1]} : vector<288x256xf32> to vector<32x256xf32>
    %c15_i32_125 = arith.constant 15 : i32
    %286 = tpu.dynamic_rotate %285 by %c15_i32_125 dim 1 : vector<32x256xf32>, i32 -> vector<32x256xf32>
    %c2_126 = arith.constant 2 : index
    %c0_127 = arith.constant 0 : index
    %c0_128 = arith.constant 0 : index
    %287 = vector.load %arg3[%c2_126, %c0_127, %c0_128] : memref<9x1x256xf32, #tpu.memory_space<vmem>>, vector<1x1x256xf32>
    %288 = vector.shape_cast %287 : vector<1x1x256xf32> to vector<1x256xf32>
    %289 = vector.broadcast %288 : vector<1x256xf32> to vector<32x256xf32>
    %290 = arith.mulf %286, %289 : vector<32x256xf32>
    %291 = arith.addf %284, %290 : vector<32x256xf32>
    %292 = vector.extract_strided_slice %269 {offsets = [96, 0], sizes = [32, 256], strides = [1, 1]} : vector<288x256xf32> to vector<32x256xf32>
    %c1_i32_129 = arith.constant 1 : i32
    %293 = tpu.dynamic_rotate %292 by %c1_i32_129 dim 1 : vector<32x256xf32>, i32 -> vector<32x256xf32>
    %c3_130 = arith.constant 3 : index
    %c0_131 = arith.constant 0 : index
    %c0_132 = arith.constant 0 : index
    %294 = vector.load %arg3[%c3_130, %c0_131, %c0_132] : memref<9x1x256xf32, #tpu.memory_space<vmem>>, vector<1x1x256xf32>
    %295 = vector.shape_cast %294 : vector<1x1x256xf32> to vector<1x256xf32>
    %296 = vector.broadcast %295 : vector<1x256xf32> to vector<32x256xf32>
    %297 = arith.mulf %293, %296 : vector<32x256xf32>
    %298 = arith.addf %291, %297 : vector<32x256xf32>
    %299 = vector.extract_strided_slice %269 {offsets = [160, 0], sizes = [32, 256], strides = [1, 1]} : vector<288x256xf32> to vector<32x256xf32>
    %c255_i32_133 = arith.constant 255 : i32
    %300 = tpu.dynamic_rotate %299 by %c255_i32_133 dim 1 : vector<32x256xf32>, i32 -> vector<32x256xf32>
    %c5_134 = arith.constant 5 : index
    %c0_135 = arith.constant 0 : index
    %c0_136 = arith.constant 0 : index
    %301 = vector.load %arg3[%c5_134, %c0_135, %c0_136] : memref<9x1x256xf32, #tpu.memory_space<vmem>>, vector<1x1x256xf32>
    %302 = vector.shape_cast %301 : vector<1x1x256xf32> to vector<1x256xf32>
    %303 = vector.broadcast %302 : vector<1x256xf32> to vector<32x256xf32>
    %304 = arith.mulf %300, %303 : vector<32x256xf32>
    %305 = arith.addf %298, %304 : vector<32x256xf32>
    %306 = vector.extract_strided_slice %269 {offsets = [192, 0], sizes = [32, 256], strides = [1, 1]} : vector<288x256xf32> to vector<32x256xf32>
    %c241_i32_137 = arith.constant 241 : i32
    %307 = tpu.dynamic_rotate %306 by %c241_i32_137 dim 1 : vector<32x256xf32>, i32 -> vector<32x256xf32>
    %c6_138 = arith.constant 6 : index
    %c0_139 = arith.constant 0 : index
    %c0_140 = arith.constant 0 : index
    %308 = vector.load %arg3[%c6_138, %c0_139, %c0_140] : memref<9x1x256xf32, #tpu.memory_space<vmem>>, vector<1x1x256xf32>
    %309 = vector.shape_cast %308 : vector<1x1x256xf32> to vector<1x256xf32>
    %310 = vector.broadcast %309 : vector<1x256xf32> to vector<32x256xf32>
    %311 = arith.mulf %307, %310 : vector<32x256xf32>
    %312 = arith.addf %305, %311 : vector<32x256xf32>
    %313 = vector.extract_strided_slice %269 {offsets = [224, 0], sizes = [32, 256], strides = [1, 1]} : vector<288x256xf32> to vector<32x256xf32>
    %c240_i32_141 = arith.constant 240 : i32
    %314 = tpu.dynamic_rotate %313 by %c240_i32_141 dim 1 : vector<32x256xf32>, i32 -> vector<32x256xf32>
    %c7_142 = arith.constant 7 : index
    %c0_143 = arith.constant 0 : index
    %c0_144 = arith.constant 0 : index
    %315 = vector.load %arg3[%c7_142, %c0_143, %c0_144] : memref<9x1x256xf32, #tpu.memory_space<vmem>>, vector<1x1x256xf32>
    %316 = vector.shape_cast %315 : vector<1x1x256xf32> to vector<1x256xf32>
    %317 = vector.broadcast %316 : vector<1x256xf32> to vector<32x256xf32>
    %318 = arith.mulf %314, %317 : vector<32x256xf32>
    %319 = arith.addf %312, %318 : vector<32x256xf32>
    %320 = vector.extract_strided_slice %269 {offsets = [256, 0], sizes = [32, 256], strides = [1, 1]} : vector<288x256xf32> to vector<32x256xf32>
    %c239_i32_145 = arith.constant 239 : i32
    %321 = tpu.dynamic_rotate %320 by %c239_i32_145 dim 1 : vector<32x256xf32>, i32 -> vector<32x256xf32>
    %c8_146 = arith.constant 8 : index
    %c0_147 = arith.constant 0 : index
    %c0_148 = arith.constant 0 : index
    %322 = vector.load %arg3[%c8_146, %c0_147, %c0_148] : memref<9x1x256xf32, #tpu.memory_space<vmem>>, vector<1x1x256xf32>
    %323 = vector.shape_cast %322 : vector<1x1x256xf32> to vector<1x256xf32>
    %324 = vector.broadcast %323 : vector<1x256xf32> to vector<32x256xf32>
    %325 = arith.mulf %321, %324 : vector<32x256xf32>
    %326 = arith.addf %319, %325 : vector<32x256xf32>
    %327 = arith.addf %326, %223 : vector<32x256xf32>
    %cst_149 = arith.constant dense<0.000000e+00> : vector<256xf32>
    %328 = vector.multi_reduction <add>, %327, %cst_149 [0] : vector<32x256xf32> to vector<256xf32>
    %329 = vector.shape_cast %328 : vector<256xf32> to vector<1x256xf32>
    %cst_150 = arith.constant 3.200000e+01 : f32
    %330 = vector.broadcast %cst_150 : f32 to vector<1x256xf32>
    %331 = arith.divf %329, %330 : vector<1x256xf32>
    %332 = vector.broadcast %331 : vector<1x256xf32> to vector<32x256xf32>
    %333 = arith.subf %327, %332 : vector<32x256xf32>
    %334 = arith.mulf %333, %333 : vector<32x256xf32>
    %cst_151 = arith.constant dense<0.000000e+00> : vector<256xf32>
    %335 = vector.multi_reduction <add>, %334, %cst_151 [0] : vector<32x256xf32> to vector<256xf32>
    %336 = vector.shape_cast %335 : vector<256xf32> to vector<1x256xf32>
    %cst_152 = arith.constant 3.200000e+01 : f32
    %337 = vector.broadcast %cst_152 : f32 to vector<1x256xf32>
    %338 = arith.divf %336, %337 : vector<1x256xf32>
    %339 = vector.broadcast %331 : vector<1x256xf32> to vector<32x256xf32>
    %340 = arith.subf %327, %339 : vector<32x256xf32>
    %cst_153 = arith.constant 9.99999997E-7 : f32
    %341 = vector.broadcast %cst_153 : f32 to vector<1x256xf32>
    %342 = arith.addf %338, %341 : vector<1x256xf32>
    %343 = math.rsqrt %342 : vector<1x256xf32>
    %344 = vector.broadcast %343 : vector<1x256xf32> to vector<32x256xf32>
    %345 = arith.mulf %340, %344 : vector<32x256xf32>
    %c2_154 = arith.constant 2 : index
    %c0_155 = arith.constant 0 : index
    %c0_156 = arith.constant 0 : index
    %346 = vector.load %arg5[%c2_154, %c0_155, %c0_156] : memref<3x32x1xf32, #tpu.memory_space<vmem>>, vector<1x32x1xf32>
    %347 = vector.shape_cast %346 : vector<1x32x1xf32> to vector<32x1xf32>
    %348 = vector.broadcast %347 : vector<32x1xf32> to vector<32x256xf32>
    %349 = arith.mulf %345, %348 : vector<32x256xf32>
    %c2_157 = arith.constant 2 : index
    %c0_158 = arith.constant 0 : index
    %c0_159 = arith.constant 0 : index
    %350 = vector.load %arg6[%c2_157, %c0_158, %c0_159] : memref<3x32x1xf32, #tpu.memory_space<vmem>>, vector<1x32x1xf32>
    %351 = vector.shape_cast %350 : vector<1x32x1xf32> to vector<32x1xf32>
    %352 = vector.broadcast %351 : vector<32x1xf32> to vector<32x256xf32>
    %353 = arith.addf %349, %352 : vector<32x256xf32>
    %c0_160 = arith.constant 0 : index
    %c0_161 = arith.constant 0 : index
    %c0_162 = arith.constant 0 : index
    %354 = vector.load %arg7[%c0_160, %c0_161, %c0_162] : memref<1x32x256xf32, #tpu.memory_space<vmem>>, vector<1x32x256xf32>
    %355 = vector.shape_cast %354 : vector<1x32x256xf32> to vector<32x256xf32>
    %356 = vector.shape_cast %353 : vector<32x256xf32> to vector<1x32x256xf32>
    tpu.vector_store %arg7[%c0_160, %c0_161, %c0_162], %356 {strides = array<i32>} : memref<1x32x256xf32, #tpu.memory_space<vmem>>, vector<1x32x256xf32>,
    return
  }
  func.func @transform_0(%arg0: i32) -> (i32, i32, i32) {
    %c0_i32 = arith.constant 0 : i32
    %c0_i32_0 = arith.constant 0 : i32
    %c0_i32_1 = arith.constant 0 : i32
    return %arg0, %c0_i32, %c0_i32_0 : i32, i32, i32
  }
  func.func @transform_1(%arg0: i32) -> (i32, i32, i32) {
    %c0_i32 = arith.constant 0 : i32
    %c0_i32_0 = arith.constant 0 : i32
    %c0_i32_1 = arith.constant 0 : i32
    return %arg0, %c0_i32, %c0_i32_0 : i32, i32, i32
  }
  func.func @transform_2(%arg0: i32) -> (i32, i32, i32) {
    %c0_i32 = arith.constant 0 : i32
    %c0_i32_0 = arith.constant 0 : i32
    %c0_i32_1 = arith.constant 0 : i32
    %c0_i32_2 = arith.constant 0 : i32
    return %c0_i32, %c0_i32_0, %c0_i32_1 : i32, i32, i32
  }
  func.func @transform_3(%arg0: i32) -> (i32, i32, i32) {
    %c0_i32 = arith.constant 0 : i32
    %c0_i32_0 = arith.constant 0 : i32
    %c0_i32_1 = arith.constant 0 : i32
    %c0_i32_2 = arith.constant 0 : i32
    return %c0_i32, %c0_i32_0, %c0_i32_1 : i32, i32, i32
  }
  func.func @transform_4(%arg0: i32) -> (i32, i32, i32) {
    %c0_i32 = arith.constant 0 : i32
    %c0_i32_0 = arith.constant 0 : i32
    %c0_i32_1 = arith.constant 0 : i32
    %c0_i32_2 = arith.constant 0 : i32
    return %c0_i32, %c0_i32_0, %c0_i32_1 : i32, i32, i32
  }
  func.func @transform_5(%arg0: i32) -> (i32, i32, i32) {
    %c0_i32 = arith.constant 0 : i32
    %c0_i32_0 = arith.constant 0 : i32
    %c0_i32_1 = arith.constant 0 : i32
    %c0_i32_2 = arith.constant 0 : i32
    return %c0_i32, %c0_i32_0, %c0_i32_1 : i32, i32, i32
  }
  func.func @transform_6(%arg0: i32) -> (i32, i32, i32) {
    %c0_i32 = arith.constant 0 : i32
    %c0_i32_0 = arith.constant 0 : i32
    %c0_i32_1 = arith.constant 0 : i32
    return %arg0, %c0_i32, %c0_i32_0 : i32, i32, i32
  }
}

</mosaic_0001>

<bundles_post_ra>
// kernel: tpu_custom_call.1
= control target key start
LH: loop header
LB: loop body
LE: loop exit
PB: predicated region body
PF: predicated region fallthrough
CT: control target
= control target key end

     0   :  { %11 = vsyncpa [#allocation3], 0  ;;  %s6460_s0 = inlined_call_operand.vmem [shape: f32[2,32,256], index: 0, kind: input, shape index: {}]   ;;  %s6461_s1 = inlined_call_operand.vmem [shape: f32[2,1,256], index: 1, kind: input, shape index: {}]   ;;  %s6462_s2 = inlined_call_operand.vmem [shape: f32[9,1,256], index: 2, kind: input, shape index: {}]   ;;  %s6463_s3 = inlined_call_operand.vmem [shape: bf16[3,288,32], index: 3, kind: input, shape index: {}]   ;;  %s6464_s4 = inlined_call_operand.vmem [shape: f32[3,32,1], index: 4, kind: input, shape index: {}]   ;;  %s6465_s5 = inlined_call_operand.vmem [shape: f32[3,32,1], index: 5, kind: input, shape index: {}]   ;;  %s6466_s6 = inlined_call_operand.hbm [shape: f32[2,32,256], index: 6, kind: output, shape index: {}]  }
   0x1   :  { %13 = vsyncpa [#allocation3 + $0x1], 0  ;;  %s4222_s21 = smov 0   ;;  %s4224_s22 = smov 0  }
   0x2   :  { %s4226_s23 = smov 0   ;;  %s4228_s24 = smov 0  }
   0x3 LB: > { %s4243_s25 = sadd.s32 4294967295, %s4173_s24   ;;  %s3479_s26 = sadd.s32 4294967294, %s4173_s24   ;;  %s4173_s24 = sphi %s4228_s24, %s6593_s24   ;;  %s4169_s23 = sphi %s4226_s23, %s6592_s23   ;;  %s4165_s22 = sphi %s4224_s22, %s6591_s22   ;;  %s4161_s21 = sphi %s4222_s21, %s6590_s21  }
   0x4   : > { %s4247_s27 = sadd.s32 1, %s4173_s24   ;;  %s162_s28 = sadd.s32 1, %s4169_s23 }
   0x5   : > { %s159_s29 = ssub.s32 %s4173_s24, %s4247_s27  ;;  %p172_p0 = scmp.ne.s32.totalorder %s4169_s23, %s4165_s22 }
   0x6   : > { %p160_p1 = scmp.eq.s32.totalorder %s159_s29, 0  ;;  %p173_p2 = scmp.eq.s32.totalorder %s4243_s25, 1 }
   0x7   : > { %p178_p3 = scmp.ne.s32.totalorder %s4165_s22, %s4161_s21  ;;  %p179_p4 = scmp.eq.s32.totalorder %s3479_s26, 1 }
   0x8   : > { %s4258_s30 = scalar_select %p160_p1, %s4169_s23, %s162_s28  }
   0x9   : > { %p4260_p5 = por %p173_p2, %p172_p0  ;;  %p4264_p6 = por %p179_p4, %p178_p3 }
   0xa   : > { %p3482_p7 = scmp.ge.s32.totalorder %s4173_s24, 1  ;;  %p224_p8 = scmp.lt.s32.totalorder %s4173_s24, 3 }
   0xc   : > { %p225_p9 = pnand %p3482_p7, %p224_p8 }
   0xe   : > { %228 = sbr.rel (%p225_p9) target bundleno = 1868 (0x74c), region = 44 }
  0x13   : > { %p258_p10 = scmp.lt.s32.totalorder %s4243_s25, 1  ;;  %v3912_v23 = vld [vmem:[%s6463_s3] sm:$0xff]  ;;  %v3921_v24 = vld [vmem:[%s6463_s3 + $0x48] sm:$0xff]  ;;  %vm420_vm0 = vcmask 261120   ;;  %v3922_v26 = vld [vmem:[%s6463_s3 + $0x50] sm:$0xff]  ;;  %s4176_s12 = smov 127  }
  0x14   : > { %v3913_v25 = vld [vmem:[%s6463_s3 + $0x8] sm:$0xff]  ;;  %v3914_v27 = vld [vmem:[%s6463_s3 + $0x10] sm:$0xff]  ;;  %v3923_v28 = vld [vmem:[%s6463_s3 + $0x58] sm:$0xff]  ;;  %s4177_s13 = smov 16   ;;  %s4178_s15 = smov 113  }
  0x15   : > { %s259_s9 = scalar_select %p258_p10, %s4243_s25, 1  ;;  %v3915_v29 = vld [vmem:[%s6463_s3 + $0x18] sm:$0xff]  ;;  %v3924_v30 = vld [vmem:[%s6463_s3 + $0x60] sm:$0xff]  ;;  %v3925_v32 = vld [vmem:[%s6463_s3 + $0x68] sm:$0xff] }
  0x16   : > { %v3916_v31 = vld [vmem:[%s6463_s3 + $0x20] sm:$0xff]  ;;  %v3917_v33 = vld [vmem:[%s6463_s3 + $0x28] sm:$0xff]  ;;  %v3926_v34 = vld [vmem:[%s6463_s3 + $0x70] sm:$0xff]  ;;  %s4179_s16 = smov 15   ;;  %s4181_s18 = smov 1  }
  0x17   : > { %s3911_s10 = sshll.u32 %s259_s9, 6  ;;  %s3486_s11 = sshll.u32 %s259_s9, 1  ;;  %v3918_v35 = vld [vmem:[%s6463_s3 + $0x30] sm:$0xff]  ;;  %v3927_v36 = vld [vmem:[%s6463_s3 + $0x78] sm:$0xff]  ;;  %v3928_v38 = vld [vmem:[%s6463_s3 + $0x80] sm:$0xff] }
  0x18   : > { %s4275_s14 = scalar_lea.vmem %s6460_s0, %s3911_s10  ;;  %s266_s17 = scalar_lea.vmem %s6461_s1, %s3486_s11  ;;  %v3919_v37 = vld [vmem:[%s6463_s3 + $0x38] sm:$0xff]  ;;  %v3920_v39 = vld [vmem:[%s6463_s3 + $0x40] sm:$0xff]  ;;  %v3929_v40 = vld [vmem:[%s6463_s3 + $0x88] sm:$0xff] }
  0x19   : > { %v268_v0 = vld [vmem:[%s266_s17] sm:$0x3]  ;;  %v275_v2 = vld [vmem:[%s4275_s14 + $0x30] sm:$0xff]  ;;  %v274_v5 = vld [vmem:[%s4275_s14 + $0x28] sm:$0xff]  ;;  %s4175_s11 = smov 17   ;;  %s4180_s17 = smov 112  }
  0x1a   : > { %v273_v1 = vld [vmem:[%s4275_s14 + $0x20] sm:$0xff]  ;;  %v4282_v3 = vperm.slane %v268_v0, 0  ;;  %v4284_v4 = vperm.slane %v268_v0, 1  ;;  %v276_v6 = vld [vmem:[%s4275_s14 + $0x38] sm:$0xff]  ;;  %v271_v8 = vld [vmem:[%s4275_s14 + $0x10] sm:$0xff]  ;;  %s4182_s19 = smov 111  }
  0x1b   : > { %v269_v7 = vld [vmem:[%s4275_s14] sm:$0xff]  ;;  %v270_v9 = vld [vmem:[%s4275_s14 + $0x8] sm:$0xff]  ;;  %v272_v10 = vld [vmem:[%s4275_s14 + $0x18] sm:$0xff]  ;;  %s3966_s28 = sshll.u32 %s4243_s25, 6 }
  0x1c   : > { %6521 = vst [vmem:[#allocation5_spill] sm:$0xff] %v4282_v3  ;;  %v286_v11 = vmul.f32 %v4282_v3, %v273_v1  ;;  %v288_v12 = vmul.f32 %v4282_v3, %v275_v2  ;;  %v287_v13 = vmul.f32 %v4284_v4, %v274_v5  ;;  %v289_v14 = vmul.f32 %v4284_v4, %v276_v6  ;;  %s3401_s9 = scalar_lea.hbm %s6466_s6, %s3966_s28 }
  0x1d   : > { %6522 = vst [vmem:[#allocation6_spill] sm:$0xff] %v4284_v4  ;;  %v282_v15 = vmul.f32 %v4282_v3, %v269_v7  ;;  %v284_v16 = vmul.f32 %v4282_v3, %v271_v8  ;;  %v283_v17 = vmul.f32 %v4284_v4, %v270_v9  ;;  %v285_v18 = vmul.f32 %v4284_v4, %v272_v10 }
  0x1e   : > { %v292_v19 = vpack.c.bf16 %v288_v12, %v286_v11  ;;  %v293_v20 = vpack.c.bf16 %v289_v14, %v287_v13 }
  0x1f   : > { %v290_v21 = vpack.c.bf16 %v284_v16, %v282_v15  ;;  %v291_v22 = vpack.c.bf16 %v285_v18, %v283_v17 }
  0x20   : > { %481 = vmatpush.bf16.msra.mxu0 %v292_v19  ;;  %3967 = vmatpush.bf16.msra.mxu2 %v292_v19 }
  0x21   : > { %580 = vmatpush.bf16.msra.mxu1 %v293_v20  ;;  %3969 = vmatpush.bf16.msra.mxu3 %v293_v20 }
  0x24   : > { %482 = vmatpush.bf16.msra.mxu0 %v290_v21  ;;  %3968 = vmatpush.bf16.msra.mxu2 %v290_v21 }
  0x25   : > { %581 = vmatpush.bf16.msra.mxu1 %v291_v22  ;;  %3970 = vmatpush.bf16.msra.mxu3 %v291_v22 }
  0x27   : > { %3559 = vmatmul.msk.bf16.vlgmr.msra.gmra.mxu0 %vm420_vm0, %v3912_v23  ;;  %3568 = vmatmul.msk.bf16.vlgmr.msra.gmra.mxu2 %vm420_vm0, %v3921_v24 }
  0x28   : > { %3577 = vmatmul.msk.bf16.vlgmr.msra.gmra.mxu1 %vm420_vm0, %v3912_v23  ;;  %3586 = vmatmul.msk.bf16.vlgmr.msra.gmra.mxu3 %vm420_vm0, %v3921_v24 }
  0x37   : > { %3560 = vmatmul.msk.bf16.gmra.mxu0 %vm420_vm0, %v3913_v25  ;;  %3569 = vmatmul.msk.bf16.gmra.mxu2 %vm420_vm0, %v3922_v26 }
  0x38   : > { %3578 = vmatmul.msk.bf16.gmra.mxu1 %vm420_vm0, %v3913_v25  ;;  %3587 = vmatmul.msk.bf16.gmra.mxu3 %vm420_vm0, %v3922_v26 }
  0x47   : > { %3561 = vmatmul.msk.bf16.gmra.mxu0 %vm420_vm0, %v3914_v27  ;;  %3570 = vmatmul.msk.bf16.gmra.mxu2 %vm420_vm0, %v3923_v28 }
  0x48   : > { %3579 = vmatmul.msk.bf16.gmra.mxu1 %vm420_vm0, %v3914_v27  ;;  %3588 = vmatmul.msk.bf16.gmra.mxu3 %vm420_vm0, %v3923_v28 }
  0x57   : > { %3562 = vmatmul.msk.bf16.gmra.mxu0 %vm420_vm0, %v3915_v29  ;;  %3571 = vmatmul.msk.bf16.gmra.mxu2 %vm420_vm0, %v3924_v30 }
  0x58   : > { %3580 = vmatmul.msk.bf16.gmra.mxu1 %vm420_vm0, %v3915_v29  ;;  %3589 = vmatmul.msk.bf16.gmra.mxu3 %vm420_vm0, %v3924_v30 }
  0x67   : > { %3563 = vmatmul.msk.bf16.gmra.mxu0 %vm420_vm0, %v3916_v31  ;;  %3572 = vmatmul.msk.bf16.gmra.mxu2 %vm420_vm0, %v3925_v32 }
  0x68   : > { %3581 = vmatmul.msk.bf16.gmra.mxu1 %vm420_vm0, %v3916_v31  ;;  %3590 = vmatmul.msk.bf16.gmra.mxu3 %vm420_vm0, %v3925_v32 }
  0x77   : > { %3564 = vmatmul.msk.bf16.gmra.mxu0 %vm420_vm0, %v3917_v33  ;;  %3573 = vmatmul.msk.bf16.gmra.mxu2 %vm420_vm0, %v3926_v34 }
  0x78   : > { %3582 = vmatmul.msk.bf16.gmra.mxu1 %vm420_vm0, %v3917_v33  ;;  %3591 = vmatmul.msk.bf16.gmra.mxu3 %vm420_vm0, %v3926_v34 }
  0x87   : > { %3565 = vmatmul.msk.bf16.gmra.mxu0 %vm420_vm0, %v3918_v35  ;;  %3574 = vmatmul.msk.bf16.gmra.mxu2 %vm420_vm0, %v3927_v36 }
  0x88   : > { %3583 = vmatmul.msk.bf16.gmra.mxu1 %vm420_vm0, %v3918_v35  ;;  %3592 = vmatmul.msk.bf16.gmra.mxu3 %vm420_vm0, %v3927_v36 }
  0x97   : > { %3566 = vmatmul.msk.bf16.gmra.mxu0 %vm420_vm0, %v3919_v37  ;;  %3575 = vmatmul.msk.bf16.gmra.mxu2 %vm420_vm0, %v3928_v38 }
  0x98   : > { %3584 = vmatmul.msk.bf16.gmra.mxu1 %vm420_vm0, %v3919_v37  ;;  %3593 = vmatmul.msk.bf16.gmra.mxu3 %vm420_vm0, %v3928_v38 }
  0xa4   : > { %v484_v41 = vpop.f32.mrf.mxu0 }
  0xa5   : > { %v583_v42 = vpop.f32.mrf.mxu1  ;;  %673 = vrot.lane.b32.xlu0 %v484_v41, %s4175_s11 }
  0xa6   : > { %681 = vrot.lane.b32.xlu1 %v583_v42, %s4175_s11 }
  0xa7   : > { %3567 = vmatmul.msk.bf16.gmra.mxu0 %vm420_vm0, %v3920_v39  ;;  %3576 = vmatmul.msk.bf16.gmra.mxu2 %vm420_vm0, %v3929_v40 }
  0xa8   : > { %3585 = vmatmul.msk.bf16.gmra.mxu1 %vm420_vm0, %v3920_v39  ;;  %3594 = vmatmul.msk.bf16.gmra.mxu3 %vm420_vm0, %v3929_v40 }
  0xaa   : > { %v4392_v43 = vpop.f32.mrf.mxu2 }
  0xab   : > { %v4394_v44 = vpop.f32.mrf.mxu3 }
  0xac   : > { %v486_v45 = vpop.f32.mrf.mxu0 }
  0xad   : > { %v585_v46 = vpop.f32.mrf.mxu1  ;;  %675 = vrot.lane.b32.xlu0 %v486_v45, %s4175_s11 }
  0xae   : > { %683 = vrot.lane.b32.xlu1 %v585_v46, %s4175_s11 }
  0xb2   : > { %v4398_v47 = vpop.f32.mrf.mxu2 }
  0xb3   : > { %v4400_v48 = vpop.f32.mrf.mxu3 }
  0xb4   : > { %v489_v49 = vpop.f32.mrf.mxu0 }
  0xb5   : > { %677 = vrot.lane.b32.xlu2 %v489_v49, %s4175_s11  ;;  %v588_v50 = vpop.f32.mrf.mxu1 }
  0xba   : > { %v534_v51 = vpop.f32.mrf.mxu2 }
  0xbb   : > { %v633_v52 = vpop.f32.mrf.mxu3  ;;  %866 = vrot.lane.b32.xlu0 %v534_v51, %s4176_s12 }
  0xbc   : > { %v491_v53 = vpop.f32.mrf.mxu0 }
  0xbd   : > { %685 = vrot.lane.b32.xlu2 %v588_v50, %s4175_s11  ;;  %679 = vrot.lane.b32.xlu1 %v491_v53, %s4175_s11  ;;  %v590_v54 = vpop.f32.mrf.mxu1 }
  0xc2   : > { %v536_v55 = vpop.f32.mrf.mxu2 }
  0xc3   : > { %v635_v56 = vpop.f32.mrf.mxu3 }
  0xc4   : > { %876 = vrot.lane.b32.xlu0 %v635_v56, %s4176_s12  ;;  %v494_v57 = vpop.f32.mrf.mxu0 }
  0xc5   : > { %874 = vrot.lane.b32.xlu2 %v633_v52, %s4176_s12  ;;  %868 = vrot.lane.b32.xlu1 %v536_v55, %s4176_s12  ;;  %v593_v58 = vpop.f32.mrf.mxu1 }
  0xca   : > { %v539_v59 = vpop.f32.mrf.mxu2 }
  0xcb   : > { %v638_v60 = vpop.f32.mrf.mxu3 }
  0xcc   : > { %722 = vrot.lane.b32.xlu0 %v494_v57, %s4177_s13  ;;  %v496_v61 = vpop.f32.mrf.mxu0 }
  0xcd   : > { %687 = vrot.lane.b32.xlu2 %v590_v54, %s4175_s11  ;;  %878 = vrot.lane.b32.xlu1 %v638_v60, %s4176_s12  ;;  %v595_v0 = vpop.f32.mrf.mxu1 }
  0xd2   : > { %v541_v62 = vpop.f32.mrf.mxu2 }
  0xd3   : > { %v640_v63 = vpop.f32.mrf.mxu3 }
  0xd4   : > { %870 = vrot.lane.b32.xlu0 %v539_v59, %s4176_s12  ;;  %v499_v1 = vpop.f32.mrf.mxu0 }
  0xd5   : > { %730 = vrot.lane.b32.xlu2 %v593_v58, %s4177_s13  ;;  %724 = vrot.lane.b32.xlu1 %v496_v61, %s4177_s13  ;;  %v598_v6 = vpop.f32.mrf.mxu1 }
  0xda   : > { %v544_v2 = vpop.f32.mrf.mxu2 }
  0xdb   : > { %v643_v5 = vpop.f32.mrf.mxu3 }
  0xdc   : > { %732 = vrot.lane.b32.xlu0 %v595_v0, %s4177_s13  ;;  %v501_v7 = vpop.f32.mrf.mxu0 }
  0xdd   : > { %914 = vrot.lane.b32.xlu2 %v544_v2, %s4178_s15  ;;  %880 = vrot.lane.b32.xlu1 %v640_v63, %s4176_s12  ;;  %v600_v10 = vpop.f32.mrf.mxu1 }
  0xe2   : > { %v546_v9 = vpop.f32.mrf.mxu2 }
  0xe3   : > { %v645_v8 = vpop.f32.mrf.mxu3 }
  0xe4   : > { %872 = vrot.lane.b32.xlu0 %v541_v62, %s4176_s12  ;;  %v504_v11 = vpop.f32.mrf.mxu0 }
  0xe5   : > { %924 = vrot.lane.b32.xlu2 %v645_v8, %s4178_s15  ;;  %734 = vrot.lane.b32.xlu1 %v598_v6, %s4177_s13  ;;  %v603_v14 = vpop.f32.mrf.mxu1 }
  0xea   : > { %v549_v13 = vpop.f32.mrf.mxu2 }
  0xeb   : > { %v648_v12 = vpop.f32.mrf.mxu3 }
  0xec   : > { %726 = vrot.lane.b32.xlu0 %v499_v1, %s4177_s13  ;;  %v506_v15 = vpop.f32.mrf.mxu0 }
  0xed   : > { %922 = vrot.lane.b32.xlu1 %v643_v5, %s4178_s15  ;;  %770 = vrot.lane.b32.xlu2 %v504_v11, %s4179_s16  ;;  %v605_v18 = vpop.f32.mrf.mxu1 }
  0xf2   : > { %v551_v17 = vpop.f32.mrf.mxu2 }
  0xf3   : > { %v650_v16 = vpop.f32.mrf.mxu3 }
  0xf4   : > { %728 = vrot.lane.b32.xlu0 %v501_v7, %s4177_s13  ;;  %v509_v19 = vpop.f32.mrf.mxu0 }
  0xf5   : > { %736 = vrot.lane.b32.xlu1 %v600_v10, %s4177_s13  ;;  %918 = vrot.lane.b32.xlu2 %v549_v13, %s4178_s15  ;;  %v608_v22 = vpop.f32.mrf.mxu1 }
  0xfa   : > { %v554_v21 = vpop.f32.mrf.mxu2 }
  0xfb   : > { %v653_v20 = vpop.f32.mrf.mxu3 }
  0xfc   : > { %916 = vrot.lane.b32.xlu0 %v546_v9, %s4178_s15  ;;  %v511_v23 = vpop.f32.mrf.mxu0 }
  0xfd   : > { %778 = vrot.lane.b32.xlu1 %v603_v14, %s4179_s16  ;;  %780 = vrot.lane.b32.xlu2 %v605_v18, %s4179_s16  ;;  %v610_v26 = vpop.f32.mrf.mxu1 }
 0x102   : > { %v556_v28 = vpop.f32.mrf.mxu2 }
 0x103   : > { %v655_v24 = vpop.f32.mrf.mxu3 }
 0x104   : > { %926 = vrot.lane.b32.xlu0 %v648_v12, %s4178_s15  ;;  %v514_v27 = vpop.f32.mrf.mxu0 }
 0x105   : > { %962 = vrot.lane.b32.xlu1 %v554_v21, %s4180_s17  ;;  %920 = vrot.lane.b32.xlu2 %v551_v17, %s4178_s15  ;;  %v613_v30 = vpop.f32.mrf.mxu1 }
 0x10a   : > { %v559_v32 = vpop.f32.mrf.mxu2 }
 0x10b   : > { %v658_v35 = vpop.f32.mrf.mxu3 }
 0x10c   : > { %772 = vrot.lane.b32.xlu0 %v506_v15, %s4179_s16  ;;  %v516_v40 = vpop.f32.mrf.mxu0  ;;  %v1161_v15 = vld [vmem:[%s6464_s4 + $0x10] sm:$0xff] }
 0x10d   : > { %972 = vrot.lane.b32.xlu1 %v655_v24, %s4180_s17  ;;  %774 = vrot.lane.b32.xlu2 %v509_v19, %s4179_s16  ;;  %v615_v36 = vpop.f32.mrf.mxu1  ;;  %v1160_v24 = vld [vmem:[%s6464_s4 + $0x8] sm:$0xff] }
 0x10f   : > { %v4436_v25 = vpop.permute.xlu2 %677 }
 0x112   : > { %v561_v42 = vpop.f32.mrf.mxu2 }
 0x113   : > { %v660_v41 = vpop.f32.mrf.mxu3 }
 0x114   : > { %928 = vrot.lane.b32.xlu0 %v650_v16, %s4178_s15  ;;  %v519_v50 = vpop.f32.mrf.mxu0  ;;  %v4183_v16 = vmov 0  }
 0x115   : > { %776 = vrot.lane.b32.xlu2 %v511_v23, %s4179_s16  ;;  %818 = vrot.lane.b32.xlu1 %v514_v27, %s4181_s18  ;;  %v618_v56 = vpop.f32.mrf.mxu1  ;;  %v1193_v27 = vld [vmem:[%s6465_s5 + $0x10] sm:$0xff] }
 0x116   : > { %4022 = vset.pattern.permute.xlu1 %v4183_v16  ;;  %4024 = vset.pattern.permute.xlu0 %v4183_v16 }
 0x117   : > { %v4441_v29 = vpop.permute.xlu2 %685  ;;  %v4443_v31 = vpop.permute.xlu0 %673  ;;  %4023 = vset.pattern.permute.xlu2 %v4183_v16 }
 0x118   : > { %v4446_v33 = vpop.permute.xlu1 %681 }
 0x11a   : > { %v564_v52 = vpop.f32.mrf.mxu2 }
 0x11b   : > { %v663_v51 = vpop.f32.mrf.mxu3 }
 0x11c   : > { %782 = vrot.lane.b32.xlu0 %v608_v22, %s4179_s16  ;;  %v521_v57 = vpop.f32.mrf.mxu0 }
 0x11d   : > { %964 = vrot.lane.b32.xlu2 %v556_v28, %s4180_s17  ;;  %966 = vrot.lane.b32.xlu1 %v559_v32, %s4180_s17  ;;  %v620_v6 = vpop.f32.mrf.mxu1 }
 0x11f   : > { %v4450_v34 = vpop.permute.xlu2 %874  ;;  %v4453_v37 = vpop.permute.xlu0 %675 }
 0x120   : > { %v4457_v38 = vpop.permute.xlu1 %683 }
 0x122   : > { %v566_v62 = vpop.f32.mrf.mxu2 }
 0x123   : > { %v665_v58 = vpop.f32.mrf.mxu3 }
 0x124   : > { %970 = vrot.lane.b32.xlu0 %v653_v20, %s4180_s17  ;;  %v1194_v20 = vld [vmem:[%s6465_s5 + $0x18] sm:$0xff] }
 0x125   : > { %974 = vrot.lane.b32.xlu2 %v658_v35, %s4180_s17  ;;  %828 = vrot.lane.b32.xlu1 %v615_v36, %s4181_s18  ;;  %v1192_v35 = vld [vmem:[%s6465_s5 + $0x8] sm:$0xff]  ;;  %v1162_v36 = vld [vmem:[%s6464_s4 + $0x18] sm:$0xff] }
 0x127   : > { %v4459_v39 = vpop.permute.xlu2 %687 }
 0x12a   : > { %v569_v5 = vpop.f32.mrf.mxu2 }
 0x12b   : > { %v668_v2 = vpop.f32.mrf.mxu3 }
 0x12c   : > { %784 = vrot.lane.b32.xlu0 %v610_v26, %s4179_s16 }
 0x12d   : > { %v4462_v45 = vpop.permute.xlu0 %866  ;;  %968 = vrot.lane.b32.xlu1 %v561_v42, %s4180_s17  ;;  %820 = vrot.lane.b32.xlu2 %v516_v40, %s4181_s18 }
 0x12f   : > { %v4466_v46 = vpop.permute.xlu2 %730  ;;  %v4468_v49 = vpop.permute.xlu1 %679 }
 0x132   : > { %v571_v11 = vpop.f32.mrf.mxu2 }
 0x133   : > { %v670_v10 = vpop.f32.mrf.mxu3 }
 0x134   : > { %826 = vrot.lane.b32.xlu0 %v613_v30, %s4181_s18 }
 0x135   : > { %976 = vrot.lane.b32.xlu2 %v660_v41, %s4180_s17  ;;  %822 = vrot.lane.b32.xlu1 %v519_v50, %s4181_s18  ;;  %v1159_v50 = vld [vmem:[%s6464_s4] sm:$0xff] }
 0x136   : > { %v4473_v53 = vpop.permute.xlu0 %876 }
 0x137   : > { %v4475_v54 = vpop.permute.xlu2 %914  ;;  %v4477_v55 = vpop.permute.xlu1 %868 }
 0x13c   : > { %1010 = vrot.lane.b32.xlu0 %v564_v52, %s4182_s19 }
 0x13d   : > { %830 = vrot.lane.b32.xlu2 %v618_v56, %s4181_s18  ;;  %824 = vrot.lane.b32.xlu1 %v521_v57, %s4181_s18  ;;  %v689_v56 = vlaneseq }
 0x13e   : > { %v4482_v59 = vpop.permute.xlu0 %722 }
 0x13f   : > { %v4484_v60 = vpop.permute.xlu2 %924  ;;  %v4486_v61 = vpop.permute.xlu1 %878  ;;  %v4565_v57 = vand.u32 127, %v689_v56 }
 0x141   : > { %vm691_vm1 = vcmp.lt.s32.totalorder %v4565_v57, 17  ;;  %vm882_vm2 = vcmp.lt.s32.totalorder %v4565_v57, 127  ;;  %vm738_vm3 = vcmp.lt.s32.totalorder %v4565_v57, 16  ;;  %vm930_vm4 = vcmp.lt.s32.totalorder %v4565_v57, 113 }
 0x142   : > { %v698_v16 = vsel %vm691_vm1, %v4441_v29, %v4436_v25  ;;  %v696_v56 = vsel %vm691_vm1, %v4446_v33, %v4443_v31  ;;  %v699_v4 = vsel %vm691_vm1, %v4459_v39, %v4468_v49  ;;  %vm786_vm5 = vcmp.lt.s32.totalorder %v4565_v57, 15 }
 0x143   : > { %vm978_vm6 = vcmp.lt.s32.totalorder %v4565_v57, 112  ;;  %vm834_vm7 = vcmp.lt.s32.totalorder %v4565_v57, 1  ;;  %vm1026_vm8 = vcmp.lt.s32.totalorder %v4565_v57, 111 }
 0x144   : > { %1020 = vrot.lane.b32.xlu0 %v665_v58, %s4182_s19 }
 0x145   : > { %1018 = vrot.lane.b32.xlu2 %v663_v51, %s4182_s19  ;;  %1012 = vrot.lane.b32.xlu1 %v566_v62, %s4182_s19  ;;  %v1191_v62 = vld [vmem:[%s6465_s5] sm:$0xff] }
 0x146   : > { %v4491_v63 = vpop.permute.xlu0 %870 }
 0x147   : > { %v4493_v0 = vpop.permute.xlu1 %724  ;;  %v4495_v1 = vpop.permute.xlu2 %770 }
 0x14c   : > { %1014 = vrot.lane.b32.xlu0 %v569_v5, %s4182_s19  ;;  %v700_v5 = vld [vmem:[%s6462_s2] sm:$0x3] }
 0x14d   : > { %832 = vrot.lane.b32.xlu2 %v620_v6, %s4181_s18  ;;  %1022 = vrot.lane.b32.xlu1 %v668_v2, %s4182_s19  ;;  %v524_v6 = vpop.f32.mrf.mxu0 }
 0x14e   : > { %v4500_v7 = vpop.permute.xlu0 %732 }
 0x14f   : > { %v4502_v8 = vpop.permute.xlu1 %880  ;;  %v4504_v9 = vpop.permute.xlu2 %918 }
 0x154   : > { %1024 = vrot.lane.b32.xlu0 %v670_v10, %s4182_s19  ;;  %v623_v10 = vpop.f32.mrf.mxu1 }
 0x155   : > { %1016 = vrot.lane.b32.xlu2 %v571_v11, %s4182_s19  ;;  %1175 = vperm.xlu1 %4022, %v1161_v15   ;;  %v4580_v15 = vperm.slane %v700_v5, 0 }
 0x156   : > { %v4508_v12 = vpop.permute.xlu0 %872 }
 0x157   : > { %v4510_v13 = vpop.permute.xlu1 %734  ;;  %v4512_v14 = vpop.permute.xlu2 %780  ;;  %6529 = vst [vmem:[#allocation13_spill] sm:$0xff] %v4580_v15 }
 0x15c   : > { %1207 = vperm.xlu0 %4024, %v1193_v27   ;;  %v3598_v27 = vld [vmem:[%s6462_s2 + $0xa] sm:$0x3] }
 0x15d   : > { %1212 = vperm.xlu1 %4022, %v1194_v20   ;;  %1180 = vperm.xlu2 %4023, %v1162_v36   ;;  %v694_v36 = vsel %vm691_vm1, %v4436_v25, %v4441_v29  ;;  %v697_v25 = vsel %vm691_vm1, %v4457_v38, %v4453_v37  ;;  %v4617_v29 = vperm.slane %v3598_v27, 0 }
 0x15e   : > { %v4517_v17 = vpop.permute.xlu0 %726 }
 0x15f   : > { %v4519_v18 = vpop.permute.xlu1 %922  ;;  %v4521_v19 = vpop.permute.xlu2 %920  ;;  %6531 = vst [vmem:[#allocation15_spill] sm:$0xff] %v4617_v29 }
 0x160   : > { %6523 = vst [vmem:[#allocation7_spill] sm:$0xff] %v4521_v19 }
 0x164   : > { %1202 = vperm.xlu0 %4024, %v1192_v35  }
 0x165   : > { %1170 = vperm.xlu1 %4022, %v1160_v24   ;;  %1165 = vperm.xlu2 %4023, %v1159_v50   ;;  %v4588_v24 = vperm.slane %v700_v5, 1  ;;  %v710_v50 = vmul.f32 %v4580_v15, %v698_v16  ;;  %v693_v5 = vsel %vm691_vm1, %v4453_v37, %v4457_v38  ;;  %v3595_v16 = vld [vmem:[%s6462_s2 + $0x2] sm:$0x3]  ;;  %v706_v38 = vmul.f32 %v4580_v15, %v696_v56 }
 0x166   : > { %v4526_v21 = vpop.permute.xlu0 %728  ;;  %v4643_v19 = vperm.slane %v3595_v16, 1  ;;  %v712_v56 = vmul.f32 %v4580_v15, %v699_v4  ;;  %v887_v4 = vsel %vm882_vm2, %v4450_v34, %v4462_v45 }
 0x167   : > { %v4528_v22 = vpop.permute.xlu1 %736  ;;  %v4530_v23 = vpop.permute.xlu2 %774  ;;  %v4631_v37 = vadd.f32 %v710_v50, %v4392_v43  ;;  %v883_v50 = vsel %vm882_vm2, %v4462_v45, %v4450_v34  ;;  %v888_v34 = vsel %vm882_vm2, %v4473_v53, %v4477_v55 }
 0x168   : > { %6524 = vst [vmem:[#allocation8_spill] sm:$0xff] %v4530_v23 }
 0x169   : > { %6533 = vst [vmem:[#allocation17_spill] sm:$0xff] %v4643_v19 }
 0x16d   : > { %1197 = vperm.xlu2 %4023, %v1191_v62   ;;  %v692_v62 = vsel %vm691_vm1, %v4443_v31, %v4446_v33  ;;  %v711_v31 = vmul.f32 %v4588_v24, %v694_v36  ;;  %v4623_v33 = vperm.slane %v3598_v27, 1  ;;  %v695_v27 = vsel %vm691_vm1, %v4468_v49, %v4459_v39 }
 0x16e   : > { %v4535_v26 = vpop.permute.xlu0 %916  ;;  %v707_v3 = vmul.f32 %v4588_v24, %v692_v62  ;;  %v708_v36 = vmul.f32 %v4580_v15, %v697_v25  ;;  %v739_v39 = vsel %vm738_vm3, %v4482_v59, %v4466_v46  ;;  %v743_v49 = vsel %vm738_vm3, %v4466_v46, %v4482_v59 }
 0x16f   : > { %v4540_v28 = vpop.permute.xlu1 %778  ;;  %v4542_v30 = vpop.permute.xlu2 %776  ;;  %6532 = vst [vmem:[#allocation16_spill] sm:$0xff] %v4623_v33  ;;  %v714_v25 = vadd.f32 %v706_v38, %v524_v6  ;;  %v884_v46 = vsel %vm882_vm2, %v4477_v55, %v4473_v53  ;;  %v755_v59 = vmul.f32 %v4643_v19, %v739_v39  ;;  %v885_v6 = vsel %vm882_vm2, %v4491_v63, %v4486_v61 }
 0x170   : > { %6525 = vst [vmem:[#allocation9_spill] sm:$0xff] %v4542_v30  ;;  %v4641_v30 = vperm.slane %v3595_v16, 0  ;;  %v713_v16 = vmul.f32 %v4588_v24, %v695_v27  ;;  %v744_v53 = vsel %vm738_vm3, %v4500_v7, %v4493_v0  ;;  %v3596_v27 = vld [vmem:[%s6462_s2 + $0x4] sm:$0x3] }
 0x172   : > { %v754_v45 = vmul.f32 %v4641_v30, %v743_v49  ;;  %v721_v55 = vadd.f32 %v713_v16, %v4400_v48  ;;  %v746_v49 = vsel %vm738_vm3, %v4528_v22, %v4526_v21 }
 0x176   : > { %v4544_v32 = vpop.permute.xlu0 %926 }
 0x177   : > { %v4552_v40 = vpop.permute.xlu1 %962  ;;  %v4554_v41 = vpop.permute.xlu2 %964 }
 0x178   : > { %6526 = vst [vmem:[#allocation10_spill] sm:$0xff] %v4552_v40  ;;  %v526_v40 = vpop.f32.mrf.mxu0 }
 0x17e   : > { %v4556_v42 = vpop.permute.xlu0 %772 }
 0x17f   : > { %v4561_v51 = vpop.permute.xlu1 %972  ;;  %v4563_v52 = vpop.permute.xlu2 %974 }
 0x180   : > { %6527 = vst [vmem:[#allocation11_spill] sm:$0xff] %v4563_v52  ;;  %v709_v52 = vmul.f32 %v4588_v24, %v693_v5  ;;  %v4663_v5 = vadd.f32 %v711_v31, %v4394_v44  ;;  %v4677_v44 = vmul.f32 %v4617_v29, %v883_v50  ;;  %v4713_v31 = vmul.f32 %v4623_v33, %v888_v34 }
 0x181   : > { %v886_v34 = vsel %vm882_vm2, %v4508_v12, %v4502_v8 }
 0x186   : > { %v4567_v58 = vpop.permute.xlu0 %928 }
 0x187   : > { %6528 = vst [vmem:[#allocation12_spill] sm:$0xff] %v4567_v58  ;;  %v4572_v2 = vpop.permute.xlu1 %818  ;;  %v4578_v11 = vpop.permute.xlu2 %820  ;;  %v716_v58 = vadd.f32 %v708_v36, %v526_v40  ;;  %v4689_v40 = vmul.f32 %v4623_v33, %v887_v4  ;;  %v762_v36 = vadd.f32 %v754_v45, %v714_v25  ;;  %v4746_v25 = vperm.slane %v3596_v27, 0 }
 0x188   : > { %v4748_v4 = vperm.slane %v3596_v27, 1  ;;  %v742_v45 = vsel %vm738_vm3, %v4526_v21, %v4528_v22  ;;  %v787_v21 = vsel %vm786_vm5, %v4495_v1, %v4540_v28 }
 0x18e   : > { %v4586_v20 = vpop.permute.xlu0 %782 }
 0x18f   : > { %v4593_v35 = vpop.permute.xlu1 %966  ;;  %v4645_v43 = vpop.permute.xlu2 %976 }
 0x190   : > { %6530 = vst [vmem:[#allocation14_spill] sm:$0xff] %v4593_v35  ;;  %v625_v35 = vpop.f32.mrf.mxu1 }
 0x191   : > { %6534 = vst [vmem:[#allocation18_spill] sm:$0xff] %v4645_v43  ;;  %v715_v43 = vadd.f32 %v707_v3, %v623_v10  ;;  %v717_v23 = vadd.f32 %v709_v52, %v625_v35  ;;  %v3599_v3 = vld [vmem:[%s6462_s2 + $0xc] sm:$0x3]  ;;  %v720_v52 = vadd.f32 %v712_v56, %v4398_v47  ;;  %v4702_v10 = vmul.f32 %v4617_v29, %v884_v46 }
 0x192   : > { %v889_v47 = vsel %vm882_vm2, %v4486_v61, %v4491_v63  ;;  %v740_v35 = vsel %vm738_vm3, %v4493_v0, %v4500_v7  ;;  %v4716_v38 = vperm.slane %v3599_v3, 0  ;;  %v4718_v48 = vperm.slane %v3599_v3, 1 }
 0x193   : > { %v763_v61 = vadd.f32 %v755_v59, %v715_v43  ;;  %v4724_v63 = vmul.f32 %v4617_v29, %v885_v6  ;;  %v756_v0 = vmul.f32 %v4641_v30, %v744_v53  ;;  %v4728_v7 = vmul.f32 %v4623_v33, %v889_v47 }
 0x194   : > { %6535 = vst [vmem:[#allocation19_spill] sm:$0xff] %v4716_v38  ;;  %v757_v50 = vmul.f32 %v4643_v19, %v740_v35  ;;  %v745_v56 = vsel %vm738_vm3, %v4510_v13, %v4517_v17  ;;  %v741_v43 = vsel %vm738_vm3, %v4517_v17, %v4510_v13  ;;  %v890_v13 = vsel %vm882_vm2, %v4502_v8, %v4508_v12 }
 0x195   : > { %6536 = vst [vmem:[#allocation20_spill] sm:$0xff] %v4718_v48  ;;  %v931_v17 = vsel %vm930_vm4, %v4475_v54, %v4519_v18  ;;  %v764_v59 = vadd.f32 %v756_v0, %v716_v58  ;;  %v758_v3 = vmul.f32 %v4641_v30, %v745_v56  ;;  %v935_v6 = vsel %vm930_vm4, %v4519_v18, %v4475_v54  ;;  %v3600_v54 = vld [vmem:[%s6462_s2 + $0xe] sm:$0x3] }
 0x196   : > { %v4660_v62 = vpop.permute.xlu0 %970  ;;  %v791_v8 = vsel %vm786_vm5, %v4540_v28, %v4495_v1  ;;  %v4779_v12 = vadd.f32 %v757_v50, %v717_v23  ;;  %v759_v53 = vmul.f32 %v4643_v19, %v741_v43  ;;  %v760_v47 = vmul.f32 %v4641_v30, %v746_v49 }
 0x197   : > { %v4670_v15 = vpop.permute.xlu1 %828  ;;  %v4750_v16 = vpop.permute.xlu2 %830  ;;  %v4791_v18 = vmul.f32 %v4617_v29, %v886_v34  ;;  %v4794_v22 = vmul.f32 %v4623_v33, %v890_v13  ;;  %v4797_v23 = vmul.f32 %v4716_v38, %v931_v17  ;;  %v761_v58 = vmul.f32 %v4643_v19, %v742_v45 }
 0x198   : > { %v4801_v35 = vmul.f32 %v4718_v48, %v935_v6  ;;  %v932_v1 = vsel %vm930_vm4, %v4535_v26, %v4484_v60  ;;  %v936_v28 = vsel %vm930_vm4, %v4484_v60, %v4535_v26  ;;  %v802_v27 = vmul.f32 %v4746_v25, %v791_v8  ;;  %v3597_v26 = vld [vmem:[%s6462_s2 + $0x6] sm:$0x3] }
 0x199   : > { %v766_v0 = vadd.f32 %v758_v3, %v4631_v37  ;;  %v803_v50 = vmul.f32 %v4748_v4, %v787_v21  ;;  %v4815_v56 = vperm.slane %v3600_v54, 0  ;;  %v767_v43 = vadd.f32 %v759_v53, %v4663_v5 }
 0x19a   : > { %v4818_v49 = vadd.f32 %v760_v47, %v720_v52  ;;  %v933_v34 = vsel %vm930_vm4, %v4504_v9, %v4544_v32  ;;  %v4824_v60 = vperm.slane %v3600_v54, 1  ;;  %v4829_v13 = vadd.f32 %v761_v58, %v721_v55 }
 0x19b   : > { %6537 = vst [vmem:[#allocation21_spill] sm:$0xff] %v4815_v56  ;;  %v4832_v17 = vmul.f32 %v4716_v38, %v932_v1  ;;  %v4835_v5 = vmul.f32 %v4718_v48, %v936_v28  ;;  %v792_v52 = vsel %vm786_vm5, %v4512_v14, %v4556_v42  ;;  %v810_v3 = vadd.f32 %v802_v27, %v762_v36  ;;  %v6539_v1 = vld [vmem:[#allocation8_spill] sm:$0xff] }
 0x19c   : > { %6538 = vst [vmem:[#allocation22_spill] sm:$0xff] %v4824_v60  ;;  %v937_v6 = vsel %vm930_vm4, %v4544_v32, %v4504_v9  ;;  %v788_v55 = vsel %vm786_vm5, %v4556_v42, %v4512_v14  ;;  %v811_v8 = vadd.f32 %v803_v50, %v763_v61  ;;  %v4851_v53 = vmul.f32 %v4716_v38, %v933_v34  ;;  %v6540_v34 = vld [vmem:[#allocation12_spill] sm:$0xff] }
 0x19d   : > { %v980_v36 = vsel %vm978_vm6, %v4554_v41, %v4561_v51  ;;  %v4857_v47 = vperm.slane %v3597_v26, 1  ;;  %v804_v9 = vmul.f32 %v4746_v25, %v792_v52  ;;  %v984_v14 = vsel %vm978_vm6, %v4561_v51, %v4554_v41 }
 0x19e   : > { %v4736_v39 = vpop.permute.xlu0 %784  ;;  %v4873_v61 = vmul.f32 %v4718_v48, %v937_v6  ;;  %v805_v54 = vmul.f32 %v4748_v4, %v788_v55  ;;  %v4876_v58 = vperm.slane %v3597_v26, 0  ;;  %v836_v41 = vsel %vm834_vm7, %v4578_v11, %v4670_v15  ;;  %v6541_v26 = vld [vmem:[#allocation7_spill] sm:$0xff] }
 0x19f   : > { %v4752_v46 = vpop.permute.xlu1 %968  ;;  %v4859_v21 = vpop.permute.xlu2 %1018  ;;  %v4883_v51 = vmul.f32 %v4815_v56, %v980_v36  ;;  %v793_v28 = vsel %vm786_vm5, %v4586_v20, %v6539_v1  ;;  %v840_v27 = vsel %vm834_vm7, %v4670_v15, %v4578_v11  ;;  %v4898_v50 = vmul.f32 %v4824_v60, %v984_v14 }
 0x1a0   : > { %v812_v55 = vadd.f32 %v804_v9, %v764_v59  ;;  %v938_v14 = vsel %vm930_vm4, %v6540_v34, %v6541_v26  ;;  %v852_v9 = vmul.f32 %v4876_v58, %v840_v27 }
 0x1a6   : > { %v827_v37 = vpop.permute.xlu0 %826 }
 0x1a7   : > { %v823_v45 = vpop.permute.xlu1 %822  ;;  %v835_v32 = vsel %vm834_vm7, %v4572_v2, %v827_v37  ;;  %v839_v42 = vsel %vm834_vm7, %v827_v37, %v4572_v2  ;;  %v789_v2 = vsel %vm786_vm5, %v6539_v1, %v4586_v20  ;;  %v934_v37 = vsel %vm930_vm4, %v6541_v26, %v6540_v34 }
 0x1a8   : > { %v850_v52 = vmul.f32 %v4876_v58, %v839_v42  ;;  %v851_v6 = vmul.f32 %v4857_v47, %v835_v32  ;;  %v853_v20 = vmul.f32 %v4857_v47, %v836_v41  ;;  %v837_v36 = vsel %vm834_vm7, %v823_v45, %v4750_v16 }
 0x1a9   : > { %v841_v11 = vsel %vm834_vm7, %v4750_v16, %v823_v45  ;;  %v806_v42 = vmul.f32 %v4746_v25, %v793_v28  ;;  %v807_v59 = vmul.f32 %v4748_v4, %v789_v2  ;;  %v813_v41 = vadd.f32 %v805_v54, %v4779_v12  ;;  %v6542_v16 = vld [vmem:[#allocation9_spill] sm:$0xff]  ;;  %v6543_v54 = vld [vmem:[#allocation11_spill] sm:$0xff] }
 0x1aa   : > { %v4922_v1 = vmul.f32 %v4716_v38, %v934_v37  ;;  %v790_v45 = vsel %vm786_vm5, %v6542_v16, %v4736_v39  ;;  %v794_v28 = vsel %vm786_vm5, %v4736_v39, %v6542_v16  ;;  %v858_v34 = vadd.f32 %v850_v52, %v810_v3  ;;  %v6544_v37 = vld [vmem:[#allocation14_spill] sm:$0xff]  ;;  %v833_v52 = vpop.permute.xlu2 %832 }
 0x1ab   : > { %v859_v2 = vadd.f32 %v851_v6, %v811_v8  ;;  %v854_v27 = vmul.f32 %v4876_v58, %v841_v11  ;;  %v855_v26 = vmul.f32 %v4857_v47, %v837_v36  ;;  %v4935_v12 = vmul.f32 %v4718_v48, %v938_v14  ;;  %v6545_v39 = vld [vmem:[#allocation10_spill] sm:$0xff]  ;;  %v3601_v6 = vld [vmem:[%s6462_s2 + $0x10] sm:$0x3] }
 0x1ac   : > { %v981_v38 = vsel %vm978_vm6, %v6544_v37, %v6543_v54  ;;  %v861_v33 = vadd.f32 %v853_v20, %v813_v41  ;;  %v814_v29 = vadd.f32 %v806_v42, %v766_v0  ;;  %v815_v19 = vadd.f32 %v807_v59, %v767_v43 }
 0x1ad   : > { %v979_v3 = vsel %vm978_vm6, %v6545_v39, %v4660_v62  ;;  %v860_v8 = vadd.f32 %v852_v9, %v812_v55  ;;  %v808_v36 = vmul.f32 %v4746_v25, %v794_v28  ;;  %v809_v11 = vmul.f32 %v4748_v4, %v790_v45 }
 0x1ae   : > { %v1011_v15 = vpop.permute.xlu0 %1010  ;;  %v906_v43 = vadd.f32 %v4677_v44, %v858_v34  ;;  %v907_v14 = vadd.f32 %v4689_v40, %v859_v2  ;;  %v862_v55 = vadd.f32 %v854_v27, %v814_v29  ;;  %v863_v42 = vadd.f32 %v855_v26, %v815_v19 }
 0x1af   : > { %v825_v32 = vpop.permute.xlu1 %824  ;;  %v985_v59 = vsel %vm978_vm6, %v6543_v54, %v6544_v37  ;;  %v909_v9 = vadd.f32 %v4713_v31, %v861_v33  ;;  %v4962_v41 = vperm.slane %v3601_v6, 0  ;;  %v4964_v16 = vperm.slane %v3601_v6, 1  ;;  %v6548_v37 = vld [vmem:[#allocation18_spill] sm:$0xff] }
 0x1b0   : > { %v838_v20 = vsel %vm834_vm7, %v825_v32, %v833_v52  ;;  %v842_v0 = vsel %vm834_vm7, %v833_v52, %v825_v32  ;;  %v998_v32 = vmul.f32 %v4815_v56, %v981_v38  ;;  %v983_v29 = vsel %vm978_vm6, %v4660_v62, %v6545_v39 }
 0x1b1   : > { %6546 = vst [vmem:[#allocation8_spill] sm:$0xff] %v4962_v41  ;;  %v856_v19 = vmul.f32 %v4876_v58, %v842_v0  ;;  %v857_v44 = vmul.f32 %v4857_v47, %v838_v20  ;;  %v994_v28 = vmul.f32 %v4815_v56, %v979_v3  ;;  %v908_v33 = vadd.f32 %v4702_v10, %v860_v8 }
 0x1b2   : > { %6547 = vst [vmem:[#allocation12_spill] sm:$0xff] %v4964_v16  ;;  %v816_v31 = vadd.f32 %v808_v36, %v4818_v49  ;;  %v817_v34 = vadd.f32 %v809_v11, %v4829_v13  ;;  %v910_v38 = vadd.f32 %v4724_v63, %v862_v55  ;;  %v911_v2 = vadd.f32 %v4728_v7, %v863_v42 }
 0x1b3   : > { %v954_v27 = vadd.f32 %v4797_v23, %v906_v43  ;;  %v955_v62 = vadd.f32 %v4801_v35, %v907_v14  ;;  %v995_v26 = vmul.f32 %v4824_v60, %v983_v29  ;;  %v1027_v54 = vsel %vm1026_vm8, %v1011_v15, %v4859_v21 }
 0x1b4   : > { %v1031_v10 = vsel %vm1026_vm8, %v4859_v21, %v1011_v15  ;;  %v957_v49 = vadd.f32 %v4835_v5, %v909_v9  ;;  %v864_v13 = vadd.f32 %v856_v19, %v816_v31  ;;  %v865_v63 = vadd.f32 %v857_v44, %v817_v34  ;;  %v4103_v34 = vld [vmem:[%s4275_s14] sm:$0xff] }
 0x1b5   : > { %v999_v35 = vmul.f32 %v4824_v60, %v985_v59  ;;  %v982_v39 = vsel %vm978_vm6, %v4752_v46, %v6548_v37  ;;  %v956_v3 = vadd.f32 %v4832_v17, %v908_v33  ;;  %v1002_v21 = vadd.f32 %v994_v28, %v954_v27 }
 0x1b6   : > { %v1021_v45 = vpop.permute.xlu0 %1020  ;;  %v1003_v15 = vadd.f32 %v995_v26, %v955_v62  ;;  %v958_v5 = vadd.f32 %v4851_v53, %v910_v38  ;;  %v959_v8 = vadd.f32 %v4873_v61, %v911_v2  ;;  %v1042_v52 = vmul.f32 %v4962_v41, %v1027_v54  ;;  %v4104_v2 = vld [vmem:[%s4275_s14 + $0x8] sm:$0xff]  ;;  %v1017_v62 = vpop.permute.xlu2 %1016  ;;  %v4105_v26 = vld [vmem:[%s4275_s14 + $0x10] sm:$0xff] }
 0x1b7   : > { %v1013_v40 = vpop.permute.xlu1 %1012  ;;  %v1043_v6 = vmul.f32 %v4964_v16, %v1031_v10  ;;  %v986_v17 = vsel %vm978_vm6, %v6548_v37, %v4752_v46  ;;  %v912_v0 = vadd.f32 %v4791_v18, %v864_v13  ;;  %v913_v53 = vadd.f32 %v4794_v22, %v865_v63  ;;  %v4106_v10 = vld [vmem:[%s4275_s14 + $0x18] sm:$0xff]  ;;  %v4108_v37 = vld [vmem:[%s4275_s14 + $0x28] sm:$0xff] }
 0x1b8   : > { %v1028_v7 = vsel %vm1026_vm8, %v1013_v40, %v1021_v45  ;;  %v1032_v23 = vsel %vm1026_vm8, %v1021_v45, %v1013_v40  ;;  %v1005_v61 = vadd.f32 %v4898_v50, %v957_v49  ;;  %v1004_v14 = vadd.f32 %v4883_v51, %v956_v3 }
 0x1b9   : > { %v1044_v36 = vmul.f32 %v4962_v41, %v1028_v7  ;;  %v1045_v11 = vmul.f32 %v4964_v16, %v1032_v23  ;;  %v4184_v59 = vmov 32.0   ;;  %v1006_v9 = vadd.f32 %v998_v32, %v958_v5  ;;  %v4107_v23 = vld [vmem:[%s4275_s14 + $0x20] sm:$0xff] }
 0x1ba   : > { %4025 = vrcp.f32 %v4184_v59  ;;  %v1007_v46 = vadd.f32 %v999_v35, %v959_v8  ;;  %v1050_v50 = vadd.f32 %v1042_v52, %v1002_v21  ;;  %v1051_v45 = vadd.f32 %v1043_v6, %v1003_v15 }
 0x1bb   : > { %v1052_v51 = vadd.f32 %v1044_v36, %v1004_v14  ;;  %v1053_v29 = vadd.f32 %v1045_v11, %v1005_v61  ;;  %v960_v19 = vadd.f32 %v4922_v1, %v912_v0  ;;  %v961_v44 = vadd.f32 %v4935_v12, %v913_v53  ;;  %v4110_v0 = vld [vmem:[%s4275_s14 + $0x38] sm:$0xff] }
 0x1bc   : > { %v1000_v32 = vmul.f32 %v4815_v56, %v982_v39  ;;  %v1001_v33 = vmul.f32 %v4824_v60, %v986_v17  ;;  %v1058_v38 = vadd.f32 %v4103_v34, %v1050_v50  ;;  %v1059_v27 = vadd.f32 %v4104_v2, %v1051_v45 }
 0x1bd   : > { %v1060_v54 = vadd.f32 %v4105_v26, %v1052_v51  ;;  %v1061_v1 = vadd.f32 %v4106_v10, %v1053_v29 }
 0x1be   : > { %v1015_v20 = vpop.permute.xlu0 %1014  ;;  %v1008_v12 = vadd.f32 %v1000_v32, %v960_v19  ;;  %v1009_v13 = vadd.f32 %v1001_v33, %v961_v44 }
 0x1bf   : > { %v1023_v43 = vpop.permute.xlu1 %1022  ;;  %v1066_v5 = vadd.f32 %v1060_v54, %v1058_v38  ;;  %v1075_v8 = vadd.f32 %v1061_v1, %v1059_v27 }
 0x1c0   : > { %v1029_v55 = vsel %vm1026_vm8, %v1015_v20, %v1023_v43  ;;  %v1033_v42 = vsel %vm1026_vm8, %v1023_v43, %v1015_v20  ;;  %v4026_v31 = vpop.eup %4025  ;;  %v4109_v20 = vld [vmem:[%s4275_s14 + $0x30] sm:$0xff] }
 0x1c1   : > { %v1046_v18 = vmul.f32 %v4962_v41, %v1029_v55  ;;  %v1047_v22 = vmul.f32 %v4964_v16, %v1033_v42  ;;  %v1085_v15 = vmul.f32 32.0, %v4026_v31  ;;  %vm1089_vm9 = vweird.f32 %v4026_v31 }
 0x1c3   : > { %v1054_v40 = vadd.f32 %v1046_v18, %v1006_v9  ;;  %v1055_v28 = vadd.f32 %v1047_v22, %v1007_v46  ;;  %v1086_v61 = vsub.f32 1.0, %v1085_v15 }
 0x1c5   : > { %v1062_v35 = vadd.f32 %v4107_v23, %v1054_v40  ;;  %v1063_v39 = vadd.f32 %v4108_v37, %v1055_v28  ;;  %v1087_v59 = vmul.f32 %v4026_v31, %v1086_v61 }
 0x1c6   : > { %v1025_v49 = vpop.permute.xlu0 %1024 }
 0x1c7   : > { %v1030_v63 = vsel %vm1026_vm8, %v1017_v62, %v1025_v49  ;;  %v1034_v7 = vsel %vm1026_vm8, %v1025_v49, %v1017_v62  ;;  %v1067_v36 = vadd.f32 %v1066_v5, %v1062_v35  ;;  %v1076_v11 = vadd.f32 %v1075_v8, %v1063_v39 }
 0x1c8   : > { %v1048_v3 = vmul.f32 %v4962_v41, %v1030_v63  ;;  %v1049_v21 = vmul.f32 %v4964_v16, %v1034_v7  ;;  %v1088_v50 = vadd.f32 %v4026_v31, %v1087_v59 }
 0x1ca   : > { %v1056_v52 = vadd.f32 %v1048_v3, %v1008_v12  ;;  %v1057_v6 = vadd.f32 %v1049_v21, %v1009_v13  ;;  %v5037_v44 = vsel %vm1089_vm9, %v4026_v31, %v1088_v50 }
 0x1cb   : > { %6549 = vst [vmem:[#allocation7_spill] sm:$0xff] %v5037_v44 }
 0x1cc   : > { %v1064_v17 = vadd.f32 %v4109_v20, %v1056_v52  ;;  %v1065_v53 = vadd.f32 %v4110_v0, %v1057_v6 }
 0x1ce   : > { %v1068_v43 = vadd.f32 %v1067_v36, %v1064_v17  ;;  %v1077_v14 = vadd.f32 %v1076_v11, %v1065_v53 }
 0x1d0   : > { %v1069_v55 = vrot.slane %v1068_v43, 4  ;;  %v1078_v42 = vrot.slane %v1077_v14, 4 }
 0x1d2   : > { %v1070_v9 = vadd.f32 %v1069_v55, %v1068_v43  ;;  %v1079_v46 = vadd.f32 %v1078_v42, %v1077_v14 }
 0x1d4   : > { %v1071_v18 = vrot.slane %v1070_v9, 2  ;;  %v1080_v22 = vrot.slane %v1079_v46, 2 }
 0x1d6   : > { %v1072_v45 = vadd.f32 %v1071_v18, %v1070_v9  ;;  %v1081_v51 = vadd.f32 %v1080_v22, %v1079_v46  ;;  %v1176_v9 = vpop.permute.xlu1 %1175  ;;  %v1181_v46 = vpop.permute.xlu2 %1180 }
 0x1d8   : > { %v1073_v29 = vrot.slane %v1072_v45, 1  ;;  %v1082_v19 = vrot.slane %v1081_v51, 1 }
 0x1da   : > { %v1074_v40 = vadd.f32 %v1073_v29, %v1072_v45  ;;  %v1083_v28 = vadd.f32 %v1082_v19, %v1081_v51 }
 0x1dc   : > { %v1091_v32 = vmul.f32 %v5037_v44, %v1074_v40  ;;  %v1092_v33 = vmul.f32 %v5037_v44, %v1083_v28 }
 0x1de   : > { %v5041_v34 = vsub.f32 %v1058_v38, %v1091_v32  ;;  %v5043_v2 = vsub.f32 %v1059_v27, %v1092_v33  ;;  %v5045_v62 = vsub.f32 %v1060_v54, %v1091_v32  ;;  %v5047_v26 = vsub.f32 %v1061_v1, %v1092_v33  ;;  %v1213_v28 = vpop.permute.xlu1 %1212 }
 0x1df   : > { %v5049_v10 = vsub.f32 %v1064_v17, %v1091_v32  ;;  %v1100_v49 = vsub.f32 %v1065_v53, %v1092_v33  ;;  %v1098_v12 = vsub.f32 %v1063_v39, %v1092_v33  ;;  %v1097_v31 = vsub.f32 %v1062_v35, %v1091_v32 }
 0x1e0   : > { %v1102_v13 = vmul.f32 %v5043_v2, %v5043_v2  ;;  %v1104_v63 = vmul.f32 %v5047_v26, %v5047_v26  ;;  %v1101_v38 = vmul.f32 %v5041_v34, %v5041_v34  ;;  %v1103_v27 = vmul.f32 %v5045_v62, %v5045_v62 }
 0x1e1   : > { %v1106_v54 = vmul.f32 %v1098_v12, %v1098_v12  ;;  %v1105_v7 = vmul.f32 %v1097_v31, %v1097_v31  ;;  %v1107_v37 = vmul.f32 %v5049_v10, %v5049_v10  ;;  %v1108_v35 = vmul.f32 %v1100_v49, %v1100_v49 }
 0x1e2   : > { %v1118_v1 = vadd.f32 %v1104_v63, %v1102_v13  ;;  %v1109_v23 = vadd.f32 %v1103_v27, %v1101_v38  ;;  %v1166_v63 = vpop.permute.xlu2 %1165  ;;  %v1208_v27 = vpop.permute.xlu0 %1207 }
 0x1e4   : > { %v1119_v39 = vadd.f32 %v1118_v1, %v1106_v54  ;;  %v1110_v3 = vadd.f32 %v1109_v23, %v1105_v7 }
 0x1e6   : > { %v1120_v21 = vadd.f32 %v1119_v39, %v1108_v35  ;;  %v1111_v15 = vadd.f32 %v1110_v3, %v1107_v37 }
 0x1e8   : > { %v1121_v5 = vrot.slane %v1120_v21, 4  ;;  %v1112_v8 = vrot.slane %v1111_v15, 4 }
 0x1ea   : > { %v1122_v52 = vadd.f32 %v1121_v5, %v1120_v21  ;;  %v1113_v6 = vadd.f32 %v1112_v8, %v1111_v15 }
 0x1ec   : > { %v1123_v36 = vrot.slane %v1122_v52, 2  ;;  %v1114_v11 = vrot.slane %v1113_v6, 2 }
 0x1ee   : > { %v1124_v20 = vadd.f32 %v1123_v36, %v1122_v52  ;;  %v1115_v17 = vadd.f32 %v1114_v11, %v1113_v6 }
 0x1f0   : > { %v1125_v0 = vrot.slane %v1124_v20, 1  ;;  %v1116_v53 = vrot.slane %v1115_v17, 1 }
 0x1f2   : > { %v1126_v61 = vadd.f32 %v1125_v0, %v1124_v20  ;;  %v1117_v43 = vadd.f32 %v1116_v53, %v1115_v17  ;;  %v1198_v53 = vpop.permute.xlu2 %1197 }
 0x1f4   : > { %v1128_v14 = vmul.f32 %v1126_v61, %v5037_v44  ;;  %v1127_v55 = vmul.f32 %v1117_v43, %v5037_v44 }
 0x1f6   : > { %v1130_v42 = vadd.f32 1e-06, %v1128_v14  ;;  %v1129_v59 = vadd.f32 1e-06, %v1127_v55 }
 0x1f8   : > { %4027 = vrsqrt.f32 %v1130_v42  ;;  %vm1147_vm12 = vweird.f32 %v1130_v42  ;;  %vm1137_vm14 = vweird.f32 %v1129_v59 }
 0x1f9   : > { %4029 = vrsqrt.f32 %v1129_v59 }
 0x1fe   : > { %v4028_v18 = vpop.eup %4027 }
 0x1ff   : > { %v4030_v22 = vpop.eup %4029  ;;  %v1142_v50 = vmul.f32 %v4028_v18, %v1130_v42  ;;  %vm1148_vm10 = vweird.f32 %v4028_v18  ;;  %v1203_v42 = vpop.permute.xlu0 %1202 }
 0x200   : > { %v1132_v45 = vmul.f32 %v4030_v22, %v1129_v59  ;;  %vm1138_vm11 = vweird.f32 %v4030_v22  ;;  %vm1149_vm13 = vmor %vm1147_vm12, %vm1148_vm10 }
 0x201   : > { %v1143_v51 = vmul.f32 %v4028_v18, %v1142_v50  ;;  %vm1139_vm15 = vmor %vm1137_vm14, %vm1138_vm11 }
 0x202   : > { %v1133_v29 = vmul.f32 %v4030_v22, %v1132_v45 }
 0x203   : > { %v1144_v19 = vmul.f32 0.5, %v1143_v51 }
 0x204   : > { %v1134_v40 = vmul.f32 0.5, %v1133_v29 }
 0x205   : > { %v1145_v32 = vsub.f32 1.5, %v1144_v19 }
 0x206   : > { %v1135_v33 = vsub.f32 1.5, %v1134_v40 }
 0x207   : > { %v1146_v13 = vmul.f32 %v4028_v18, %v1145_v32 }
 0x208   : > { %v1136_v38 = vmul.f32 %v4030_v22, %v1135_v33 }
 0x209   : > { %v1150_v54 = vsel %vm1149_vm13, %v4028_v18, %v1146_v13 }
 0x20a   : > { %v1156_v1 = vmul.f32 %v1150_v54, %v1098_v12  ;;  %v1140_v7 = vsel %vm1139_vm15, %v4030_v22, %v1136_v38  ;;  %v1158_v23 = vmul.f32 %v1150_v54, %v1100_v49  ;;  %v1152_v37 = vmul.f32 %v1150_v54, %v5043_v2  ;;  %v1171_v49 = vpop.permute.xlu1 %1170 }
 0x20b   : > { %v1155_v35 = vmul.f32 %v1140_v7, %v1097_v31  ;;  %v1157_v39 = vmul.f32 %v1140_v7, %v5049_v10  ;;  %v1151_v3 = vmul.f32 %v1140_v7, %v5041_v34  ;;  %v1154_v21 = vmul.f32 %v1150_v54, %v5047_v26 }
 0x20c   : > { %v1188_v15 = vmul.f32 %v1176_v9, %v1156_v1  ;;  %v1190_v5 = vmul.f32 %v1181_v46, %v1158_v23  ;;  %v1153_v8 = vmul.f32 %v1140_v7, %v5045_v62  ;;  %v1184_v11 = vmul.f32 %v1166_v63, %v1152_v37 }
 0x20d   : > { %v1187_v52 = vmul.f32 %v1176_v9, %v1155_v35  ;;  %v1189_v6 = vmul.f32 %v1181_v46, %v1157_v39  ;;  %v1183_v12 = vmul.f32 %v1166_v63, %v1151_v3  ;;  %v1186_v31 = vmul.f32 %v1171_v49, %v1154_v21 }
 0x20e   : > { %v5068_v36 = vadd.f32 %v1213_v28, %v1190_v5  ;;  %v5070_v20 = vadd.f32 %v1208_v27, %v1188_v15  ;;  %v1185_v10 = vmul.f32 %v1171_v49, %v1153_v8  ;;  %v5092_v55 = vadd.f32 %v1198_v53, %v1184_v11 }
 0x20f   : > { %v5072_v2 = vadd.f32 %v1213_v28, %v1189_v6  ;;  %v5074_v34 = vadd.f32 %v1208_v27, %v1187_v52  ;;  %v5090_v14 = vadd.f32 %v1198_v53, %v1183_v12  ;;  %v5098_v18 = vadd.f32 %v1203_v42, %v1186_v31 }
 0x210   : > { %6550 = vst [vmem:[#allocation9_spill] sm:$0xff] %v5068_v36  ;;  %v5077_v26 = vmul.f32 0.70710677, %v5068_v36  ;;  %v5080_v62 = vmul.f32 0.70710677, %v5070_v20  ;;  %v5096_v46 = vadd.f32 %v1203_v42, %v1185_v10 }
 0x211   : > { %6551 = vst [vmem:[#allocation11_spill] sm:$0xff] %v5070_v20  ;;  %v5083_v17 = vmul.f32 0.70710677, %v5072_v2  ;;  %v5086_v0 = vmul.f32 0.70710677, %v5074_v34  ;;  %v5115_v11 = vmul.f32 0.5, %v5090_v14 }
 0x212   : > { %6552 = vst [vmem:[#allocation14_spill] sm:$0xff] %v5072_v2  ;;  %v1262_v61 = vand.u32 2147483647, %v5077_v26  ;;  %v1260_v43 = vand.u32 2147483647, %v5080_v62  ;;  %v5118_v10 = vmul.f32 0.5, %v5074_v34 }
 0x213   : > { %6553 = vst [vmem:[#allocation10_spill] sm:$0xff] %v5074_v34  ;;  %v1261_v59 = vand.u32 2147483647, %v5083_v17  ;;  %v1259_v9 = vand.u32 2147483647, %v5086_v0  ;;  %vm1243_vm11 = vcmp.lt.f32.partialorder %v5086_v0, 0.0 }
 0x214   : > { %6554 = vst [vmem:[#allocation18_spill] sm:$0xff] %v5090_v14  ;;  %v1270_v22 = vmul.f32 0.3275911, %v1262_v61  ;;  %v1366_v50 = vsub.f32 0.0, %v1262_v61  ;;  %v1268_v45 = vmul.f32 0.3275911, %v1260_v43 }
 0x215   : > { %v1364_v51 = vsub.f32 0.0, %v1260_v43  ;;  %v1269_v29 = vmul.f32 0.3275911, %v1261_v59  ;;  %v1365_v19 = vsub.f32 0.0, %v1261_v59  ;;  %v1267_v40 = vmul.f32 0.3275911, %v1259_v9 }
 0x216   : > { %v1363_v28 = vsub.f32 0.0, %v1259_v9  ;;  %v1278_v32 = vadd.f32 1.0, %v1270_v22  ;;  %v1374_v33 = vmul.f32 %v1366_v50, %v1262_v61  ;;  %v5101_v13 = vmul.f32 0.70710677, %v5090_v14 }
 0x217   : > { %v5104_v63 = vmul.f32 0.70710677, %v5092_v55  ;;  %v1277_v38 = vadd.f32 1.0, %v1269_v29  ;;  %v1373_v27 = vmul.f32 %v1365_v19, %v1261_v59  ;;  %v1372_v1 = vmul.f32 %v1364_v51, %v1260_v43 }
 0x218   : > { %v1371_v54 = vmul.f32 %v1363_v28, %v1259_v9  ;;  %4031 = vrcp.f32 %v1278_v32  ;;  %v1389_v7 = vmul.f32 1.442695, %v1374_v33  ;;  %v1275_v23 = vadd.f32 1.0, %v1267_v40 }
 0x219   : > { %4033 = vrcp.f32 %v1277_v38  ;;  %v1387_v37 = vmul.f32 1.442695, %v1373_v27  ;;  %v1276_v35 = vadd.f32 1.0, %v1268_v45  ;;  %v1255_v3 = vand.u32 2147483647, %v5101_v13 }
 0x21a   : > { %4035 = vpow2.f32 %v1389_v7  ;;  %v1383_v39 = vmul.f32 1.442695, %v1371_v54  ;;  %v1256_v21 = vand.u32 2147483647, %v5104_v63  ;;  %v1385_v15 = vmul.f32 1.442695, %v1372_v1 }
 0x21b   : > { %4037 = vpow2.f32 %v1387_v37  ;;  %v5109_v5 = vmul.f32 0.70710677, %v5096_v46  ;;  %v5112_v8 = vmul.f32 0.70710677, %v5098_v18  ;;  %v1263_v52 = vmul.f32 0.3275911, %v1255_v3 }
 0x21c   : > { %4039 = vrcp.f32 %v1275_v23  ;;  %v1264_v6 = vmul.f32 0.3275911, %v1256_v21  ;;  %v1359_v12 = vsub.f32 0.0, %v1255_v3  ;;  %v1360_v49 = vsub.f32 0.0, %v1256_v21 }
 0x21d   : > { %4041 = vrcp.f32 %v1276_v35  ;;  %v1271_v53 = vadd.f32 1.0, %v1263_v52  ;;  %vm1239_vm9 = vcmp.lt.f32.partialorder %v5101_v13, 0.0  ;;  %v1257_v9 = vand.u32 2147483647, %v5109_v5 }
 0x21e   : > { %v5120_v31 = vpop.eup %4031  ;;  %4043 = vpow2.f32 %v1383_v39  ;;  %v1272_v61 = vadd.f32 1.0, %v1264_v6  ;;  %v1367_v43 = vmul.f32 %v1359_v12, %v1255_v3  ;;  %v1368_v59 = vmul.f32 %v1360_v49, %v1256_v21 }
 0x21f   : > { %v5122_v42 = vpop.eup %4033  ;;  %4045 = vpow2.f32 %v1385_v15  ;;  %v1258_v22 = vand.u32 2147483647, %v5112_v8  ;;  %vm1241_vm10 = vcmp.lt.f32.partialorder %v5109_v5, 0.0  ;;  %vm1240_vm12 = vcmp.lt.f32.partialorder %v5104_v63, 0.0 }
 0x220   : > { %v5127_v50 = vpop.eup %4035  ;;  %4047 = vrcp.f32 %v1271_v53  ;;  %v1375_v45 = vmul.f32 1.442695, %v1367_v43  ;;  %v1377_v29 = vmul.f32 1.442695, %v1368_v59  ;;  %v1265_v19 = vmul.f32 0.3275911, %v1257_v9 }
 0x221   : > { %v5131_v51 = vpop.eup %4037  ;;  %4049 = vrcp.f32 %v1272_v61  ;;  %v1266_v40 = vmul.f32 0.3275911, %v1258_v22  ;;  %v1361_v32 = vsub.f32 0.0, %v1257_v9  ;;  %v1362_v33 = vsub.f32 0.0, %v1258_v22 }
 0x222   : > { %v5134_v28 = vpop.eup %4039  ;;  %4051 = vpow2.f32 %v1375_v45  ;;  %vm1245_vm13 = vcmp.lt.f32.partialorder %v5083_v17, 0.0  ;;  %v1273_v27 = vadd.f32 1.0, %v1265_v19  ;;  %v5140_v1 = vmul.f32 0.5, %v5072_v2 }
 0x223   : > { %v5137_v38 = vpop.eup %4041  ;;  %4053 = vpow2.f32 %v1377_v29  ;;  %v1274_v54 = vadd.f32 1.0, %v1266_v40  ;;  %v1369_v23 = vmul.f32 %v1361_v32, %v1257_v9  ;;  %v1370_v37 = vmul.f32 %v1362_v33, %v1258_v22 }
 0x224   : > { %v5142_v7 = vpop.eup %4043  ;;  %v6493_v35 = vmov 1.0   ;;  %v1291_v17 = vmul.f32 1.0614054, %v5134_v28  ;;  %4055 = vrcp.f32 %v1273_v27  ;;  %v1293_v15 = vmul.f32 1.0614054, %v5122_v42 }
 0x225   : > { %v5147_v39 = vsel %vm1243_vm11, -1.0, %v6493_v35  ;;  %v5150_v3 = vpop.eup %4045  ;;  %v5153_v21 = vsel %vm1245_vm13, -1.0, %v6493_v35  ;;  %v5157_v52 = vmul.f32 0.5, %v5070_v20  ;;  %4057 = vrcp.f32 %v1274_v54 }
 0x226   : > { %v5159_v6 = vpop.eup %4047  ;;  %v1379_v12 = vmul.f32 1.442695, %v1369_v23  ;;  %v1381_v0 = vmul.f32 1.442695, %v1370_v37  ;;  %v1299_v49 = vadd.f32 -1.4531521, %v1291_v17 }
 0x227   : > { %v5161_v53 = vpop.eup %4049  ;;  %v1301_v61 = vadd.f32 -1.4531521, %v1293_v15  ;;  %vm1244_vm14 = vcmp.lt.f32.partialorder %v5080_v62, 0.0  ;;  %vm1246_vm15 = vcmp.lt.f32.partialorder %v5077_v26, 0.0  ;;  %v1292_v43 = vmul.f32 1.0614054, %v5137_v38 }
 0x228   : > { %v5166_v59 = vpop.eup %4051  ;;  %4059 = vpow2.f32 %v1379_v12  ;;  %v1307_v9 = vmul.f32 %v5134_v28, %v1299_v49  ;;  %v5170_v22 = vmul.f32 0.5, %v5068_v36  ;;  %v5173_v45 = vsel %vm1244_vm14, -1.0, %v6493_v35 }
 0x229   : > { %v5175_v29 = vpop.eup %4053  ;;  %v1309_v19 = vmul.f32 %v5122_v42, %v1301_v61  ;;  %v5179_v62 = vsel %vm1246_vm15, -1.0, %v6493_v35  ;;  %v1294_v26 = vmul.f32 1.0614054, %v5120_v31  ;;  %v1300_v40 = vadd.f32 -1.4531521, %v1292_v43 }
 0x22a   : > { %4061 = vpow2.f32 %v1381_v0  ;;  %v1315_v32 = vadd.f32 1.4214138, %v1307_v9  ;;  %v5185_v33 = vsel %vm1239_vm9, -1.0, %v6493_v35  ;;  %v1287_v27 = vmul.f32 1.0614054, %v5159_v6  ;;  %v5188_v54 = vpop.eup %4055 }
 0x22b   : > { %v1317_v23 = vadd.f32 1.4214138, %v1309_v19  ;;  %v1302_v37 = vadd.f32 -1.4531521, %v1294_v26  ;;  %v1308_v17 = vmul.f32 %v5137_v38, %v1300_v40  ;;  %v5194_v15 = vsel %vm1241_vm10, -1.0, %v6493_v35  ;;  %v5196_v12 = vpop.eup %4057 }
 0x22c   : > { %v1323_v0 = vmul.f32 %v5134_v28, %v1315_v32  ;;  %v1289_v13 = vmul.f32 1.0614054, %v5188_v54  ;;  %v1295_v49 = vadd.f32 -1.4531521, %v1287_v27  ;;  %v5203_v61 = vsel %vm1240_vm12, -1.0, %v6493_v35 }
 0x22d   : > { %v1325_v43 = vmul.f32 %v5122_v42, %v1317_v23  ;;  %v1310_v9 = vmul.f32 %v5120_v31, %v1302_v37  ;;  %v1316_v19 = vadd.f32 1.4214138, %v1308_v17  ;;  %v1288_v5 = vmul.f32 1.0614054, %v5161_v53 }
 0x22e   : > { %v5208_v26 = vpop.eup %4059  ;;  %v1331_v40 = vadd.f32 -0.28449672, %v1323_v0  ;;  %v1297_v44 = vadd.f32 -1.4531521, %v1289_v13  ;;  %v1303_v32 = vmul.f32 %v5159_v6, %v1295_v49  ;;  %v1290_v27 = vmul.f32 1.0614054, %v5196_v12 }
 0x22f   : > { %v1333_v36 = vadd.f32 -0.28449672, %v1325_v43  ;;  %v1318_v2 = vadd.f32 1.4214138, %v1310_v9  ;;  %v1324_v63 = vmul.f32 %v5137_v38, %v1316_v19  ;;  %v1296_v35 = vadd.f32 -1.4531521, %v1288_v5 }
 0x230   : > { %v5213_v20 = vpop.eup %4061  ;;  %v1339_v23 = vmul.f32 %v5134_v28, %v1331_v40  ;;  %v1305_v37 = vmul.f32 %v5188_v54, %v1297_v44  ;;  %v1311_v17 = vadd.f32 1.4214138, %v1303_v32  ;;  %v1298_v34 = vadd.f32 -1.4531521, %v1290_v27 }
 0x231   : > { %v1341_v0 = vmul.f32 %v5122_v42, %v1333_v36  ;;  %v1326_v13 = vmul.f32 %v5120_v31, %v1318_v2  ;;  %v1332_v49 = vadd.f32 -0.28449672, %v1324_v63  ;;  %v1304_v14 = vmul.f32 %v5161_v53, %v1296_v35 }
 0x232   : > { %v1347_v43 = vadd.f32 0.2548296, %v1339_v23  ;;  %v1313_v9 = vadd.f32 1.4214138, %v1305_v37  ;;  %v1319_v19 = vmul.f32 %v5159_v6, %v1311_v17  ;;  %v1306_v5 = vmul.f32 %v5196_v12, %v1298_v34 }
 0x233   : > { %v1349_v16 = vadd.f32 0.2548296, %v1341_v0  ;;  %v1334_v41 = vadd.f32 -0.28449672, %v1326_v13  ;;  %v1340_v40 = vmul.f32 %v5137_v38, %v1332_v49  ;;  %v1312_v44 = vadd.f32 1.4214138, %v1304_v14 }
 0x234   : > { %v1355_v32 = vmul.f32 %v5134_v28, %v1347_v43  ;;  %v1321_v36 = vmul.f32 %v5188_v54, %v1313_v9  ;;  %v1327_v27 = vadd.f32 -0.28449672, %v1319_v19  ;;  %v1314_v2 = vadd.f32 1.4214138, %v1306_v5 }
 0x235   : > { %v1357_v63 = vmul.f32 %v5122_v42, %v1349_v16  ;;  %v1342_v35 = vmul.f32 %v5120_v31, %v1334_v41  ;;  %v1348_v23 = vadd.f32 0.2548296, %v1340_v40  ;;  %v1320_v37 = vmul.f32 %v5161_v53, %v1312_v44 }
 0x236   : > { %v1395_v34 = vmul.f32 %v5142_v7, %v1355_v32  ;;  %v1329_v17 = vadd.f32 -0.28449672, %v1321_v36  ;;  %v1335_v0 = vmul.f32 %v5159_v6, %v1327_v27  ;;  %v1322_v14 = vmul.f32 %v5196_v12, %v1314_v2 }
 0x237   : > { %vm1242_vm9 = vcmp.lt.f32.partialorder %v5112_v8, 0.0  ;;  %v1397_v28 = vmul.f32 %v5131_v51, %v1357_v63  ;;  %v1350_v13 = vadd.f32 0.2548296, %v1342_v35  ;;  %v1356_v49 = vmul.f32 %v5137_v38, %v1348_v23 }
 0x238   : > { %v1328_v16 = vadd.f32 -0.28449672, %v1320_v37  ;;  %v1403_v42 = vsub.f32 1.0, %v1395_v34  ;;  %v1337_v41 = vmul.f32 %v5188_v54, %v1329_v17  ;;  %v1343_v43 = vadd.f32 0.2548296, %v1335_v0 }
 0x239   : > { %v1330_v9 = vadd.f32 -0.28449672, %v1322_v14  ;;  %v1405_v19 = vsub.f32 1.0, %v1397_v28  ;;  %v1358_v7 = vmul.f32 %v5120_v31, %v1350_v13  ;;  %v1396_v5 = vmul.f32 %v5150_v3, %v1356_v49  ;;  %v6555_v13 = vld [vmem:[#allocation5_spill] sm:$0xff] }
 0x23a   : > { %v1336_v40 = vmul.f32 %v5161_v53, %v1328_v16  ;;  %v1411_v44 = vmul.f32 %v1403_v42, %v5147_v39  ;;  %v1345_v32 = vadd.f32 0.2548296, %v1337_v41  ;;  %v1351_v51 = vmul.f32 %v5159_v6, %v1343_v43 }
 0x23b   : > { %v1338_v38 = vmul.f32 %v5196_v12, %v1330_v9  ;;  %v1413_v36 = vmul.f32 %v1405_v19, %v5153_v21  ;;  %v1398_v27 = vmul.f32 %v5127_v50, %v1358_v7  ;;  %v1404_v2 = vsub.f32 1.0, %v1396_v5 }
 0x23c   : > { %v1344_v63 = vadd.f32 0.2548296, %v1336_v40  ;;  %v1419_v35 = vadd.f32 1.0, %v1411_v44  ;;  %v1353_v31 = vmul.f32 %v5188_v54, %v1345_v32  ;;  %v1391_v3 = vmul.f32 %v5166_v59, %v1351_v51 }
 0x23d   : > { %v1346_v23 = vadd.f32 0.2548296, %v1338_v38  ;;  %v1421_v37 = vadd.f32 1.0, %v1413_v36  ;;  %v1406_v34 = vsub.f32 1.0, %v1398_v27  ;;  %v1412_v39 = vmul.f32 %v1404_v2, %v5173_v45 }
 0x23e   : > { %v1352_v6 = vmul.f32 %v5161_v53, %v1344_v63  ;;  %v1427_v17 = vmul.f32 %v1419_v35, %v5118_v10  ;;  %v1393_v21 = vmul.f32 %v5208_v26, %v1353_v31  ;;  %v1399_v0 = vsub.f32 1.0, %v1391_v3  ;;  %v3930_v3 = vld [vmem:[%s6463_s3 + $0x90] sm:$0xff] }
 0x23f   : > { %v1354_v50 = vmul.f32 %v5196_v12, %v1346_v23  ;;  %v1429_v14 = vmul.f32 %v1421_v37, %v5140_v1  ;;  %v1414_v54 = vmul.f32 %v1406_v34, %v5179_v62  ;;  %v1420_v28 = vadd.f32 1.0, %v1412_v39  ;;  %v3931_v37 = vld [vmem:[%s6463_s3 + $0x98] sm:$0xff]  ;;  %v3932_v34 = vld [vmem:[%s6463_s3 + $0xa0] sm:$0xff]  ;;  %v3933_v39 = vld [vmem:[%s6463_s3 + $0xa8] sm:$0xff] }
 0x240   : > { %v1392_v59 = vmul.f32 %v5175_v29, %v1352_v6  ;;  %v1435_v49 = vmul.f32 %v1427_v17, %v6555_v13  ;;  %v1401_v16 = vsub.f32 1.0, %v1393_v21  ;;  %v1407_v45 = vmul.f32 %v1399_v0, %v5185_v33  ;;  %v6557_v33 = vld [vmem:[#allocation6_spill] sm:$0xff]  ;;  %v3934_v6 = vld [vmem:[%s6463_s3 + $0xb0] sm:$0xff]  ;;  %v3935_v17 = vld [vmem:[%s6463_s3 + $0xb8] sm:$0xff] }
 0x241   : > { %v1394_v53 = vmul.f32 %v5213_v20, %v1354_v50  ;;  %v1437_v10 = vmul.f32 %v1429_v14, %v6555_v13  ;;  %v1422_v26 = vadd.f32 1.0, %v1414_v54  ;;  %v1428_v42 = vmul.f32 %v1420_v28, %v5157_v52  ;;  %v3936_v21 = vld [vmem:[%s6463_s3 + $0xc0] sm:$0xff]  ;;  %v3937_v0 = vld [vmem:[%s6463_s3 + $0xc8] sm:$0xff]  ;;  %v3938_v50 = vld [vmem:[%s6463_s3 + $0xd0] sm:$0xff] }
 0x242   : > { %v1400_v12 = vsub.f32 1.0, %v1392_v59  ;;  %v1409_v1 = vmul.f32 %v1401_v16, %v5194_v15  ;;  %v1415_v41 = vadd.f32 1.0, %v1407_v45  ;;  %v6556_v62 = vmov 1.0   ;;  %v3939_v59 = vld [vmem:[%s6463_s3 + $0xd8] sm:$0xff] }
 0x243   : > { %v1250_v29 = vsel %vm1242_vm9, -1.0, %v6556_v62  ;;  %v1402_v43 = vsub.f32 1.0, %v1394_v53  ;;  %v1441_v9 = vpack.c.bf16 %v1437_v10, %v1435_v49  ;;  %v1430_v19 = vmul.f32 %v1422_v26, %v5170_v22  ;;  %v3940_v10 = vld [vmem:[%s6463_s3 + $0xe0] sm:$0xff] }
 0x244   : > { %v1436_v7 = vmul.f32 %v1428_v42, %v6557_v33  ;;  %v1408_v20 = vmul.f32 %v1400_v12, %v5203_v61  ;;  %v1225_v5 = vmul.f32 0.5, %v5096_v46  ;;  %v1417_v40 = vadd.f32 1.0, %v1409_v1 }
 0x245   : > { %v1423_v52 = vmul.f32 %v1415_v41, %v5115_v11  ;;  %v1410_v44 = vmul.f32 %v1402_v43, %v1250_v29  ;;  %v1224_v15 = vmul.f32 0.5, %v5092_v55  ;;  %1630 = vmatpush.bf16.msrb.mxu2 %v1441_v9  ;;  %v1438_v8 = vmul.f32 %v1430_v19, %v6557_v33  ;;  %v3941_v41 = vld [vmem:[%s6463_s3 + $0xe8] sm:$0xff] }
 0x246   : > { %v1416_v32 = vadd.f32 1.0, %v1408_v20  ;;  %v1226_v51 = vmul.f32 0.5, %v5098_v18  ;;  %v1425_v38 = vmul.f32 %v1417_v40, %v1225_v5 }
 0x247   : > { %v1431_v22 = vmul.f32 %v1423_v52, %v6555_v13  ;;  %v1418_v36 = vadd.f32 1.0, %v1410_v44  ;;  %v1442_v27 = vpack.c.bf16 %v1438_v8, %v1436_v7  ;;  %v3942_v7 = vld [vmem:[%s6463_s3 + $0xf0] sm:$0xff]  ;;  %v3943_v44 = vld [vmem:[%s6463_s3 + $0xf8] sm:$0xff] }
 0x248   : > { %v1424_v61 = vmul.f32 %v1416_v32, %v1224_v15  ;;  %v1433_v2 = vmul.f32 %v1425_v38, %v6555_v13  ;;  %v3944_v38 = vld [vmem:[%s6463_s3 + $0x100] sm:$0xff] }
 0x249   : > { %v1426_v63 = vmul.f32 %v1418_v36, %v1226_v51  ;;  %1729 = vmatpush.bf16.msrb.mxu3 %v1442_v27 }
 0x24a   : > { %v1432_v11 = vmul.f32 %v1424_v61, %v6557_v33  ;;  %v1439_v35 = vpack.c.bf16 %v1433_v2, %v1431_v22  ;;  %v3945_v2 = vld [vmem:[%s6463_s3 + $0x108] sm:$0xff] }
 0x24b   : > { %v1434_v31 = vmul.f32 %v1426_v63, %v6557_v33 }
 0x24c   : > { %1631 = vmatpush.bf16.msrb.mxu2 %v1439_v35 }
 0x24d   : > { %v1440_v23 = vpack.c.bf16 %v1434_v31, %v1432_v11 }
 0x24f   : > { %1730 = vmatpush.bf16.msrb.mxu3 %v1440_v23  ;;  %3710 = vmatmul.msk.bf16.vlgmr.msrb.gmra.mxu2 %vm420_vm0, %v3930_v3 }
 0x252   : > { %3728 = vmatmul.msk.bf16.vlgmr.msrb.gmra.mxu3 %vm420_vm0, %v3930_v3 }
 0x25f   : > { %3711 = vmatmul.msk.bf16.gmra.mxu2 %vm420_vm0, %v3931_v37 }
 0x262   : > { %3729 = vmatmul.msk.bf16.gmra.mxu3 %vm420_vm0, %v3931_v37 }
 0x26f   : > { %3712 = vmatmul.msk.bf16.gmra.mxu2 %vm420_vm0, %v3932_v34 }
 0x272   : > { %3730 = vmatmul.msk.bf16.gmra.mxu3 %vm420_vm0, %v3932_v34 }
 0x27f   : > { %3713 = vmatmul.msk.bf16.gmra.mxu2 %vm420_vm0, %v3933_v39 }
 0x282   : > { %3731 = vmatmul.msk.bf16.gmra.mxu3 %vm420_vm0, %v3933_v39 }
 0x28f   : > { %3714 = vmatmul.msk.bf16.gmra.mxu2 %vm420_vm0, %v3934_v6 }
 0x292   : > { %3732 = vmatmul.msk.bf16.gmra.mxu3 %vm420_vm0, %v3934_v6  ;;  %v3946_v6 = vld [vmem:[%s6463_s3 + $0x110] sm:$0xff] }
 0x29f   : > { %3715 = vmatmul.msk.bf16.gmra.mxu2 %vm420_vm0, %v3935_v17 }
 0x2a2   : > { %3733 = vmatmul.msk.bf16.gmra.mxu3 %vm420_vm0, %v3935_v17 }
 0x2af   : > { %3716 = vmatmul.msk.bf16.gmra.mxu2 %vm420_vm0, %v3936_v21 }
 0x2b2   : > { %3734 = vmatmul.msk.bf16.gmra.mxu3 %vm420_vm0, %v3936_v21 }
 0x2bf   : > { %3717 = vmatmul.msk.bf16.gmra.mxu2 %vm420_vm0, %v3937_v0 }
 0x2c2   : > { %3735 = vmatmul.msk.bf16.gmra.mxu3 %vm420_vm0, %v3937_v0 }
 0x2cf   : > { %3718 = vmatmul.msk.bf16.gmra.mxu2 %vm420_vm0, %v3938_v50 }
 0x2d2   : > { %3736 = vmatmul.msk.bf16.gmra.mxu3 %vm420_vm0, %v3938_v50  ;;  %v1633_v14 = vpop.f32.mrf.mxu2 }
 0x2d3   : > { %1822 = vrot.lane.b32.xlu1 %v1633_v14, %s4175_s11  ;;  %v6558_v14 = vld [vmem:[#allocation13_spill] sm:$0xff] }
 0x2d5   : > { %v1732_v54 = vpop.f32.mrf.mxu3 }
 0x2d6   : > { %1830 = vrot.lane.b32.xlu0 %v1732_v54, %s4175_s11 }
 0x2da   : > { %v1635_v28 = vpop.f32.mrf.mxu2 }
 0x2db   : > { %1824 = vrot.lane.b32.xlu2 %v1635_v28, %s4175_s11 }
 0x2dd   : > { %v1734_v49 = vpop.f32.mrf.mxu3 }
 0x2de   : > { %1832 = vrot.lane.b32.xlu1 %v1734_v49, %s4175_s11 }
 0x2df   : > { %3719 = vmatmul.msk.bf16.gmra.mxu2 %vm420_vm0, %v3939_v59 }
 0x2e2   : > { %3737 = vmatmul.msk.bf16.gmra.mxu3 %vm420_vm0, %v3939_v59  ;;  %v1638_v16 = vpop.f32.mrf.mxu2 }
 0x2e3   : > { %1826 = vrot.lane.b32.xlu2 %v1638_v16, %s4175_s11 }
 0x2e5   : > { %v1737_v45 = vpop.f32.mrf.mxu3 }
 0x2e6   : > { %1834 = vrot.lane.b32.xlu0 %v1737_v45, %s4175_s11 }
 0x2ea   : > { %v1640_v53 = vpop.f32.mrf.mxu2 }
 0x2eb   : > { %1828 = vrot.lane.b32.xlu2 %v1640_v53, %s4175_s11 }
 0x2ed   : > { %v1739_v26 = vpop.f32.mrf.mxu3 }
 0x2ee   : > { %1836 = vrot.lane.b32.xlu0 %v1739_v26, %s4175_s11 }
 0x2ef   : > { %3720 = vmatmul.msk.bf16.gmra.mxu2 %vm420_vm0, %v3940_v10 }
 0x2f2   : > { %3738 = vmatmul.msk.bf16.gmra.mxu3 %vm420_vm0, %v3940_v10  ;;  %v1643_v42 = vpop.f32.mrf.mxu2 }
 0x2f3   : > { %1862 = vrot.lane.b32.xlu1 %v1643_v42, %s4177_s13 }
 0x2f5   : > { %v1742_v12 = vpop.f32.mrf.mxu3 }
 0x2f6   : > { %1870 = vrot.lane.b32.xlu0 %v1742_v12, %s4177_s13 }
 0x2fa   : > { %v1645_v1 = vpop.f32.mrf.mxu2 }
 0x2fb   : > { %1864 = vrot.lane.b32.xlu2 %v1645_v1, %s4177_s13 }
 0x2fd   : > { %v1744_v29 = vpop.f32.mrf.mxu3 }
 0x2fe   : > { %1872 = vrot.lane.b32.xlu1 %v1744_v29, %s4177_s13 }
 0x2ff   : > { %3721 = vmatmul.msk.bf16.gmra.mxu2 %vm420_vm0, %v3941_v41 }
 0x302   : > { %3739 = vmatmul.msk.bf16.gmra.mxu3 %vm420_vm0, %v3941_v41  ;;  %v1648_v43 = vpop.f32.mrf.mxu2 }
 0x305   : > { %v1747_v9 = vpop.f32.mrf.mxu3 }
 0x306   : > { %1874 = vrot.lane.b32.xlu2 %v1747_v9, %s4177_s13  ;;  %1866 = vrot.lane.b32.xlu1 %v1648_v43, %s4177_s13  ;;  %v3947_v43 = vld [vmem:[%s6463_s3 + $0x118] sm:$0xff] }
 0x30a   : > { %v1650_v19 = vpop.f32.mrf.mxu2 }
 0x30d   : > { %v1749_v20 = vpop.f32.mrf.mxu3 }
 0x30e   : > { %1876 = vrot.lane.b32.xlu2 %v1749_v20, %s4177_s13  ;;  %1868 = vrot.lane.b32.xlu1 %v1650_v19, %s4177_s13 }
 0x30f   : > { %3722 = vmatmul.msk.bf16.gmra.mxu2 %vm420_vm0, %v3942_v7 }
 0x312   : > { %3740 = vmatmul.msk.bf16.gmra.mxu3 %vm420_vm0, %v3942_v7  ;;  %v1653_v5 = vpop.f32.mrf.mxu2 }
 0x313   : > { %1902 = vrot.lane.b32.xlu0 %v1653_v5, %s4179_s16 }
 0x315   : > { %v1752_v40 = vpop.f32.mrf.mxu3 }
 0x316   : > { %1910 = vrot.lane.b32.xlu2 %v1752_v40, %s4179_s16 }
 0x31a   : > { %v1655_v52 = vpop.f32.mrf.mxu2 }
 0x31b   : > { %1904 = vrot.lane.b32.xlu1 %v1655_v52, %s4179_s16 }
 0x31d   : > { %v1754_v15 = vpop.f32.mrf.mxu3 }
 0x31e   : > { %1912 = vrot.lane.b32.xlu0 %v1754_v15, %s4179_s16 }
 0x31f   : > { %3723 = vmatmul.msk.bf16.gmra.mxu2 %vm420_vm0, %v3943_v44 }
 0x322   : > { %3741 = vmatmul.msk.bf16.gmra.mxu3 %vm420_vm0, %v3943_v44  ;;  %v1658_v8 = vpop.f32.mrf.mxu2 }
 0x325   : > { %v1757_v32 = vpop.f32.mrf.mxu3 }
 0x326   : > { %1914 = vrot.lane.b32.xlu1 %v1757_v32, %s4179_s16  ;;  %1906 = vrot.lane.b32.xlu0 %v1658_v8, %s4179_s16 }
 0x32a   : > { %v1660_v51 = vpop.f32.mrf.mxu2 }
 0x32d   : > { %v1759_v22 = vpop.f32.mrf.mxu3 }
 0x32e   : > { %1916 = vrot.lane.b32.xlu1 %v1759_v22, %s4179_s16  ;;  %1908 = vrot.lane.b32.xlu0 %v1660_v51, %s4179_s16 }
 0x32f   : > { %3724 = vmatmul.msk.bf16.gmra.mxu2 %vm420_vm0, %v3944_v38 }
 0x332   : > { %3742 = vmatmul.msk.bf16.gmra.mxu3 %vm420_vm0, %v3944_v38  ;;  %v1663_v36 = vpop.f32.mrf.mxu2 }
 0x333   : > { %1942 = vrot.lane.b32.xlu2 %v1663_v36, %s4181_s18 }
 0x335   : > { %v1762_v27 = vpop.f32.mrf.mxu3  ;;  %v1825_v39 = vpop.permute.xlu2 %1824 }
 0x336   : > { %1950 = vrot.lane.b32.xlu1 %v1762_v27, %s4181_s18 }
 0x33a   : > { %v1665_v61 = vpop.f32.mrf.mxu2 }
 0x33b   : > { %1944 = vrot.lane.b32.xlu0 %v1665_v61, %s4181_s18 }
 0x33d   : > { %v1764_v63 = vpop.f32.mrf.mxu3  ;;  %v1827_v45 = vpop.permute.xlu2 %1826 }
 0x33e   : > { %1952 = vrot.lane.b32.xlu2 %v1764_v63, %s4181_s18  ;;  %v6559_v63 = vld [vmem:[#allocation17_spill] sm:$0xff] }
 0x33f   : > { %3725 = vmatmul.msk.bf16.gmra.mxu2 %vm420_vm0, %v3945_v2 }
 0x342   : > { %3743 = vmatmul.msk.bf16.gmra.mxu3 %vm420_vm0, %v3945_v2  ;;  %v1668_v11 = vpop.f32.mrf.mxu2 }
 0x345   : > { %v1767_v35 = vpop.f32.mrf.mxu3  ;;  %v1823_v31 = vpop.permute.xlu1 %1822 }
 0x346   : > { %1954 = vrot.lane.b32.xlu0 %v1767_v35, %s4181_s18  ;;  %1946 = vrot.lane.b32.xlu2 %v1668_v11, %s4181_s18  ;;  %v1829_v7 = vpop.permute.xlu2 %1828 }
 0x348   : > { %v1831_v3 = vpop.permute.xlu0 %1830 }
 0x349   : > { %v1838_v23 = vsel %vm691_vm1, %v1823_v31, %v1831_v3  ;;  %v1842_v37 = vsel %vm691_vm1, %v1831_v3, %v1823_v31 }
 0x34a   : > { %v1670_v34 = vpop.f32.mrf.mxu2  ;;  %v1846_v54 = vmul.f32 %v1842_v37, %v6558_v14  ;;  %v1847_v49 = vmul.f32 %v1838_v23, %v4588_v24 }
 0x34d   : > { %v1769_v17 = vpop.f32.mrf.mxu3 }
 0x34e   : > { %1956 = vrot.lane.b32.xlu0 %v1769_v17, %s4181_s18  ;;  %1948 = vrot.lane.b32.xlu2 %v1670_v34, %s4181_s18 }
 0x34f   : > { %3726 = vmatmul.msk.bf16.gmra.mxu2 %vm420_vm0, %v3946_v6 }
 0x350   : > { %v1833_v21 = vpop.permute.xlu1 %1832 }
 0x351   : > { %v1839_v0 = vsel %vm691_vm1, %v1825_v39, %v1833_v21  ;;  %v1843_v50 = vsel %vm691_vm1, %v1833_v21, %v1825_v39 }
 0x352   : > { %3744 = vmatmul.msk.bf16.gmra.mxu3 %vm420_vm0, %v3946_v6  ;;  %v1673_v28 = vpop.f32.mrf.mxu2  ;;  %v1848_v12 = vmul.f32 %v1843_v50, %v6558_v14  ;;  %v1849_v29 = vmul.f32 %v1839_v0, %v4588_v24 }
 0x353   : > { %v1854_v59 = vadd.f32 %v1846_v54, %v1673_v28 }
 0x355   : > { %v1772_v16 = vpop.f32.mrf.mxu3  ;;  %v1865_v22 = vpop.permute.xlu2 %1864 }
 0x356   : > { %v1855_v53 = vadd.f32 %v1847_v49, %v1772_v16 }
 0x358   : > { %v1835_v10 = vpop.permute.xlu0 %1834 }
 0x359   : > { %v1840_v26 = vsel %vm691_vm1, %v1827_v45, %v1835_v10  ;;  %v1844_v42 = vsel %vm691_vm1, %v1835_v10, %v1827_v45 }
 0x35a   : > { %v1675_v1 = vpop.f32.mrf.mxu2  ;;  %v1850_v52 = vmul.f32 %v1844_v42, %v6558_v14  ;;  %v1851_v8 = vmul.f32 %v1840_v26, %v4588_v24 }
 0x35b   : > { %v1856_v41 = vadd.f32 %v1848_v12, %v1675_v1 }
 0x35d   : > { %v1774_v9 = vpop.f32.mrf.mxu3 }
 0x35e   : > { %v1857_v19 = vadd.f32 %v1849_v29, %v1774_v9 }
 0x35f   : > { %3727 = vmatmul.msk.bf16.gmra.mxu2 %vm420_vm0, %v3947_v43 }
 0x360   : > { %v1837_v20 = vpop.permute.xlu0 %1836  ;;  %v1875_v50 = vpop.permute.xlu2 %1874 }
 0x361   : > { %v1841_v5 = vsel %vm691_vm1, %v1829_v7, %v1837_v20  ;;  %v1845_v40 = vsel %vm691_vm1, %v1837_v20, %v1829_v7 }
 0x362   : > { %3745 = vmatmul.msk.bf16.gmra.mxu3 %vm420_vm0, %v3947_v43  ;;  %v1678_v44 = vpop.f32.mrf.mxu2  ;;  %v1852_v35 = vmul.f32 %v1845_v40, %v6558_v14  ;;  %v1853_v34 = vmul.f32 %v1841_v5, %v4588_v24 }
 0x363   : > { %v1858_v15 = vadd.f32 %v1850_v52, %v1678_v44 }
 0x365   : > { %v1777_v32 = vpop.f32.mrf.mxu3  ;;  %v1863_v38 = vpop.permute.xlu1 %1862 }
 0x366   : > { %v1859_v51 = vadd.f32 %v1851_v8, %v1777_v32 }
 0x368   : > { %v1871_v36 = vpop.permute.xlu0 %1870  ;;  %v1877_v29 = vpop.permute.xlu2 %1876 }
 0x369   : > { %v1878_v27 = vsel %vm738_vm3, %v1863_v38, %v1871_v36  ;;  %v1882_v61 = vsel %vm738_vm3, %v1871_v36, %v1863_v38 }
 0x36a   : > { %v1886_v2 = vmul.f32 %v1882_v61, %v4641_v30  ;;  %v1887_v11 = vmul.f32 %v1878_v27, %v6559_v63  ;;  %v1680_v31 = vpop.f32.mrf.mxu2 }
 0x36b   : > { %v1860_v37 = vadd.f32 %v1852_v35, %v1680_v31 }
 0x36c   : > { %v1894_v3 = vadd.f32 %v1886_v2, %v1854_v59  ;;  %v1895_v23 = vadd.f32 %v1887_v11, %v1855_v53 }
 0x36d   : > { %v1779_v39 = vpop.f32.mrf.mxu3 }
 0x36e   : > { %v1861_v6 = vadd.f32 %v1853_v34, %v1779_v39 }
 0x370   : > { %v1873_v17 = vpop.permute.xlu1 %1872  ;;  %v1911_v32 = vpop.permute.xlu2 %1910 }
 0x371   : > { %v1879_v21 = vsel %vm738_vm3, %v1865_v22, %v1873_v17  ;;  %v1883_v0 = vsel %vm738_vm3, %v1873_v17, %v1865_v22 }
 0x372   : > { %v1888_v54 = vmul.f32 %v1883_v0, %v4641_v30  ;;  %v1889_v28 = vmul.f32 %v1879_v21, %v6559_v63  ;;  %v1683_v49 = vpop.f32.mrf.mxu2 }
 0x373   : > { %1982 = vrot.lane.b32.xlu1 %v1683_v49, %s4176_s12 }
 0x374   : > { %v1896_v59 = vadd.f32 %v1888_v54, %v1856_v41  ;;  %v1897_v16 = vadd.f32 %v1889_v28, %v1857_v19 }
 0x375   : > { %v1782_v45 = vpop.f32.mrf.mxu3 }
 0x376   : > { %1990 = vrot.lane.b32.xlu0 %v1782_v45, %s4176_s12 }
 0x378   : > { %v1867_v53 = vpop.permute.xlu1 %1866 }
 0x379   : > { %v1880_v10 = vsel %vm738_vm3, %v1867_v53, %v1875_v50  ;;  %v1884_v26 = vsel %vm738_vm3, %v1875_v50, %v1867_v53 }
 0x37a   : > { %v1890_v42 = vmul.f32 %v1884_v26, %v4641_v30  ;;  %v1891_v12 = vmul.f32 %v1880_v10, %v6559_v63  ;;  %v1685_v1 = vpop.f32.mrf.mxu2 }
 0x37b   : > { %1984 = vrot.lane.b32.xlu2 %v1685_v1, %s4176_s12 }
 0x37c   : > { %v1898_v41 = vadd.f32 %v1890_v42, %v1858_v15  ;;  %v1899_v43 = vadd.f32 %v1891_v12, %v1859_v51 }
 0x37d   : > { %v1784_v9 = vpop.f32.mrf.mxu3 }
 0x37e   : > { %1992 = vrot.lane.b32.xlu1 %v1784_v9, %s4176_s12 }
 0x380   : > { %v1869_v19 = vpop.permute.xlu1 %1868 }
 0x381   : > { %v1881_v7 = vsel %vm738_vm3, %v1869_v19, %v1877_v29  ;;  %v1885_v20 = vsel %vm738_vm3, %v1877_v29, %v1869_v19 }
 0x382   : > { %v1892_v5 = vmul.f32 %v1885_v20, %v4641_v30  ;;  %v1893_v40 = vmul.f32 %v1881_v7, %v6559_v63  ;;  %v1688_v52 = vpop.f32.mrf.mxu2 }
 0x384   : > { %v1900_v44 = vadd.f32 %v1892_v5, %v1860_v37  ;;  %v1901_v15 = vadd.f32 %v1893_v40, %v1861_v6 }
 0x385   : > { %v1787_v8 = vpop.f32.mrf.mxu3  ;;  %v1903_v51 = vpop.permute.xlu0 %1902 }
 0x386   : > { %1994 = vrot.lane.b32.xlu2 %v1787_v8, %s4176_s12  ;;  %1986 = vrot.lane.b32.xlu1 %v1688_v52, %s4176_s12  ;;  %v1918_v38 = vsel %vm786_vm5, %v1903_v51, %v1911_v32  ;;  %v1922_v22 = vsel %vm786_vm5, %v1911_v32, %v1903_v51 }
 0x387   : > { %v1926_v36 = vmul.f32 %v1922_v22, %v4746_v25  ;;  %v1927_v27 = vmul.f32 %v1918_v38, %v4748_v4 }
 0x389   : > { %v1934_v61 = vadd.f32 %v1926_v36, %v1894_v3  ;;  %v1935_v2 = vadd.f32 %v1927_v27, %v1895_v23 }
 0x38a   : > { %v1690_v11 = vpop.f32.mrf.mxu2 }
 0x38d   : > { %v1789_v35 = vpop.f32.mrf.mxu3  ;;  %v1905_v31 = vpop.permute.xlu1 %1904 }
 0x38e   : > { %1996 = vrot.lane.b32.xlu2 %v1789_v35, %s4176_s12  ;;  %1988 = vrot.lane.b32.xlu1 %v1690_v11, %s4176_s12  ;;  %v1943_v9 = vpop.permute.xlu2 %1942 }
 0x390   : > { %v1913_v37 = vpop.permute.xlu0 %1912 }
 0x391   : > { %v1919_v34 = vsel %vm786_vm5, %v1905_v31, %v1913_v37  ;;  %v1923_v39 = vsel %vm786_vm5, %v1913_v37, %v1905_v31 }
 0x392   : > { %v1928_v6 = vmul.f32 %v1923_v39, %v4746_v25  ;;  %v1929_v17 = vmul.f32 %v1919_v34, %v4748_v4  ;;  %v1693_v3 = vpop.f32.mrf.mxu2 }
 0x393   : > { %2022 = vrot.lane.b32.xlu0 %v1693_v3, %s4178_s15 }
 0x394   : > { %v1936_v23 = vadd.f32 %v1928_v6, %v1896_v59  ;;  %v1937_v21 = vadd.f32 %v1929_v17, %v1897_v16 }
 0x395   : > { %v1792_v0 = vpop.f32.mrf.mxu3 }
 0x396   : > { %2030 = vrot.lane.b32.xlu2 %v1792_v0, %s4178_s15 }
 0x398   : > { %v1915_v50 = vpop.permute.xlu1 %1914  ;;  %v1907_v54 = vpop.permute.xlu0 %1906 }
 0x399   : > { %v1920_v28 = vsel %vm786_vm5, %v1907_v54, %v1915_v50  ;;  %v1924_v49 = vsel %vm786_vm5, %v1915_v50, %v1907_v54  ;;  %v1953_v22 = vpop.permute.xlu2 %1952 }
 0x39a   : > { %v1930_v45 = vmul.f32 %v1924_v49, %v4746_v25  ;;  %v1931_v53 = vmul.f32 %v1920_v28, %v4748_v4  ;;  %v1695_v10 = vpop.f32.mrf.mxu2 }
 0x39b   : > { %2024 = vrot.lane.b32.xlu1 %v1695_v10, %s4178_s15 }
 0x39c   : > { %v1938_v59 = vadd.f32 %v1930_v45, %v1898_v41  ;;  %v1939_v16 = vadd.f32 %v1931_v53, %v1899_v43 }
 0x39d   : > { %v1794_v26 = vpop.f32.mrf.mxu3 }
 0x39e   : > { %2032 = vrot.lane.b32.xlu0 %v1794_v26, %s4178_s15 }
 0x3a0   : > { %v1917_v42 = vpop.permute.xlu1 %1916  ;;  %v1909_v12 = vpop.permute.xlu0 %1908 }
 0x3a1   : > { %v1921_v1 = vsel %vm786_vm5, %v1909_v12, %v1917_v42  ;;  %v1925_v29 = vsel %vm786_vm5, %v1917_v42, %v1909_v12  ;;  %v1947_v6 = vpop.permute.xlu2 %1946 }
 0x3a2   : > { %v1932_v19 = vmul.f32 %v1925_v29, %v4746_v25  ;;  %v1933_v7 = vmul.f32 %v1921_v1, %v4748_v4  ;;  %v1698_v41 = vpop.f32.mrf.mxu2 }
 0x3a4   : > { %v1940_v43 = vadd.f32 %v1932_v19, %v1900_v44  ;;  %v1941_v20 = vadd.f32 %v1933_v7, %v1901_v15 }
 0x3a5   : > { %v1797_v5 = vpop.f32.mrf.mxu3 }
 0x3a6   : > { %2034 = vrot.lane.b32.xlu1 %v1797_v5, %s4178_s15  ;;  %2026 = vrot.lane.b32.xlu0 %v1698_v41, %s4178_s15 }
 0x3a8   : > { %v1951_v40 = vpop.permute.xlu1 %1950 }
 0x3a9   : > { %v1958_v52 = vsel %vm834_vm7, %v1943_v9, %v1951_v40  ;;  %v1962_v8 = vsel %vm834_vm7, %v1951_v40, %v1943_v9  ;;  %v1949_v45 = vpop.permute.xlu2 %1948 }
 0x3aa   : > { %v1966_v32 = vmul.f32 %v1962_v8, %v4876_v58  ;;  %v1967_v51 = vmul.f32 %v1958_v52, %v4857_v47  ;;  %v1700_v38 = vpop.f32.mrf.mxu2 }
 0x3ac   : > { %v5488_v44 = vadd.f32 %v1966_v32, %v1934_v61  ;;  %v5490_v15 = vadd.f32 %v1967_v51, %v1935_v2 }
 0x3ad   : > { %v1799_v36 = vpop.f32.mrf.mxu3  ;;  %v1945_v27 = vpop.permute.xlu0 %1944 }
 0x3ae   : > { %2036 = vrot.lane.b32.xlu1 %v1799_v36, %s4178_s15  ;;  %2028 = vrot.lane.b32.xlu0 %v1700_v38, %s4178_s15  ;;  %v1959_v11 = vsel %vm834_vm7, %v1945_v27, %v1953_v22  ;;  %v1963_v35 = vsel %vm834_vm7, %v1953_v22, %v1945_v27  ;;  %v6560_v38 = vld [vmem:[#allocation15_spill] sm:$0xff]  ;;  %v6561_v36 = vld [vmem:[#allocation16_spill] sm:$0xff] }
 0x3af   : > { %v1968_v31 = vmul.f32 %v1963_v35, %v4876_v58  ;;  %v1969_v37 = vmul.f32 %v1959_v11, %v4857_v47  ;;  %v3748_v35 = vld [vmem:[%s6464_s4 + $0x30] sm:$0xff] }
 0x3b1   : > { %v5500_v61 = vadd.f32 %v1968_v31, %v1936_v23  ;;  %v5502_v2 = vadd.f32 %v1969_v37, %v1937_v21 }
 0x3b2   : > { %v1703_v34 = vpop.f32.mrf.mxu2 }
 0x3b3   : > { %2062 = vrot.lane.b32.xlu2 %v1703_v34, %s4180_s17 }
 0x3b5   : > { %v1802_v39 = vpop.f32.mrf.mxu3 }
 0x3b6   : > { %2070 = vrot.lane.b32.xlu1 %v1802_v39, %s4180_s17 }
 0x3b8   : > { %v1955_v17 = vpop.permute.xlu0 %1954 }
 0x3b9   : > { %v1960_v3 = vsel %vm834_vm7, %v1947_v6, %v1955_v17  ;;  %v1964_v0 = vsel %vm834_vm7, %v1955_v17, %v1947_v6 }
 0x3ba   : > { %v1970_v50 = vmul.f32 %v1964_v0, %v4876_v58  ;;  %v1971_v23 = vmul.f32 %v1960_v3, %v4857_v47  ;;  %v1705_v21 = vpop.f32.mrf.mxu2 }
 0x3bb   : > { %2064 = vrot.lane.b32.xlu0 %v1705_v21, %s4180_s17 }
 0x3bc   : > { %v5512_v54 = vadd.f32 %v1970_v50, %v1938_v59  ;;  %v5514_v28 = vadd.f32 %v1971_v23, %v1939_v16  ;;  %v3753_v50 = vld [vmem:[%s6465_s5 + $0x38] sm:$0xff]  ;;  %v3752_v23 = vld [vmem:[%s6465_s5 + $0x30] sm:$0xff] }
 0x3bd   : > { %v1804_v49 = vpop.f32.mrf.mxu3 }
 0x3be   : > { %2072 = vrot.lane.b32.xlu2 %v1804_v49, %s4180_s17 }
 0x3c0   : > { %v1957_v53 = vpop.permute.xlu0 %1956 }
 0x3c1   : > { %v1961_v10 = vsel %vm834_vm7, %v1949_v45, %v1957_v53  ;;  %v1965_v26 = vsel %vm834_vm7, %v1957_v53, %v1949_v45 }
 0x3c2   : > { %v1972_v42 = vmul.f32 %v1965_v26, %v4876_v58  ;;  %v1973_v59 = vmul.f32 %v1961_v10, %v4857_v47  ;;  %v1708_v12 = vpop.f32.mrf.mxu2 }
 0x3c4   : > { %v5524_v16 = vadd.f32 %v1972_v42, %v1940_v43  ;;  %v5526_v1 = vadd.f32 %v1973_v59, %v1941_v20  ;;  %v3746_v42 = vld [vmem:[%s6464_s4 + $0x20] sm:$0xff] }
 0x3c5   : > { %v1807_v29 = vpop.f32.mrf.mxu3 }
 0x3c6   : > { %2074 = vrot.lane.b32.xlu0 %v1807_v29, %s4180_s17  ;;  %2066 = vrot.lane.b32.xlu2 %v1708_v12, %s4180_s17  ;;  %v3747_v12 = vld [vmem:[%s6464_s4 + $0x28] sm:$0xff] }
 0x3ca   : > { %v1710_v9 = vpop.f32.mrf.mxu2 }
 0x3cd   : > { %v1809_v19 = vpop.f32.mrf.mxu3 }
 0x3ce   : > { %2076 = vrot.lane.b32.xlu0 %v1809_v19, %s4180_s17  ;;  %2068 = vrot.lane.b32.xlu2 %v1710_v9, %s4180_s17  ;;  %v3751_v19 = vld [vmem:[%s6465_s5 + $0x28] sm:$0xff] }
 0x3d2   : > { %v1713_v7 = vpop.f32.mrf.mxu2 }
 0x3d3   : > { %2102 = vrot.lane.b32.xlu1 %v1713_v7, %s4182_s19 }
 0x3d5   : > { %v1812_v41 = vpop.f32.mrf.mxu3  ;;  %v1985_v39 = vpop.permute.xlu2 %1984 }
 0x3d6   : > { %2110 = vrot.lane.b32.xlu0 %v1812_v41, %s4182_s19 }
 0x3da   : > { %v1715_v43 = vpop.f32.mrf.mxu2 }
 0x3db   : > { %2104 = vrot.lane.b32.xlu2 %v1715_v43, %s4182_s19 }
 0x3dd   : > { %v1814_v20 = vpop.f32.mrf.mxu3 }
 0x3de   : > { %2112 = vrot.lane.b32.xlu1 %v1814_v20, %s4182_s19 }
 0x3e0   : > { %v1995_v45 = vpop.permute.xlu2 %1994 }
 0x3e2   : > { %v1718_v5 = vpop.f32.mrf.mxu2 }
 0x3e5   : > { %v1817_v40 = vpop.f32.mrf.mxu3  ;;  %v1983_v52 = vpop.permute.xlu1 %1982 }
 0x3e6   : > { %2114 = vrot.lane.b32.xlu2 %v1817_v40, %s4182_s19  ;;  %2106 = vrot.lane.b32.xlu1 %v1718_v5, %s4182_s19 }
 0x3e8   : > { %v1991_v8 = vpop.permute.xlu0 %1990  ;;  %v1997_v43 = vpop.permute.xlu2 %1996 }
 0x3e9   : > { %v1998_v32 = vsel %vm882_vm2, %v1983_v52, %v1991_v8  ;;  %v2002_v51 = vsel %vm882_vm2, %v1991_v8, %v1983_v52 }
 0x3ea   : > { %v2006_v22 = vmul.f32 %v1998_v32, %v6560_v38  ;;  %v2007_v27 = vmul.f32 %v2002_v51, %v6561_v36  ;;  %v1720_v11 = vpop.f32.mrf.mxu2 }
 0x3eb   : > { %2108 = vrot.lane.b32.xlu0 %v1720_v11, %s4182_s19 }
 0x3ec   : > { %v5548_v31 = vadd.f32 %v2006_v22, %v5488_v44  ;;  %v5551_v37 = vadd.f32 %v2007_v27, %v5490_v15  ;;  %v3749_v44 = vld [vmem:[%s6464_s4 + $0x38] sm:$0xff] }
 0x3ed   : > { %v1819_v34 = vpop.f32.mrf.mxu3 }
 0x3ee   : > { %2253 = vperm.xlu2 %4023, %v3748_v35   ;;  %2116 = vrot.lane.b32.xlu1 %v1819_v34, %s4182_s19 }
 0x3f0   : > { %v1993_v6 = vpop.permute.xlu1 %1992  ;;  %v2031_v40 = vpop.permute.xlu2 %2030 }
 0x3f1   : > { %v1999_v17 = vsel %vm882_vm2, %v1985_v39, %v1993_v6  ;;  %v2003_v3 = vsel %vm882_vm2, %v1993_v6, %v1985_v39 }
 0x3f2   : > { %v2008_v15 = vmul.f32 %v1999_v17, %v6560_v38  ;;  %v2009_v0 = vmul.f32 %v2003_v3, %v6561_v36 }
 0x3f3   : > { %2258 = vperm.xlu0 %4024, %v3749_v44  }
 0x3f4   : > { %v2016_v21 = vadd.f32 %v2008_v15, %v5500_v61  ;;  %v2017_v49 = vadd.f32 %v2009_v0, %v5502_v2  ;;  %v3750_v2 = vld [vmem:[%s6465_s5 + $0x20] sm:$0xff]  ;;  %v6562_v0 = vld [vmem:[#allocation19_spill] sm:$0xff] }
 0x3f6   : > { %2291 = vperm.xlu2 %4023, %v3753_v50   ;;  %2286 = vperm.xlu1 %4022, %v3752_v23  }
 0x3f8   : > { %v1987_v53 = vpop.permute.xlu1 %1986 }
 0x3f9   : > { %v2000_v10 = vsel %vm882_vm2, %v1987_v53, %v1995_v45  ;;  %v2004_v26 = vsel %vm882_vm2, %v1995_v45, %v1987_v53 }
 0x3fa   : > { %v2010_v59 = vmul.f32 %v2000_v10, %v6560_v38  ;;  %v2011_v61 = vmul.f32 %v2004_v26, %v6561_v36 }
 0x3fb   : > { %2243 = vperm.xlu0 %4024, %v3746_v42  }
 0x3fc   : > { %v5588_v29 = vadd.f32 %v2010_v59, %v5512_v54  ;;  %v5591_v9 = vadd.f32 %v2011_v61, %v5514_v28 }
 0x3fe   : > { %2276 = vperm.xlu2 %4023, %v3750_v2   ;;  %2248 = vperm.xlu1 %4022, %v3747_v12  }
 0x400   : > { %v1989_v20 = vpop.permute.xlu1 %1988 }
 0x403   : > { %2281 = vperm.xlu0 %4024, %v3751_v19  }
 0x405   : > { %v2023_v7 = vpop.permute.xlu0 %2022 }
 0x406   : > { %v2038_v39 = vsel %vm930_vm4, %v2023_v7, %v2031_v40  ;;  %v2042_v6 = vsel %vm930_vm4, %v2031_v40, %v2023_v7 }
 0x407   : > { %v2046_v50 = vmul.f32 %v2038_v39, %v6562_v0  ;;  %v2047_v23 = vmul.f32 %v2042_v6, %v4718_v48  ;;  %v6563_v39 = vld [vmem:[#allocation8_spill] sm:$0xff] }
 0x40d   : > { %v2025_v52 = vpop.permute.xlu1 %2024  ;;  %v2063_v8 = vpop.permute.xlu2 %2062 }
 0x410   : > { %v2033_v41 = vpop.permute.xlu0 %2032 }
 0x411   : > { %v2039_v44 = vsel %vm930_vm4, %v2025_v52, %v2033_v41  ;;  %v2043_v15 = vsel %vm930_vm4, %v2033_v41, %v2025_v52  ;;  %v2054_v52 = vadd.f32 %v2046_v50, %v5548_v31 }
 0x412   : > { %v2048_v59 = vmul.f32 %v2039_v44, %v6562_v0  ;;  %v2049_v61 = vmul.f32 %v2043_v15, %v4718_v48  ;;  %v6564_v44 = vld [vmem:[#allocation12_spill] sm:$0xff] }
 0x418   : > { %v2027_v5 = vpop.permute.xlu0 %2026  ;;  %v2035_v28 = vpop.permute.xlu1 %2034 }
 0x419   : > { %v2073_v51 = vpop.permute.xlu2 %2072 }
 0x420   : > { %v5596_v54 = vpop.permute.xlu0 %2028  ;;  %v5598_v22 = vpop.permute.xlu1 %2036 }
 0x421   : > { %v2067_v11 = vpop.permute.xlu2 %2066 }
 0x428   : > { %v2071_v35 = vpop.permute.xlu1 %2070 }
 0x429   : > { %v5606_v17 = vpop.permute.xlu2 %2068  ;;  %v2078_v53 = vsel %vm978_vm6, %v2063_v8, %v2071_v35  ;;  %v2082_v10 = vsel %vm978_vm6, %v2071_v35, %v2063_v8  ;;  %v2055_v8 = vadd.f32 %v2047_v23, %v5551_v37 }
 0x42a   : > { %v2086_v19 = vmul.f32 %v2078_v53, %v4815_v56  ;;  %v2087_v7 = vmul.f32 %v2082_v10, %v4824_v60 }
 0x42c   : > { %v2094_v53 = vadd.f32 %v2086_v19, %v2054_v52  ;;  %v2095_v10 = vadd.f32 %v2087_v7, %v2055_v8 }
 0x42d   : > { %v2065_v32 = vpop.permute.xlu0 %2064 }
 0x42e   : > { %v2079_v26 = vsel %vm978_vm6, %v2065_v32, %v2073_v51  ;;  %v2083_v42 = vsel %vm978_vm6, %v2073_v51, %v2065_v32  ;;  %v2056_v32 = vadd.f32 %v2048_v59, %v2016_v21  ;;  %v2057_v51 = vadd.f32 %v2049_v61, %v2017_v49 }
 0x42f   : > { %v2088_v41 = vmul.f32 %v2079_v26, %v4815_v56  ;;  %v2089_v40 = vmul.f32 %v2083_v42, %v4824_v60  ;;  %v2001_v61 = vsel %vm882_vm2, %v1989_v20, %v1997_v43 }
 0x431   : > { %v2096_v26 = vadd.f32 %v2088_v41, %v2056_v32  ;;  %v2097_v42 = vadd.f32 %v2089_v40, %v2057_v51  ;;  %v6565_v40 = vld [vmem:[#allocation18_spill] sm:$0xff] }
 0x435   : > { %v2105_v35 = vpop.permute.xlu2 %2104 }
 0x438   : > { %v2075_v27 = vpop.permute.xlu0 %2074 }
 0x439   : > { %v2080_v37 = vsel %vm978_vm6, %v2067_v11, %v2075_v27  ;;  %v2084_v21 = vsel %vm978_vm6, %v2075_v27, %v2067_v11 }
 0x43a   : > { %v2090_v7 = vmul.f32 %v2080_v37, %v4815_v56  ;;  %v2091_v41 = vmul.f32 %v2084_v21, %v4824_v60 }
 0x440   : > { %v5600_v34 = vpop.permute.xlu0 %2076 }
 0x445   : > { %v2103_v3 = vpop.permute.xlu1 %2102 }
 0x448   : > { %v2111_v45 = vpop.permute.xlu0 %2110 }
 0x449   : > { %v2118_v2 = vsel %vm1026_vm8, %v2103_v3, %v2111_v45  ;;  %v2122_v12 = vsel %vm1026_vm8, %v2111_v45, %v2103_v3  ;;  %v2040_v3 = vsel %vm930_vm4, %v2027_v5, %v2035_v28  ;;  %v2044_v45 = vsel %vm930_vm4, %v2035_v28, %v2027_v5 }
 0x44a   : > { %v2126_v6 = vmul.f32 %v2118_v2, %v6563_v39  ;;  %v2127_v15 = vmul.f32 %v2122_v12, %v6564_v44  ;;  %v2005_v2 = vsel %vm882_vm2, %v1997_v43, %v1989_v20  ;;  %v2050_v27 = vmul.f32 %v2040_v3, %v6562_v0 }
 0x44b   : > { %v2051_v11 = vmul.f32 %v2044_v45, %v4718_v48  ;;  %v2012_v20 = vmul.f32 %v2001_v61, %v6560_v38  ;;  %v2013_v51 = vmul.f32 %v2005_v2, %v6561_v36  ;;  %v6567_v2 = vld [vmem:[#allocation11_spill] sm:$0xff] }
 0x44c   : > { %v2134_v23 = vadd.f32 %v2126_v6, %v2094_v53  ;;  %v2135_v59 = vadd.f32 %v2127_v15, %v2095_v10  ;;  %v2115_v15 = vpop.permute.xlu2 %2114 }
 0x44d   : > { %v2059_v6 = vadd.f32 %v2051_v11, %v5591_v9 }
 0x44e   : > { %v5659_v52 = vadd.f32 %v2134_v23, %v6565_v40  ;;  %v5662_v8 = vadd.f32 %v2135_v59, %v5092_v55  ;;  %v2021_v23 = vadd.f32 %v2013_v51, %v5526_v1 }
 0x44f   : > { %v2099_v10 = vadd.f32 %v2091_v41, %v2059_v6 }
 0x450   : > { %v2113_v31 = vpop.permute.xlu1 %2112 }
 0x451   : > { %v2119_v49 = vsel %vm1026_vm8, %v2105_v35, %v2113_v31  ;;  %v2123_v50 = vsel %vm1026_vm8, %v2113_v31, %v2105_v35  ;;  %v2058_v35 = vadd.f32 %v2050_v27, %v5588_v29  ;;  %v2045_v29 = vsel %vm930_vm4, %v5598_v22, %v5596_v54 }
 0x452   : > { %v2128_v5 = vmul.f32 %v2119_v49, %v6563_v39  ;;  %v2129_v28 = vmul.f32 %v2123_v50, %v6564_v44  ;;  %v2081_v31 = vsel %vm978_vm6, %v5606_v17, %v5600_v34  ;;  %v2053_v37 = vmul.f32 %v2045_v29, %v4718_v48 }
 0x453   : > { %v2098_v53 = vadd.f32 %v2090_v7, %v2058_v35  ;;  %v2020_v50 = vadd.f32 %v2012_v20, %v5524_v16  ;;  %v2092_v59 = vmul.f32 %v2081_v31, %v4815_v56 }
 0x454   : > { %v2136_v12 = vadd.f32 %v2128_v5, %v2096_v26  ;;  %v2137_v19 = vadd.f32 %v2129_v28, %v2097_v42  ;;  %v6566_v28 = vld [vmem:[#allocation10_spill] sm:$0xff] }
 0x456   : > { %v5665_v32 = vadd.f32 %v2136_v12, %v5096_v46  ;;  %v5668_v43 = vadd.f32 %v2137_v19, %v5098_v18  ;;  %v2041_v18 = vsel %vm930_vm4, %v5596_v54, %v5598_v22  ;;  %v2085_v54 = vsel %vm978_vm6, %v5600_v34, %v5606_v17 }
 0x457   : > { %v2052_v22 = vmul.f32 %v2041_v18, %v6562_v0  ;;  %v2093_v5 = vmul.f32 %v2085_v54, %v4824_v60  ;;  %v2061_v17 = vadd.f32 %v2053_v37, %v2021_v23  ;;  %v6569_v18 = vld [vmem:[#allocation9_spill] sm:$0xff] }
 0x458   : > { %v2150_v3 = vadd.f32 %v5665_v32, %v5659_v52  ;;  %v2159_v55 = vadd.f32 %v5668_v43, %v5662_v8  ;;  %v2107_v46 = vpop.permute.xlu1 %2106 }
 0x459   : > { %v2120_v9 = vsel %vm1026_vm8, %v2107_v46, %v2115_v15  ;;  %v2124_v45 = vsel %vm1026_vm8, %v2115_v15, %v2107_v46  ;;  %v2060_v34 = vadd.f32 %v2052_v22, %v2020_v50  ;;  %v2101_v40 = vadd.f32 %v2093_v5, %v2061_v17  ;;  %v6568_v15 = vld [vmem:[#allocation14_spill] sm:$0xff]  ;;  %v6570_v50 = vld [vmem:[#allocation7_spill] sm:$0xff] }
 0x45a   : > { %v2130_v26 = vmul.f32 %v2120_v9, %v6563_v39  ;;  %v2131_v42 = vmul.f32 %v2124_v45, %v6564_v44 }
 0x45b   : > { %v2100_v1 = vadd.f32 %v2092_v59, %v2060_v34 }
 0x45c   : > { %v2138_v21 = vadd.f32 %v2130_v26, %v2098_v53  ;;  %v2139_v49 = vadd.f32 %v2131_v42, %v2099_v10 }
 0x45d   : > { %v2109_v11 = vpop.permute.xlu0 %2108 }
 0x45e   : > { %v2146_v61 = vadd.f32 %v2138_v21, %v6566_v28  ;;  %v2147_v27 = vadd.f32 %v2139_v49, %v6567_v2 }
 0x460   : > { %v2151_v12 = vadd.f32 %v2150_v3, %v2146_v61  ;;  %v2160_v19 = vadd.f32 %v2159_v55, %v2147_v27  ;;  %v2117_v7 = vpop.permute.xlu1 %2116 }
 0x461   : > { %v2121_v41 = vsel %vm1026_vm8, %v2109_v11, %v2117_v7  ;;  %v2125_v16 = vsel %vm1026_vm8, %v2117_v7, %v2109_v11 }
 0x462   : > { %v2132_v20 = vmul.f32 %v2121_v41, %v6563_v39  ;;  %v2133_v51 = vmul.f32 %v2125_v16, %v6564_v44 }
 0x464   : > { %v2140_v35 = vadd.f32 %v2132_v20, %v2100_v1  ;;  %v2141_v6 = vadd.f32 %v2133_v51, %v2101_v40 }
 0x466   : > { %v2148_v46 = vadd.f32 %v2140_v35, %v6568_v15  ;;  %v2149_v3 = vadd.f32 %v2141_v6, %v6569_v18 }
 0x468   : > { %v2152_v55 = vadd.f32 %v2151_v12, %v2148_v46  ;;  %v2161_v29 = vadd.f32 %v2160_v19, %v2149_v3 }
 0x46a   : > { %v2153_v9 = vrot.slane %v2152_v55, 4  ;;  %v2162_v45 = vrot.slane %v2161_v29, 4 }
 0x46c   : > { %v2154_v53 = vadd.f32 %v2153_v9, %v2152_v55  ;;  %v2163_v10 = vadd.f32 %v2162_v45, %v2161_v29 }
 0x46e   : > { %v2155_v26 = vrot.slane %v2154_v53, 2  ;;  %v2164_v42 = vrot.slane %v2163_v10, 2 }
 0x470   : > { %v2156_v31 = vadd.f32 %v2155_v26, %v2154_v53  ;;  %v2165_v54 = vadd.f32 %v2164_v42, %v2163_v10 }
 0x472   : > { %v2157_v22 = vrot.slane %v2156_v31, 1  ;;  %v2166_v37 = vrot.slane %v2165_v54, 1 }
 0x474   : > { %v2158_v21 = vadd.f32 %v2157_v22, %v2156_v31  ;;  %v2167_v49 = vadd.f32 %v2166_v37, %v2165_v54 }
 0x476   : > { %v2168_v23 = vmul.f32 %v2158_v21, %v6570_v50  ;;  %v2169_v59 = vmul.f32 %v2167_v49, %v6570_v50  ;;  %v2254_v21 = vpop.permute.xlu2 %2253 }
 0x478   : > { %v5718_v5 = vsub.f32 %v2148_v46, %v2168_v23  ;;  %v5720_v28 = vsub.f32 %v2149_v3, %v2169_v59  ;;  %v5723_v2 = vsub.f32 %v5659_v52, %v2168_v23  ;;  %v5726_v11 = vsub.f32 %v5662_v8, %v2169_v59 }
 0x479   : > { %v2172_v34 = vsub.f32 %v5665_v32, %v2168_v23  ;;  %v5730_v17 = vsub.f32 %v5668_v43, %v2169_v59  ;;  %v2174_v12 = vsub.f32 %v2146_v61, %v2168_v23  ;;  %v2175_v19 = vsub.f32 %v2147_v27, %v2169_v59 }
 0x47a   : > { %v2178_v7 = vmul.f32 %v5723_v2, %v5723_v2  ;;  %v2179_v41 = vmul.f32 %v5726_v11, %v5726_v11  ;;  %v2184_v32 = vmul.f32 %v5718_v5, %v5718_v5  ;;  %v2185_v43 = vmul.f32 %v5720_v28, %v5720_v28 }
 0x47b   : > { %v2180_v16 = vmul.f32 %v2172_v34, %v2172_v34  ;;  %v2181_v52 = vmul.f32 %v5730_v17, %v5730_v17  ;;  %v2182_v1 = vmul.f32 %v2174_v12, %v2174_v12  ;;  %v2183_v8 = vmul.f32 %v2175_v19, %v2175_v19 }
 0x47d   : > { %v2186_v40 = vadd.f32 %v2180_v16, %v2178_v7  ;;  %v2195_v20 = vadd.f32 %v2181_v52, %v2179_v41  ;;  %v2259_v41 = vpop.permute.xlu0 %2258 }
 0x47f   : > { %v2187_v61 = vadd.f32 %v2186_v40, %v2182_v1  ;;  %v2196_v27 = vadd.f32 %v2195_v20, %v2183_v8  ;;  %v2287_v20 = vpop.permute.xlu1 %2286 }
 0x481   : > { %v2188_v51 = vadd.f32 %v2187_v61, %v2184_v32  ;;  %v2197_v35 = vadd.f32 %v2196_v27, %v2185_v43  ;;  %v2292_v43 = vpop.permute.xlu2 %2291 }
 0x483   : > { %v2189_v6 = vrot.slane %v2188_v51, 4  ;;  %v2198_v15 = vrot.slane %v2197_v35, 4 }
 0x485   : > { %v2190_v46 = vadd.f32 %v2189_v6, %v2188_v51  ;;  %v2199_v18 = vadd.f32 %v2198_v15, %v2197_v35 }
 0x487   : > { %v2191_v3 = vrot.slane %v2190_v46, 2  ;;  %v2200_v55 = vrot.slane %v2199_v18, 2 }
 0x489   : > { %v2192_v29 = vadd.f32 %v2191_v3, %v2190_v46  ;;  %v2201_v9 = vadd.f32 %v2200_v55, %v2199_v18 }
 0x48b   : > { %v2193_v45 = vrot.slane %v2192_v29, 1  ;;  %v2202_v53 = vrot.slane %v2201_v9, 1 }
 0x48d   : > { %v2194_v10 = vadd.f32 %v2193_v45, %v2192_v29  ;;  %v2203_v26 = vadd.f32 %v2202_v53, %v2201_v9  ;;  %v2244_v29 = vpop.permute.xlu0 %2243 }
 0x48f   : > { %v2204_v42 = vmul.f32 %v2194_v10, %v6570_v50  ;;  %v2205_v31 = vmul.f32 %v2203_v26, %v6570_v50 }
 0x491   : > { %v2206_v54 = vadd.f32 1e-06, %v2204_v42  ;;  %v2207_v22 = vadd.f32 1e-06, %v2205_v31  ;;  %v2249_v31 = vpop.permute.xlu1 %2248 }
 0x493   : > { %4063 = vrsqrt.f32 %v2206_v54  ;;  %vm2214_vm12 = vweird.f32 %v2206_v54  ;;  %vm2224_vm14 = vweird.f32 %v2207_v22 }
 0x494   : > { %4065 = vrsqrt.f32 %v2207_v22 }
 0x499   : > { %v4064_v37 = vpop.eup %4063 }
 0x49a   : > { %v4066_v49 = vpop.eup %4065  ;;  %v2209_v23 = vmul.f32 %v4064_v37, %v2206_v54  ;;  %vm2215_vm10 = vweird.f32 %v4064_v37 }
 0x49b   : > { %v2219_v59 = vmul.f32 %v4066_v49, %v2207_v22  ;;  %vm2225_vm11 = vweird.f32 %v4066_v49  ;;  %vm2216_vm13 = vmor %vm2214_vm12, %vm2215_vm10  ;;  %v2277_v22 = vpop.permute.xlu2 %2276 }
 0x49c   : > { %v2210_v7 = vmul.f32 %v4064_v37, %v2209_v23  ;;  %vm2226_vm15 = vmor %vm2224_vm14, %vm2225_vm11 }
 0x49d   : > { %v2220_v16 = vmul.f32 %v4066_v49, %v2219_v59 }
 0x49e   : > { %v2211_v52 = vmul.f32 0.5, %v2210_v7 }
 0x49f   : > { %v2221_v1 = vmul.f32 0.5, %v2220_v16 }
 0x4a0   : > { %v2212_v8 = vsub.f32 1.5, %v2211_v52 }
 0x4a1   : > { %v2222_v40 = vsub.f32 1.5, %v2221_v1 }
 0x4a2   : > { %v2213_v32 = vmul.f32 %v4064_v37, %v2212_v8 }
 0x4a3   : > { %v2223_v61 = vmul.f32 %v4066_v49, %v2222_v40 }
 0x4a4   : > { %v2217_v27 = vsel %vm2216_vm13, %v4064_v37, %v2213_v32 }
 0x4a5   : > { %v2227_v51 = vsel %vm2226_vm15, %v4066_v49, %v2223_v61  ;;  %v2232_v35 = vmul.f32 %v2217_v27, %v2174_v12  ;;  %v2234_v6 = vmul.f32 %v2217_v27, %v5718_v5  ;;  %v2230_v15 = vmul.f32 %v2217_v27, %v2172_v34  ;;  %v2282_v61 = vpop.permute.xlu0 %2281 }
 0x4a6   : > { %v2233_v46 = vmul.f32 %v2227_v51, %v2175_v19  ;;  %v2235_v18 = vmul.f32 %v2227_v51, %v5720_v28  ;;  %v2231_v3 = vmul.f32 %v2227_v51, %v5730_v17  ;;  %v2228_v55 = vmul.f32 %v2217_v27, %v5723_v2 }
 0x4a7   : > { %v2265_v9 = vmul.f32 %v2254_v21, %v2232_v35  ;;  %v2267_v45 = vmul.f32 %v2259_v41, %v2234_v6  ;;  %v2229_v53 = vmul.f32 %v2227_v51, %v5726_v11  ;;  %v2263_v49 = vmul.f32 %v2249_v31, %v2230_v15 }
 0x4a8   : > { %v2266_v10 = vmul.f32 %v2254_v21, %v2233_v46  ;;  %v2268_v26 = vmul.f32 %v2259_v41, %v2235_v18  ;;  %v2261_v28 = vmul.f32 %v2244_v29, %v2228_v55  ;;  %v2264_v7 = vmul.f32 %v2249_v31, %v2231_v3 }
 0x4a9   : > { %v5749_v42 = vadd.f32 %v2287_v20, %v2265_v9  ;;  %v5751_v12 = vadd.f32 %v2292_v43, %v2267_v45  ;;  %v2262_v54 = vmul.f32 %v2244_v29, %v2229_v53  ;;  %v5777_v6 = vadd.f32 %v2282_v61, %v2263_v49 }
 0x4aa   : > { %v5753_v5 = vadd.f32 %v2287_v20, %v2266_v10  ;;  %v5755_v34 = vadd.f32 %v2292_v43, %v2268_v26  ;;  %v5773_v41 = vadd.f32 %v2277_v22, %v2261_v28  ;;  %v5782_v3 = vadd.f32 %v2282_v61, %v2264_v7 }
 0x4ab   : > { %6571 = vst [vmem:[#allocation5_spill] sm:$0xff] %v5749_v42  ;;  %v5758_v17 = vmul.f32 0.70710677, %v5749_v42  ;;  %v5761_v2 = vmul.f32 0.70710677, %v5751_v12  ;;  %v5775_v43 = vadd.f32 %v2277_v22, %v2262_v54  ;;  %v5780_v15 = vmul.f32 0.5, %v5749_v42 }
 0x4ac   : > { %6572 = vst [vmem:[#allocation6_spill] sm:$0xff] %v5751_v12  ;;  %v5764_v19 = vmul.f32 0.70710677, %v5753_v5  ;;  %v5767_v11 = vmul.f32 0.70710677, %v5755_v34  ;;  %v5785_v55 = vmul.f32 0.5, %v5753_v5 }
 0x4ad   : > { %6573 = vst [vmem:[#allocation13_spill] sm:$0xff] %v5753_v5  ;;  %v2338_v37 = vand.u32 2147483647, %v5758_v17  ;;  %v2340_v21 = vand.u32 2147483647, %v5761_v2  ;;  %vm2322_vm9 = vcmp.lt.f32.partialorder %v5758_v17, 0.0 }
 0x4ae   : > { %6574 = vst [vmem:[#allocation17_spill] sm:$0xff] %v5755_v34  ;;  %v2339_v23 = vand.u32 2147483647, %v5764_v19  ;;  %v2341_v59 = vand.u32 2147483647, %v5767_v11  ;;  %vm2323_vm10 = vcmp.lt.f32.partialorder %v5764_v19, 0.0 }
 0x4af   : > { %6575 = vst [vmem:[#allocation18_spill] sm:$0xff] %v5773_v41  ;;  %v2346_v16 = vmul.f32 0.3275911, %v2338_v37  ;;  %v2442_v52 = vsub.f32 0.0, %v2338_v37  ;;  %v2348_v1 = vmul.f32 0.3275911, %v2340_v21 }
 0x4b0   : > { %v2444_v8 = vsub.f32 0.0, %v2340_v21  ;;  %v2347_v40 = vmul.f32 0.3275911, %v2339_v23  ;;  %v2443_v20 = vsub.f32 0.0, %v2339_v23  ;;  %v2445_v32 = vsub.f32 0.0, %v2341_v59 }
 0x4b1   : > { %v2354_v27 = vadd.f32 1.0, %v2346_v16  ;;  %v2450_v51 = vmul.f32 %v2442_v52, %v2338_v37  ;;  %v2349_v35 = vmul.f32 0.3275911, %v2341_v59  ;;  %v2356_v29 = vadd.f32 1.0, %v2348_v1 }
 0x4b2   : > { %v2355_v46 = vadd.f32 1.0, %v2347_v40  ;;  %v2451_v18 = vmul.f32 %v2443_v20, %v2339_v23  ;;  %v2452_v9 = vmul.f32 %v2444_v8, %v2340_v21  ;;  %v5788_v45 = vmul.f32 0.70710677, %v5773_v41 }
 0x4b3   : > { %v2462_v53 = vmul.f32 1.442695, %v2450_v51  ;;  %v2453_v10 = vmul.f32 %v2445_v32, %v2341_v59  ;;  %v5792_v26 = vmul.f32 0.70710677, %v5775_v43  ;;  %4067 = vrcp.f32 %v2354_v27 }
 0x4b4   : > { %v2357_v28 = vadd.f32 1.0, %v2349_v35  ;;  %v2334_v31 = vand.u32 2147483647, %v5788_v45  ;;  %v5796_v54 = vmul.f32 0.70710677, %v5777_v6  ;;  %4069 = vrcp.f32 %v2355_v46 }
 0x4b5   : > { %v2464_v22 = vmul.f32 1.442695, %v2451_v18  ;;  %v2335_v37 = vand.u32 2147483647, %v5792_v26  ;;  %v5800_v21 = vmul.f32 0.70710677, %v5782_v3  ;;  %4071 = vrcp.f32 %v2356_v29 }
 0x4b6   : > { %v2466_v49 = vmul.f32 1.442695, %v2452_v9  ;;  %v2342_v23 = vmul.f32 0.3275911, %v2334_v31  ;;  %v2438_v59 = vsub.f32 0.0, %v2334_v31  ;;  %4073 = vpow2.f32 %v2462_v53 }
 0x4b7   : > { %v2468_v7 = vmul.f32 1.442695, %v2453_v10  ;;  %v2343_v16 = vmul.f32 0.3275911, %v2335_v37  ;;  %v2439_v52 = vsub.f32 0.0, %v2335_v37  ;;  %4075 = vrcp.f32 %v2357_v28 }
 0x4b8   : > { %v2350_v1 = vadd.f32 1.0, %v2342_v23  ;;  %v2446_v8 = vmul.f32 %v2438_v59, %v2334_v31  ;;  %v2336_v40 = vand.u32 2147483647, %v5796_v54  ;;  %4077 = vpow2.f32 %v2464_v22 }
 0x4b9   : > { %v2351_v20 = vadd.f32 1.0, %v2343_v16  ;;  %v2337_v32 = vand.u32 2147483647, %v5800_v21  ;;  %v5805_v61 = vpop.eup %4067  ;;  %4079 = vpow2.f32 %v2466_v49  ;;  %v2447_v27 = vmul.f32 %v2439_v52, %v2335_v37 }
 0x4ba   : > { %v2344_v51 = vmul.f32 0.3275911, %v2336_v40  ;;  %v2440_v35 = vsub.f32 0.0, %v2336_v40  ;;  %v5807_v46 = vpop.eup %4069  ;;  %4081 = vrcp.f32 %v2350_v1  ;;  %v2454_v18 = vmul.f32 1.442695, %v2446_v8 }
 0x4bb   : > { %v2345_v29 = vmul.f32 0.3275911, %v2337_v32  ;;  %v2441_v9 = vsub.f32 0.0, %v2337_v32  ;;  %v5809_v53 = vpop.eup %4071  ;;  %4083 = vpow2.f32 %v2468_v7  ;;  %v5812_v31 = vmul.f32 0.5, %v5751_v12 }
 0x4bc   : > { %v2352_v10 = vadd.f32 1.0, %v2344_v51  ;;  %v2448_v28 = vmul.f32 %v2440_v35, %v2336_v40  ;;  %v5814_v22 = vpop.eup %4073  ;;  %4085 = vrcp.f32 %v2351_v20  ;;  %vm2324_vm11 = vcmp.lt.f32.partialorder %v5761_v2, 0.0 }
 0x4bd   : > { %v2353_v37 = vadd.f32 1.0, %v2345_v29  ;;  %v2370_v49 = vmul.f32 1.0614054, %v5805_v61  ;;  %v5818_v23 = vpop.eup %4075  ;;  %v2449_v59 = vmul.f32 %v2441_v9, %v2337_v32  ;;  %v5823_v7 = vsel %vm2322_vm9, -1.0, %v6556_v62 }
 0x4be   : > { %4087 = vrcp.f32 %v2352_v10  ;;  %v2372_v16 = vmul.f32 1.0614054, %v5809_v53  ;;  %v5826_v52 = vpop.eup %4077  ;;  %v2456_v1 = vmul.f32 1.442695, %v2447_v27  ;;  %vm2320_vm12 = vcmp.lt.f32.partialorder %v5796_v54, 0.0 }
 0x4bf   : > { %4089 = vpow2.f32 %v2454_v18  ;;  %v2378_v2 = vadd.f32 -1.4531521, %v2370_v49  ;;  %v5829_v8 = vpop.eup %4079  ;;  %v2458_v40 = vmul.f32 1.442695, %v2448_v28  ;;  %v5832_v20 = vsel %vm2324_vm11, -1.0, %v6556_v62 }
 0x4c0   : > { %4091 = vrcp.f32 %v2353_v37  ;;  %v2380_v32 = vadd.f32 -1.4531521, %v2372_v16  ;;  %v5834_v17 = vpop.eup %4081  ;;  %vm2325_vm13 = vcmp.lt.f32.partialorder %v5767_v11, 0.0  ;;  %v2371_v35 = vmul.f32 1.0614054, %v5807_v46 }
 0x4c1   : > { %v2386_v51 = vmul.f32 %v5805_v61, %v2378_v2  ;;  %v2373_v27 = vmul.f32 1.0614054, %v5818_v23  ;;  %v5840_v18 = vpop.eup %4083  ;;  %v2460_v29 = vmul.f32 1.442695, %v2449_v59  ;;  %v5844_v10 = vmul.f32 0.5, %v5755_v34 }
 0x4c2   : > { %v2388_v9 = vmul.f32 %v5809_v53, %v2380_v32  ;;  %v5849_v28 = vsel %vm2323_vm10, -1.0, %v6556_v62  ;;  %v5851_v37 = vpop.eup %4085  ;;  %4093 = vpow2.f32 %v2456_v1  ;;  %v2379_v49 = vadd.f32 -1.4531521, %v2371_v35 }
 0x4c3   : > { %v2394_v11 = vadd.f32 1.4214138, %v2386_v51  ;;  %v2381_v16 = vadd.f32 -1.4531521, %v2373_v27  ;;  %v5856_v59 = vsel %vm2325_vm13, -1.0, %v6556_v62  ;;  %vm2318_vm14 = vcmp.lt.f32.partialorder %v5788_v45, 0.0 }
 0x4c4   : > { %v5853_v2 = vpop.eup %4087  ;;  %v2396_v50 = vadd.f32 1.4214138, %v2388_v9  ;;  %v2366_v32 = vmul.f32 1.0614054, %v5834_v17  ;;  %v2387_v12 = vmul.f32 %v5807_v46, %v2379_v49  ;;  %v5870_v9 = vmul.f32 0.5, %v5773_v41 }
 0x4c5   : > { %v5860_v34 = vpop.eup %4089  ;;  %v2402_v19 = vmul.f32 %v5805_v61, %v2394_v11  ;;  %v2389_v1 = vmul.f32 %v5818_v23, %v2381_v16  ;;  %v2368_v51 = vmul.f32 1.0614054, %v5853_v2  ;;  %v5875_v5 = vsel %vm2320_vm12, -1.0, %v6556_v62 }
 0x4c6   : > { %v5866_v35 = vpop.eup %4091  ;;  %v2404_v27 = vmul.f32 %v5809_v53, %v2396_v50  ;;  %v2374_v42 = vadd.f32 -1.4531521, %v2366_v32  ;;  %4095 = vpow2.f32 %v2458_v40  ;;  %v2395_v49 = vadd.f32 1.4214138, %v2387_v12 }
 0x4c7   : > { %v2410_v11 = vadd.f32 -0.28449672, %v2402_v19  ;;  %v2397_v44 = vadd.f32 1.4214138, %v2389_v1  ;;  %v5880_v39 = vsel %vm2318_vm14, -1.0, %v6556_v62  ;;  %4097 = vpow2.f32 %v2460_v29 }
 0x4c8   : > { %v2412_v16 = vadd.f32 -0.28449672, %v2404_v27  ;;  %v2376_v50 = vadd.f32 -1.4531521, %v2368_v51  ;;  %v2382_v41 = vmul.f32 %v5834_v17, %v2374_v42  ;;  %v5883_v60 = vpop.eup %4093  ;;  %v2403_v56 = vmul.f32 %v5807_v46, %v2395_v49 }
 0x4c9   : > { %v2418_v54 = vmul.f32 %v5805_v61, %v2410_v11  ;;  %v2405_v40 = vmul.f32 %v5818_v23, %v2397_v44  ;;  %v2367_v12 = vmul.f32 1.0614054, %v5851_v37  ;;  %v2369_v1 = vmul.f32 1.0614054, %v5866_v35 }
 0x4ca   : > { %v2420_v32 = vmul.f32 %v5809_v53, %v2412_v16  ;;  %v2384_v19 = vmul.f32 %v5853_v2, %v2376_v50  ;;  %v2390_v45 = vadd.f32 1.4214138, %v2382_v41  ;;  %v2411_v42 = vadd.f32 -0.28449672, %v2403_v56 }
 0x4cb   : > { %v2426_v51 = vadd.f32 0.2548296, %v2418_v54  ;;  %v2413_v27 = vadd.f32 -0.28449672, %v2405_v40  ;;  %v2375_v49 = vadd.f32 -1.4531521, %v2367_v12 }
 0x4cc   : > { %v2428_v48 = vadd.f32 0.2548296, %v2420_v32  ;;  %v2392_v0 = vadd.f32 1.4214138, %v2384_v19  ;;  %v2398_v11 = vmul.f32 %v5834_v17, %v2390_v45  ;;  %v4096_v36 = vpop.eup %4095  ;;  %v2419_v38 = vmul.f32 %v5807_v46, %v2411_v42 }
 0x4cd   : > { %v2434_v44 = vmul.f32 %v5805_v61, %v2426_v51  ;;  %v2421_v16 = vmul.f32 %v5818_v23, %v2413_v27  ;;  %v2377_v50 = vadd.f32 -1.4531521, %v2369_v1  ;;  %v2383_v56 = vmul.f32 %v5851_v37, %v2375_v49  ;;  %v4098_v1 = vpop.eup %4097 }
 0x4ce   : > { %v2436_v41 = vmul.f32 %v5809_v53, %v2428_v48  ;;  %v2400_v29 = vmul.f32 %v5853_v2, %v2392_v0  ;;  %v2406_v54 = vadd.f32 -0.28449672, %v2398_v11  ;;  %v2427_v32 = vadd.f32 0.2548296, %v2419_v38 }
 0x4cf   : > { %v2474_v40 = vmul.f32 %v5814_v22, %v2434_v44  ;;  %v2429_v19 = vadd.f32 0.2548296, %v2421_v16  ;;  %v2385_v12 = vmul.f32 %v5866_v35, %v2377_v50  ;;  %v2391_v42 = vadd.f32 1.4214138, %v2383_v56 }
 0x4d0   : > { %v2476_v61 = vmul.f32 %v5829_v8, %v2436_v41  ;;  %v2408_v45 = vadd.f32 -0.28449672, %v2400_v29  ;;  %v2414_v51 = vmul.f32 %v5834_v17, %v2406_v54  ;;  %v2435_v48 = vmul.f32 %v5807_v46, %v2427_v32 }
 0x4d1   : > { %v2482_v27 = vsub.f32 1.0, %v2474_v40  ;;  %v2437_v0 = vmul.f32 %v5818_v23, %v2429_v19  ;;  %v2393_v53 = vadd.f32 1.4214138, %v2385_v12  ;;  %v2399_v49 = vmul.f32 %v5851_v37, %v2391_v42 }
 0x4d2   : > { %v2484_v11 = vsub.f32 1.0, %v2476_v61  ;;  %v2416_v22 = vmul.f32 %v5853_v2, %v2408_v45  ;;  %v2422_v38 = vadd.f32 0.2548296, %v2414_v51  ;;  %v2475_v8 = vmul.f32 %v5826_v52, %v2435_v48 }
 0x4d3   : > { %v2490_v44 = vmul.f32 %v2482_v27, %v5823_v7  ;;  %v2477_v16 = vmul.f32 %v5840_v18, %v2437_v0  ;;  %v2401_v50 = vmul.f32 %v5866_v35, %v2393_v53  ;;  %v2407_v29 = vadd.f32 -0.28449672, %v2399_v49 }
 0x4d4   : > { %v2492_v41 = vmul.f32 %v2484_v11, %v5832_v20  ;;  %v2424_v46 = vadd.f32 0.2548296, %v2416_v22  ;;  %v2430_v23 = vmul.f32 %v5834_v17, %v2422_v38  ;;  %v2483_v56 = vsub.f32 1.0, %v2475_v8 }
 0x4d5   : > { %v2498_v54 = vadd.f32 1.0, %v2490_v44  ;;  %v2485_v40 = vsub.f32 1.0, %v2477_v16  ;;  %v2409_v32 = vadd.f32 -0.28449672, %v2401_v50  ;;  %v2415_v52 = vmul.f32 %v5851_v37, %v2407_v29 }
 0x4d6   : > { %v2500_v19 = vadd.f32 1.0, %v2492_v41  ;;  %v2432_v12 = vmul.f32 %v5853_v2, %v2424_v46  ;;  %v2470_v7 = vmul.f32 %v5860_v34, %v2430_v23  ;;  %v2491_v61 = vmul.f32 %v2483_v56, %v5849_v28 }
 0x4d7   : > { %v2506_v18 = vmul.f32 %v2498_v54, %v5780_v15  ;;  %v2493_v20 = vmul.f32 %v2485_v40, %v5856_v59  ;;  %v2417_v17 = vmul.f32 %v5866_v35, %v2409_v32  ;;  %v2423_v27 = vadd.f32 0.2548296, %v2415_v52 }
 0x4d8   : > { %v2508_v45 = vmul.f32 %v2500_v19, %v5812_v31  ;;  %v2472_v51 = vmul.f32 %v4096_v36, %v2432_v12  ;;  %v2478_v42 = vsub.f32 1.0, %v2470_v7  ;;  %v2499_v2 = vadd.f32 1.0, %v2491_v61  ;;  %v3948_v12 = vld [vmem:[%s6463_s3 + $0x120] sm:$0xff] }
 0x4d9   : > { %v2514_v48 = vmul.f32 %v2506_v18, %v6555_v13  ;;  %v2501_v0 = vadd.f32 1.0, %v2493_v20  ;;  %v2425_v34 = vadd.f32 0.2548296, %v2417_v17  ;;  %v2431_v28 = vmul.f32 %v5851_v37, %v2423_v27  ;;  %v3950_v18 = vld [vmem:[%s6463_s3 + $0x130] sm:$0xff]  ;;  %v3952_v61 = vld [vmem:[%s6463_s3 + $0x140] sm:$0xff]  ;;  %v3953_v20 = vld [vmem:[%s6463_s3 + $0x148] sm:$0xff] }
 0x4da   : > { %v2516_v53 = vmul.f32 %v2508_v45, %v6555_v13  ;;  %v2480_v11 = vsub.f32 1.0, %v2472_v51  ;;  %v2486_v15 = vmul.f32 %v2478_v42, %v5880_v39  ;;  %v2507_v59 = vmul.f32 %v2499_v2, %v5785_v55  ;;  %v3954_v17 = vld [vmem:[%s6463_s3 + $0x150] sm:$0xff]  ;;  %v3955_v45 = vld [vmem:[%s6463_s3 + $0x158] sm:$0xff]  ;;  %v3956_v51 = vld [vmem:[%s6463_s3 + $0x160] sm:$0xff] }
 0x4db   : > { %v2509_v22 = vmul.f32 %v2501_v0, %v5844_v10  ;;  %vm2319_vm15 = vcmp.lt.f32.partialorder %v5792_v26, 0.0  ;;  %v2433_v36 = vmul.f32 %v5866_v35, %v2425_v34  ;;  %v2471_v44 = vmul.f32 %v5883_v60, %v2431_v28  ;;  %v3957_v0 = vld [vmem:[%s6463_s3 + $0x168] sm:$0xff]  ;;  %v3958_v28 = vld [vmem:[%s6463_s3 + $0x170] sm:$0xff] }
 0x4dc   : > { %v2520_v31 = vpack.c.bf16 %v2516_v53, %v2514_v48  ;;  %v2488_v38 = vmul.f32 %v2480_v11, %v5875_v5  ;;  %v2494_v49 = vadd.f32 1.0, %v2486_v15  ;;  %vm2321_vm9 = vcmp.lt.f32.partialorder %v5800_v21, 0.0 }
 0x4dd   : > { %v2515_v39 = vmul.f32 %v2507_v59, %v6557_v33  ;;  %v2517_v37 = vmul.f32 %v2509_v22, %v6557_v33  ;;  %v2473_v8 = vmul.f32 %v4098_v1, %v2433_v36  ;;  %v2304_v55 = vmul.f32 0.5, %v5777_v6 }
 0x4de   : > { %2709 = vmatpush.bf16.msrb.mxu0 %v2520_v31  ;;  %v2496_v10 = vadd.f32 1.0, %v2488_v38  ;;  %v2502_v16 = vmul.f32 %v2494_v49, %v5870_v9  ;;  %v2479_v35 = vsub.f32 1.0, %v2471_v44  ;;  %v2327_v5 = vsel %vm2319_vm15, -1.0, %v6556_v62  ;;  %v3959_v38 = vld [vmem:[%s6463_s3 + $0x178] sm:$0xff] }
 0x4df   : > { %v2521_v50 = vpack.c.bf16 %v2517_v37, %v2515_v39  ;;  %v2481_v60 = vsub.f32 1.0, %v2473_v8  ;;  %v2329_v46 = vsel %vm2321_vm9, -1.0, %v6556_v62  ;;  %v2303_v54 = vmul.f32 0.5, %v5775_v43  ;;  %v3960_v8 = vld [vmem:[%s6463_s3 + $0x180] sm:$0xff] }
 0x4e0   : > { %v2504_v41 = vmul.f32 %v2496_v10, %v2304_v55  ;;  %v2510_v21 = vmul.f32 %v2502_v16, %v6555_v13  ;;  %v2487_v23 = vmul.f32 %v2479_v35, %v2327_v5  ;;  %v2305_v56 = vmul.f32 0.5, %v5782_v3 }
 0x4e1   : > { %2808 = vmatpush.bf16.msrb.mxu1 %v2521_v50  ;;  %v2489_v1 = vmul.f32 %v2481_v60, %v2329_v46  ;;  %v3961_v50 = vld [vmem:[%s6463_s3 + $0x188] sm:$0xff]  ;;  %v3962_v46 = vld [vmem:[%s6463_s3 + $0x190] sm:$0xff] }
 0x4e2   : > { %v2512_v29 = vmul.f32 %v2504_v41, %v6555_v13  ;;  %v2495_v9 = vadd.f32 1.0, %v2487_v23  ;;  %v3949_v13 = vld [vmem:[%s6463_s3 + $0x128] sm:$0xff] }
 0x4e3   : > { %v2497_v40 = vadd.f32 1.0, %v2489_v1 }
 0x4e4   : > { %v2518_v32 = vpack.c.bf16 %v2512_v29, %v2510_v21  ;;  %v2503_v26 = vmul.f32 %v2495_v9, %v2303_v54  ;;  %v3963_v9 = vld [vmem:[%s6463_s3 + $0x198] sm:$0xff] }
 0x4e5   : > { %v2505_v19 = vmul.f32 %v2497_v40, %v2305_v56 }
 0x4e6   : > { %2710 = vmatpush.bf16.msrb.mxu0 %v2518_v32  ;;  %v2511_v62 = vmul.f32 %v2503_v26, %v6557_v33 }
 0x4e7   : > { %v2513_v7 = vmul.f32 %v2505_v19, %v6557_v33  ;;  %v3951_v33 = vld [vmem:[%s6463_s3 + $0x138] sm:$0xff] }
 0x4e9   : > { %v2519_v52 = vpack.c.bf16 %v2513_v7, %v2511_v62  ;;  %3862 = vmatmul.msk.bf16.vlgmr.msrb.gmra.mxu0 %vm420_vm0, %v3948_v12 }
 0x4eb   : > { %2809 = vmatpush.bf16.msrb.mxu1 %v2519_v52  ;;  %v3964_v52 = vld [vmem:[%s6463_s3 + $0x1a0] sm:$0xff] }
 0x4ee   : > { %3880 = vmatmul.msk.bf16.vlgmr.msrb.gmra.mxu1 %vm420_vm0, %v3948_v12 }
 0x4f9   : > { %3863 = vmatmul.msk.bf16.gmra.mxu0 %vm420_vm0, %v3949_v13 }
 0x4fe   : > { %3881 = vmatmul.msk.bf16.gmra.mxu1 %vm420_vm0, %v3949_v13 }
 0x509   : > { %3864 = vmatmul.msk.bf16.gmra.mxu0 %vm420_vm0, %v3950_v18 }
 0x50e   : > { %3882 = vmatmul.msk.bf16.gmra.mxu1 %vm420_vm0, %v3950_v18 }
 0x519   : > { %3865 = vmatmul.msk.bf16.gmra.mxu0 %vm420_vm0, %v3951_v33 }
 0x51e   : > { %3883 = vmatmul.msk.bf16.gmra.mxu1 %vm420_vm0, %v3951_v33 }
 0x529   : > { %3866 = vmatmul.msk.bf16.gmra.mxu0 %vm420_vm0, %v3952_v61 }
 0x52e   : > { %3884 = vmatmul.msk.bf16.gmra.mxu1 %vm420_vm0, %v3952_v61 }
 0x539   : > { %3867 = vmatmul.msk.bf16.gmra.mxu0 %vm420_vm0, %v3953_v20 }
 0x53e   : > { %3885 = vmatmul.msk.bf16.gmra.mxu1 %vm420_vm0, %v3953_v20 }
 0x549   : > { %3868 = vmatmul.msk.bf16.gmra.mxu0 %vm420_vm0, %v3954_v17 }
 0x54e   : > { %3886 = vmatmul.msk.bf16.gmra.mxu1 %vm420_vm0, %v3954_v17 }
 0x559   : > { %3869 = vmatmul.msk.bf16.gmra.mxu0 %vm420_vm0, %v3955_v45 }
 0x55e   : > { %3887 = vmatmul.msk.bf16.gmra.mxu1 %vm420_vm0, %v3955_v45 }
 0x566   : > { %v2712_v42 = vpop.f32.mrf.mxu0 }
 0x567   : > { %2901 = vrot.lane.b32.xlu1 %v2712_v42, %s4175_s11 }
 0x569   : > { %3870 = vmatmul.msk.bf16.gmra.mxu0 %vm420_vm0, %v3956_v51 }
 0x56b   : > { %v2811_v27 = vpop.f32.mrf.mxu1 }
 0x56c   : > { %2909 = vrot.lane.b32.xlu2 %v2811_v27, %s4175_s11 }
 0x56e   : > { %3888 = vmatmul.msk.bf16.gmra.mxu1 %vm420_vm0, %v3956_v51  ;;  %v2714_v48 = vpop.f32.mrf.mxu0 }
 0x573   : > { %v2813_v2 = vpop.f32.mrf.mxu1 }
 0x574   : > { %2911 = vrot.lane.b32.xlu0 %v2813_v2, %s4175_s11  ;;  %2903 = vrot.lane.b32.xlu2 %v2714_v48, %s4175_s11 }
 0x576   : > { %v2717_v34 = vpop.f32.mrf.mxu0 }
 0x579   : > { %3871 = vmatmul.msk.bf16.gmra.mxu0 %vm420_vm0, %v3957_v0 }
 0x57b   : > { %v2816_v53 = vpop.f32.mrf.mxu1 }
 0x57c   : > { %2913 = vrot.lane.b32.xlu1 %v2816_v53, %s4175_s11  ;;  %2905 = vrot.lane.b32.xlu0 %v2717_v34, %s4175_s11 }
 0x57e   : > { %3889 = vmatmul.msk.bf16.gmra.mxu1 %vm420_vm0, %v3957_v0  ;;  %v2719_v11 = vpop.f32.mrf.mxu0 }
 0x583   : > { %v2818_v15 = vpop.f32.mrf.mxu1 }
 0x584   : > { %2907 = vrot.lane.b32.xlu1 %v2719_v11, %s4175_s11  ;;  %2915 = vrot.lane.b32.xlu2 %v2818_v15, %s4175_s11  ;;  %s3404_s11 = sshll.u32 %s3401_s9, 4  ;;  %s3405_s11 = int_to_ptr.hbm [resolvable:$true] %s3404_s11 }
 0x585   : > { %s4125_s20 = sshra.s32 %s3405_s11, 4  ;;  %s4126_s20 = int_to_ptr.hbm [resolvable:$true] %s4125_s20 }
 0x586   : > { %v2722_v59 = vpop.f32.mrf.mxu0  ;;  %p4132_p0 = scmp.lt.s32.totalorder %s4126_s20, %s6466_s6 }
 0x587   : > { %2941 = vrot.lane.b32.xlu0 %v2722_v59, %s4177_s13 }
 0x589   : > { %3872 = vmatmul.msk.bf16.gmra.mxu0 %vm420_vm0, %v3958_v28 }
 0x58b   : > { %v2821_v22 = vpop.f32.mrf.mxu1 }
 0x58c   : > { %2949 = vrot.lane.b32.xlu1 %v2821_v22, %s4177_s13 }
 0x58e   : > { %3890 = vmatmul.msk.bf16.gmra.mxu1 %vm420_vm0, %v3958_v28  ;;  %v2724_v36 = vpop.f32.mrf.mxu0 }
 0x593   : > { %v2823_v31 = vpop.f32.mrf.mxu1 }
 0x594   : > { %2943 = vrot.lane.b32.xlu1 %v2724_v36, %s4177_s13  ;;  %2951 = vrot.lane.b32.xlu2 %v2823_v31, %s4177_s13  ;;  %v3965_v36 = vld [vmem:[%s6463_s3 + $0x1a8] sm:$0xff] }
 0x596   : > { %v2727_v49 = vpop.f32.mrf.mxu0 }
 0x599   : > { %3873 = vmatmul.msk.bf16.gmra.mxu0 %vm420_vm0, %v3959_v38 }
 0x59b   : > { %v2826_v44 = vpop.f32.mrf.mxu1 }
 0x59c   : > { %2953 = vrot.lane.b32.xlu0 %v2826_v44, %s4177_s13  ;;  %2945 = vrot.lane.b32.xlu2 %v2727_v49, %s4177_s13 }
 0x59e   : > { %3891 = vmatmul.msk.bf16.gmra.mxu1 %vm420_vm0, %v3959_v38  ;;  %v2729_v39 = vpop.f32.mrf.mxu0 }
 0x5a3   : > { %v2828_v37 = vpop.f32.mrf.mxu1 }
 0x5a4   : > { %2947 = vrot.lane.b32.xlu0 %v2729_v39, %s4177_s13  ;;  %2955 = vrot.lane.b32.xlu1 %v2828_v37, %s4177_s13 }
 0x5a6   : > { %v2732_v55 = vpop.f32.mrf.mxu0 }
 0x5a7   : > { %2981 = vrot.lane.b32.xlu2 %v2732_v55, %s4179_s16 }
 0x5a9   : > { %3874 = vmatmul.msk.bf16.gmra.mxu0 %vm420_vm0, %v3960_v8 }
 0x5ab   : > { %v2831_v10 = vpop.f32.mrf.mxu1 }
 0x5ac   : > { %2989 = vrot.lane.b32.xlu0 %v2831_v10, %s4179_s16 }
 0x5ae   : > { %3892 = vmatmul.msk.bf16.gmra.mxu1 %vm420_vm0, %v3960_v8  ;;  %v2734_v16 = vpop.f32.mrf.mxu0 }
 0x5b3   : > { %v2833_v35 = vpop.f32.mrf.mxu1 }
 0x5b4   : > { %2991 = vrot.lane.b32.xlu1 %v2833_v35, %s4179_s16  ;;  %2983 = vrot.lane.b32.xlu0 %v2734_v16, %s4179_s16 }
 0x5b6   : > { %v2737_v5 = vpop.f32.mrf.mxu0 }
 0x5b9   : > { %3875 = vmatmul.msk.bf16.gmra.mxu0 %vm420_vm0, %v3961_v50 }
 0x5bb   : > { %v2836_v60 = vpop.f32.mrf.mxu1 }
 0x5bc   : > { %2985 = vrot.lane.b32.xlu1 %v2737_v5, %s4179_s16  ;;  %2993 = vrot.lane.b32.xlu2 %v2836_v60, %s4179_s16 }
 0x5be   : > { %3893 = vmatmul.msk.bf16.gmra.mxu1 %vm420_vm0, %v3961_v50  ;;  %v2739_v41 = vpop.f32.mrf.mxu0 }
 0x5c3   : > { %v2838_v21 = vpop.f32.mrf.mxu1 }
 0x5c4   : > { %2995 = vrot.lane.b32.xlu0 %v2838_v21, %s4179_s16  ;;  %2987 = vrot.lane.b32.xlu2 %v2739_v41, %s4179_s16 }
 0x5c6   : > { %v2742_v23 = vpop.f32.mrf.mxu0  ;;  %v2910_v40 = vpop.permute.xlu2 %2909 }
 0x5c7   : > { %3021 = vrot.lane.b32.xlu1 %v2742_v23, %s4181_s18 }
 0x5c9   : > { %3876 = vmatmul.msk.bf16.gmra.mxu0 %vm420_vm0, %v3962_v46 }
 0x5cb   : > { %v2841_v1 = vpop.f32.mrf.mxu1 }
 0x5cc   : > { %3029 = vrot.lane.b32.xlu2 %v2841_v1, %s4181_s18 }
 0x5ce   : > { %3894 = vmatmul.msk.bf16.gmra.mxu1 %vm420_vm0, %v3962_v46  ;;  %v2744_v29 = vpop.f32.mrf.mxu0  ;;  %v2904_v18 = vpop.permute.xlu2 %2903 }
 0x5d3   : > { %v2843_v54 = vpop.f32.mrf.mxu1 }
 0x5d4   : > { %3031 = vrot.lane.b32.xlu0 %v2843_v54, %s4181_s18  ;;  %3023 = vrot.lane.b32.xlu2 %v2744_v29, %s4181_s18 }
 0x5d6   : > { %v2747_v56 = vpop.f32.mrf.mxu0 }
 0x5d9   : > { %3877 = vmatmul.msk.bf16.gmra.mxu0 %vm420_vm0, %v3963_v9  ;;  %v2902_v32 = vpop.permute.xlu1 %2901 }
 0x5da   : > { %v2917_v26 = vsel %vm691_vm1, %v2902_v32, %v2910_v40  ;;  %v2921_v19 = vsel %vm691_vm1, %v2910_v40, %v2902_v32 }
 0x5db   : > { %v2846_v12 = vpop.f32.mrf.mxu1  ;;  %v2925_v13 = vmul.f32 %v2921_v19, %v6558_v14  ;;  %v2926_v51 = vmul.f32 %v2917_v26, %v4588_v24 }
 0x5dc   : > { %3033 = vrot.lane.b32.xlu1 %v2846_v12, %s4181_s18  ;;  %3025 = vrot.lane.b32.xlu0 %v2747_v56, %s4181_s18 }
 0x5de   : > { %3895 = vmatmul.msk.bf16.gmra.mxu1 %vm420_vm0, %v3963_v9  ;;  %v2749_v62 = vpop.f32.mrf.mxu0  ;;  %v2916_v31 = vpop.permute.xlu2 %2915 }
 0x5e3   : > { %v2848_v7 = vpop.f32.mrf.mxu1 }
 0x5e4   : > { %3027 = vrot.lane.b32.xlu1 %v2749_v62, %s4181_s18  ;;  %3035 = vrot.lane.b32.xlu2 %v2848_v7, %s4181_s18  ;;  %s4127_s18 = scalar_lea.hbm %s4126_s20, 64 }
 0x5e5   : > { %p4128_p11 = scmp.ne.s32.totalorder %s4126_s20, %s4127_s18 }
 0x5e6   : > { %v2752_v33 = vpop.f32.mrf.mxu0  ;;  %v2912_v61 = vpop.permute.xlu0 %2911 }
 0x5e7   : > { %v2933_v20 = vadd.f32 %v2925_v13, %v2752_v33  ;;  %v2918_v17 = vsel %vm691_vm1, %v2904_v18, %v2912_v61  ;;  %v2922_v45 = vsel %vm691_vm1, %v2912_v61, %v2904_v18  ;;  %p4129_p12 = pnand %p4128_p11, %p4260_p5 }
 0x5e8   : > { %v2927_v48 = vmul.f32 %v2922_v45, %v6558_v14  ;;  %v2928_v28 = vmul.f32 %v2918_v17, %v4588_v24 }
 0x5e9   : > { %3878 = vmatmul.msk.bf16.gmra.mxu0 %vm420_vm0, %v3964_v52  ;;  %p4130_p13 = pneg %p4129_p12 }
 0x5eb   : > { %v2851_v42 = vpop.f32.mrf.mxu1 }
 0x5ec   : > { %v2934_v27 = vadd.f32 %v2926_v51, %v2851_v42 }
 0x5ee   : > { %3896 = vmatmul.msk.bf16.gmra.mxu1 %vm420_vm0, %v3964_v52  ;;  %v2754_v2 = vpop.f32.mrf.mxu0  ;;  %v2914_v0 = vpop.permute.xlu1 %2913 }
 0x5ef   : > { %v2935_v34 = vadd.f32 %v2927_v48, %v2754_v2  ;;  %v2906_v53 = vpop.permute.xlu0 %2905  ;;  %v2952_v56 = vpop.permute.xlu2 %2951 }
 0x5f0   : > { %v2919_v11 = vsel %vm691_vm1, %v2906_v53, %v2914_v0  ;;  %v2923_v15 = vsel %vm691_vm1, %v2914_v0, %v2906_v53 }
 0x5f1   : > { %v2929_v38 = vmul.f32 %v2923_v15, %v6558_v14  ;;  %v2930_v55 = vmul.f32 %v2919_v11, %v4588_v24 }
 0x5f3   : > { %v2853_v59 = vpop.f32.mrf.mxu1 }
 0x5f4   : > { %v2936_v22 = vadd.f32 %v2928_v28, %v2853_v59 }
 0x5f6   : > { %v2757_v49 = vpop.f32.mrf.mxu0  ;;  %v2908_v44 = vpop.permute.xlu1 %2907 }
 0x5f7   : > { %v2937_v39 = vadd.f32 %v2929_v38, %v2757_v49  ;;  %v2920_v37 = vsel %vm691_vm1, %v2908_v44, %v2916_v31  ;;  %v2924_v8 = vsel %vm691_vm1, %v2916_v31, %v2908_v44  ;;  %v2946_v18 = vpop.permute.xlu2 %2945 }
 0x5f8   : > { %v2931_v50 = vmul.f32 %v2924_v8, %v6558_v14  ;;  %v2932_v29 = vmul.f32 %v2920_v37, %v4588_v24 }
 0x5f9   : > { %3879 = vmatmul.msk.bf16.gmra.mxu0 %vm420_vm0, %v3965_v36  ;;  %v2942_v35 = vpop.permute.xlu0 %2941 }
 0x5fb   : > { %v2856_v10 = vpop.f32.mrf.mxu1 }
 0x5fc   : > { %v2938_v16 = vadd.f32 %v2930_v55, %v2856_v10 }
 0x5fe   : > { %3897 = vmatmul.msk.bf16.gmra.mxu1 %vm420_vm0, %v3965_v36  ;;  %v2759_v5 = vpop.f32.mrf.mxu0  ;;  %v2950_v60 = vpop.permute.xlu1 %2949 }
 0x5ff   : > { %v2939_v41 = vadd.f32 %v2931_v50, %v2759_v5  ;;  %v2957_v21 = vsel %vm738_vm3, %v2942_v35, %v2950_v60  ;;  %v2961_v46 = vsel %vm738_vm3, %v2950_v60, %v2942_v35 }
 0x600   : > { %v2965_v23 = vmul.f32 %v2961_v46, %v4641_v30  ;;  %v2966_v1 = vmul.f32 %v2957_v21, %v6559_v63 }
 0x601   : > { %v2982_v31 = vpop.permute.xlu2 %2981 }
 0x602   : > { %v2973_v54 = vadd.f32 %v2965_v23, %v2933_v20  ;;  %v2974_v9 = vadd.f32 %v2966_v1, %v2934_v27 }
 0x603   : > { %v2858_v14 = vpop.f32.mrf.mxu1 }
 0x604   : > { %v2940_v40 = vadd.f32 %v2932_v29, %v2858_v14 }
 0x606   : > { %v2762_v32 = vpop.f32.mrf.mxu0  ;;  %v2944_v26 = vpop.permute.xlu1 %2943 }
 0x607   : > { %3061 = vrot.lane.b32.xlu0 %v2762_v32, %s4176_s12  ;;  %v2958_v19 = vsel %vm738_vm3, %v2944_v26, %v2952_v56  ;;  %v2962_v12 = vsel %vm738_vm3, %v2952_v56, %v2944_v26 }
 0x608   : > { %v2967_v62 = vmul.f32 %v2962_v12, %v4641_v30  ;;  %v2968_v7 = vmul.f32 %v2958_v19, %v6559_v63 }
 0x60a   : > { %v2975_v24 = vadd.f32 %v2967_v62, %v2935_v34  ;;  %v2976_v52 = vadd.f32 %v2968_v7, %v2936_v22 }
 0x60b   : > { %v2861_v13 = vpop.f32.mrf.mxu1 }
 0x60c   : > { %3069 = vrot.lane.b32.xlu1 %v2861_v13, %s4176_s12 }
 0x60e   : > { %v2764_v33 = vpop.f32.mrf.mxu0  ;;  %v2954_v61 = vpop.permute.xlu0 %2953 }
 0x60f   : > { %v2959_v20 = vsel %vm738_vm3, %v2946_v18, %v2954_v61  ;;  %v2963_v17 = vsel %vm738_vm3, %v2954_v61, %v2946_v18 }
 0x610   : > { %v2969_v45 = vmul.f32 %v2963_v17, %v4641_v30  ;;  %v2970_v51 = vmul.f32 %v2959_v20, %v6559_v63 }
 0x612   : > { %v2977_v42 = vadd.f32 %v2969_v45, %v2937_v39  ;;  %v2978_v27 = vadd.f32 %v2970_v51, %v2938_v16 }
 0x613   : > { %v2863_v48 = vpop.f32.mrf.mxu1 }
 0x614   : > { %3063 = vrot.lane.b32.xlu1 %v2764_v33, %s4176_s12  ;;  %3071 = vrot.lane.b32.xlu2 %v2863_v48, %s4176_s12 }
 0x616   : > { %v2767_v2 = vpop.f32.mrf.mxu0  ;;  %v2948_v0 = vpop.permute.xlu0 %2947 }
 0x617   : > { %v2956_v34 = vpop.permute.xlu1 %2955  ;;  %v2994_v10 = vpop.permute.xlu2 %2993 }
 0x618   : > { %v2960_v53 = vsel %vm738_vm3, %v2948_v0, %v2956_v34  ;;  %v2964_v11 = vsel %vm738_vm3, %v2956_v34, %v2948_v0 }
 0x619   : > { %v2971_v15 = vmul.f32 %v2964_v11, %v4641_v30  ;;  %v2972_v28 = vmul.f32 %v2960_v53, %v6559_v63 }
 0x61b   : > { %v2866_v59 = vpop.f32.mrf.mxu1  ;;  %v2979_v22 = vadd.f32 %v2971_v15, %v2939_v41  ;;  %v2980_v36 = vadd.f32 %v2972_v28, %v2940_v40 }
 0x61c   : > { %3073 = vrot.lane.b32.xlu0 %v2866_v59, %s4176_s12  ;;  %3065 = vrot.lane.b32.xlu2 %v2767_v2, %s4176_s12 }
 0x61e   : > { %v2769_v38 = vpop.f32.mrf.mxu0  ;;  %v2990_v49 = vpop.permute.xlu0 %2989 }
 0x61f   : > { %v2997_v44 = vsel %vm786_vm5, %v2982_v31, %v2990_v49  ;;  %v3001_v39 = vsel %vm786_vm5, %v2990_v49, %v2982_v31 }
 0x620   : > { %v3005_v30 = vmul.f32 %v3001_v39, %v4746_v25  ;;  %v3006_v63 = vmul.f32 %v2997_v44, %v4748_v4 }
 0x622   : > { %v3013_v37 = vadd.f32 %v3005_v30, %v2973_v54  ;;  %v3014_v8 = vadd.f32 %v3006_v63, %v2974_v9  ;;  %v2988_v9 = vpop.permute.xlu2 %2987 }
 0x623   : > { %v2868_v55 = vpop.f32.mrf.mxu1 }
 0x624   : > { %3075 = vrot.lane.b32.xlu1 %v2868_v55, %s4176_s12  ;;  %3067 = vrot.lane.b32.xlu0 %v2769_v38, %s4176_s12 }
 0x626   : > { %v2772_v16 = vpop.f32.mrf.mxu0  ;;  %v2992_v35 = vpop.permute.xlu1 %2991 }
 0x627   : > { %3101 = vrot.lane.b32.xlu2 %v2772_v16, %s4178_s15  ;;  %v2984_v50 = vpop.permute.xlu0 %2983 }
 0x628   : > { %v2998_v5 = vsel %vm786_vm5, %v2984_v50, %v2992_v35  ;;  %v3002_v60 = vsel %vm786_vm5, %v2992_v35, %v2984_v50 }
 0x629   : > { %v3007_v41 = vmul.f32 %v3002_v60, %v4746_v25  ;;  %v3008_v21 = vmul.f32 %v2998_v5, %v4748_v4 }
 0x62a   : > { %v3030_v33 = vpop.permute.xlu2 %3029 }
 0x62b   : > { %v2871_v46 = vpop.f32.mrf.mxu1  ;;  %v3015_v23 = vadd.f32 %v3007_v41, %v2975_v24  ;;  %v3016_v1 = vadd.f32 %v3008_v21, %v2976_v52 }
 0x62c   : > { %3109 = vrot.lane.b32.xlu1 %v2871_v46, %s4178_s15 }
 0x62e   : > { %v2774_v29 = vpop.f32.mrf.mxu0  ;;  %v2986_v54 = vpop.permute.xlu1 %2985 }
 0x62f   : > { %3103 = vrot.lane.b32.xlu0 %v2774_v29, %s4178_s15  ;;  %v2999_v14 = vsel %vm786_vm5, %v2986_v54, %v2994_v10  ;;  %v3003_v56 = vsel %vm786_vm5, %v2994_v10, %v2986_v54 }
 0x630   : > { %v3009_v40 = vmul.f32 %v3003_v56, %v4746_v25  ;;  %v3010_v32 = vmul.f32 %v2999_v14, %v4748_v4 }
 0x632   : > { %v3017_v26 = vadd.f32 %v3009_v40, %v2977_v42  ;;  %v3018_v19 = vadd.f32 %v3010_v32, %v2978_v27  ;;  %v3024_v34 = vpop.permute.xlu2 %3023 }
 0x633   : > { %v2873_v12 = vpop.f32.mrf.mxu1 }
 0x634   : > { %3111 = vrot.lane.b32.xlu2 %v2873_v12, %s4178_s15 }
 0x636   : > { %v2777_v62 = vpop.f32.mrf.mxu0  ;;  %v2996_v7 = vpop.permute.xlu0 %2995 }
 0x637   : > { %3105 = vrot.lane.b32.xlu0 %v2777_v62, %s4178_s15  ;;  %v3000_v24 = vsel %vm786_vm5, %v2988_v9, %v2996_v7  ;;  %v3004_v52 = vsel %vm786_vm5, %v2996_v7, %v2988_v9 }
 0x638   : > { %v3011_v13 = vmul.f32 %v3004_v52, %v4746_v25  ;;  %v3012_v18 = vmul.f32 %v3000_v24, %v4748_v4  ;;  %v6576_v24 = vld [vmem:[#allocation15_spill] sm:$0xff] }
 0x639   : > { %v3022_v61 = vpop.permute.xlu1 %3021 }
 0x63a   : > { %v3019_v20 = vadd.f32 %v3011_v13, %v2979_v22  ;;  %v3020_v17 = vadd.f32 %v3012_v18, %v2980_v36  ;;  %v3037_v45 = vsel %vm834_vm7, %v3022_v61, %v3030_v33  ;;  %v3041_v51 = vsel %vm834_vm7, %v3030_v33, %v3022_v61  ;;  %v6577_v13 = vld [vmem:[#allocation16_spill] sm:$0xff]  ;;  %v3898_v33 = vld [vmem:[%s6464_s4 + $0x40] sm:$0xff] }
 0x63b   : > { %v2876_v42 = vpop.f32.mrf.mxu1  ;;  %v3045_v27 = vmul.f32 %v3041_v51, %v4876_v58  ;;  %v3046_v48 = vmul.f32 %v3037_v45, %v4857_v47  ;;  %v3899_v51 = vld [vmem:[%s6464_s4 + $0x48] sm:$0xff] }
 0x63c   : > { %3113 = vrot.lane.b32.xlu1 %v2876_v42, %s4178_s15 }
 0x63d   : > { %v6160_v25 = vadd.f32 %v3045_v27, %v3013_v37  ;;  %v6162_v4 = vadd.f32 %v3046_v48, %v3014_v8 }
 0x63e   : > { %v2779_v2 = vpop.f32.mrf.mxu0  ;;  %v3036_v35 = vpop.permute.xlu2 %3035 }
 0x63f   : > { %3107 = vrot.lane.b32.xlu0 %v2779_v2, %s4178_s15  ;;  %v3901_v2 = vld [vmem:[%s6464_s4 + $0x58] sm:$0xff] }
 0x643   : > { %v2878_v0 = vpop.f32.mrf.mxu1 }
 0x644   : > { %3115 = vrot.lane.b32.xlu1 %v2878_v0, %s4178_s15  ;;  %v3900_v0 = vld [vmem:[%s6464_s4 + $0x50] sm:$0xff]  ;;  %s4131_s15 = scalar_lea.hbm %s6466_s6, 128 }
 0x645   : > { %p4133_p1 = scmp.lt.s32.totalorder %s4131_s15, %s4127_s18 }
 0x646   : > { %v2782_v53 = vpop.f32.mrf.mxu0  ;;  %v3032_v11 = vpop.permute.xlu0 %3031 }
 0x647   : > { %3141 = vrot.lane.b32.xlu2 %v2782_v53, %s4180_s17  ;;  %v3038_v15 = vsel %vm834_vm7, %v3024_v34, %v3032_v11  ;;  %v3042_v28 = vsel %vm834_vm7, %v3032_v11, %v3024_v34  ;;  %v3902_v11 = vld [vmem:[%s6465_s5 + $0x40] sm:$0xff]  ;;  %p4134_p2 = por %p4133_p1, %p4132_p0 }
 0x648   : > { %v3047_v59 = vmul.f32 %v3042_v28, %v4876_v58  ;;  %v3048_v22 = vmul.f32 %v3038_v15, %v4857_v47 }
 0x649   : > { %p4135_p3 = pnand %p4134_p2, %p4130_p13 }
 0x64a   : > { %v6173_v36 = vadd.f32 %v3047_v59, %v3015_v23  ;;  %v6175_v31 = vadd.f32 %v3048_v22, %v3016_v1 }
 0x64b   : > { %v2881_v38 = vpop.f32.mrf.mxu1 }
 0x64c   : > { %3149 = vrot.lane.b32.xlu1 %v2881_v38, %s4180_s17 }
 0x64e   : > { %v2784_v49 = vpop.f32.mrf.mxu0  ;;  %v3034_v44 = vpop.permute.xlu1 %3033 }
 0x64f   : > { %3143 = vrot.lane.b32.xlu0 %v2784_v49, %s4180_s17  ;;  %v3026_v39 = vpop.permute.xlu0 %3025  ;;  %v3903_v49 = vld [vmem:[%s6465_s5 + $0x48] sm:$0xff] }
 0x650   : > { %v3039_v30 = vsel %vm834_vm7, %v3026_v39, %v3034_v44  ;;  %v3043_v63 = vsel %vm834_vm7, %v3034_v44, %v3026_v39 }
 0x651   : > { %v3049_v37 = vmul.f32 %v3043_v63, %v4876_v58  ;;  %v3050_v8 = vmul.f32 %v3039_v30, %v4857_v47  ;;  %v3905_v30 = vld [vmem:[%s6465_s5 + $0x58] sm:$0xff] }
 0x653   : > { %v2883_v55 = vpop.f32.mrf.mxu1  ;;  %v6185_v10 = vadd.f32 %v3049_v37, %v3017_v26  ;;  %v6187_v16 = vadd.f32 %v3050_v8, %v3018_v19 }
 0x654   : > { %3151 = vrot.lane.b32.xlu2 %v2883_v55, %s4180_s17 }
 0x656   : > { %v2787_v50 = vpop.f32.mrf.mxu0  ;;  %v3028_v5 = vpop.permute.xlu1 %3027 }
 0x657   : > { %v3040_v60 = vsel %vm834_vm7, %v3028_v5, %v3036_v35  ;;  %v3044_v41 = vsel %vm834_vm7, %v3036_v35, %v3028_v5 }
 0x658   : > { %v3051_v21 = vmul.f32 %v3044_v41, %v4876_v58  ;;  %v3052_v46 = vmul.f32 %v3040_v60, %v4857_v47 }
 0x65a   : > { %v6196_v23 = vadd.f32 %v3051_v21, %v3019_v20  ;;  %v6198_v1 = vadd.f32 %v3052_v46, %v3020_v17 }
 0x65b   : > { %v2886_v29 = vpop.f32.mrf.mxu1 }
 0x65c   : > { %3153 = vrot.lane.b32.xlu0 %v2886_v29, %s4180_s17  ;;  %3145 = vrot.lane.b32.xlu2 %v2787_v50, %s4180_s17 }
 0x65e   : > { %v2789_v54 = vpop.f32.mrf.mxu0 }
 0x663   : > { %v2888_v9 = vpop.f32.mrf.mxu1 }
 0x664   : > { %3155 = vrot.lane.b32.xlu0 %v2888_v9, %s4180_s17  ;;  %3147 = vrot.lane.b32.xlu2 %v2789_v54, %s4180_s17  ;;  %s255_s17 = sand.u32 1, %s4165_s22  }
 0x665   : > { %s3483_s14 = sshll.u32 %s255_s17, 6  ;;  %s3390_s10 = scalar_lea.sflag [#allocation3], %s255_s17 }
 0x666   : > { %v2792_v14 = vpop.f32.mrf.mxu0  ;;  %s257_s16 = scalar_lea.vmem [#allocation2], %s3483_s14 }
 0x667   : > { %3181 = vrot.lane.b32.xlu1 %v2792_v14, %s4182_s19  ;;  %s3402_s25 = sshll.u32 %s257_s16, 4  ;;  %s3403_s25 = int_to_ptr.vmem [resolvable:$true] %s3402_s25 }
 0x66b   : > { %v2891_v58 = vpop.f32.mrf.mxu1 }
 0x66c   : > { %3189 = vrot.lane.b32.xlu0 %v2891_v58, %s4182_s19 }
 0x66e   : > { %v2794_v47 = vpop.f32.mrf.mxu0  ;;  %v3072_v45 = vpop.permute.xlu2 %3071 }
 0x66f   : > { %3183 = vrot.lane.b32.xlu2 %v2794_v47, %s4182_s19 }
 0x673   : > { %v2893_v56 = vpop.f32.mrf.mxu1 }
 0x674   : > { %3191 = vrot.lane.b32.xlu1 %v2893_v56, %s4182_s19 }
 0x676   : > { %v2797_v40 = vpop.f32.mrf.mxu0  ;;  %v3066_v28 = vpop.permute.xlu2 %3065 }
 0x679   : > { %v3062_v26 = vpop.permute.xlu0 %3061 }
 0x67b   : > { %v2896_v32 = vpop.f32.mrf.mxu1 }
 0x67c   : > { %3193 = vrot.lane.b32.xlu2 %v2896_v32, %s4182_s19  ;;  %3185 = vrot.lane.b32.xlu1 %v2797_v40, %s4182_s19 }
 0x67e   : > { %v3070_v19 = vpop.permute.xlu1 %3069  ;;  %v2799_v12 = vpop.f32.mrf.mxu0 }
 0x67f   : > { %v3077_v62 = vsel %vm882_vm2, %v3062_v26, %v3070_v19  ;;  %v3081_v7 = vsel %vm882_vm2, %v3070_v19, %v3062_v26  ;;  %3187 = vrot.lane.b32.xlu0 %v2799_v12, %s4182_s19  ;;  %v6578_v19 = vld [vmem:[#allocation19_spill] sm:$0xff] }
 0x680   : > { %v3085_v52 = vmul.f32 %v3077_v62, %v6576_v24  ;;  %v3086_v18 = vmul.f32 %v3081_v7, %v6577_v13  ;;  %v6579_v62 = vld [vmem:[#allocation20_spill] sm:$0xff] }
 0x681   : > { %v3102_v8 = vpop.permute.xlu2 %3101 }
 0x682   : > { %v6221_v61 = vadd.f32 %v3085_v52, %v6160_v25  ;;  %v6224_v20 = vadd.f32 %v3086_v18, %v6162_v4 }
 0x683   : > { %v2898_v17 = vpop.f32.mrf.mxu1 }
 0x684   : > { %3322 = vperm.xlu2 %4023, %v3898_v33   ;;  %3195 = vrot.lane.b32.xlu1 %v2898_v17, %s4182_s19 }
 0x686   : > { %v3064_v42 = vpop.permute.xlu1 %3063 }
 0x687   : > { %v3078_v27 = vsel %vm882_vm2, %v3064_v42, %v3072_v45  ;;  %v3082_v48 = vsel %vm882_vm2, %v3072_v45, %v3064_v42  ;;  %3327 = vperm.xlu0 %4024, %v3899_v51  }
 0x688   : > { %v3087_v25 = vmul.f32 %v3078_v27, %v6576_v24  ;;  %v3088_v4 = vmul.f32 %v3082_v48, %v6577_v13 }
 0x68a   : > { %v3095_v34 = vadd.f32 %v3087_v25, %v6173_v36  ;;  %v3096_v53 = vadd.f32 %v3088_v4, %v6175_v31  ;;  %v3904_v31 = vld [vmem:[%s6465_s5 + $0x50] sm:$0xff]  ;;  %v6580_v25 = vld [vmem:[#allocation21_spill] sm:$0xff] }
 0x68c   : > { %3337 = vperm.xlu2 %4023, %v3901_v2   ;;  %3332 = vperm.xlu1 %4022, %v3900_v0   ;;  %v6581_v2 = vld [vmem:[#allocation22_spill] sm:$0xff] }
 0x68e   : > { %v3074_v15 = vpop.permute.xlu0 %3073  ;;  %v3112_v50 = vpop.permute.xlu2 %3111 }
 0x68f   : > { %v3079_v59 = vsel %vm882_vm2, %v3066_v28, %v3074_v15  ;;  %v3083_v22 = vsel %vm882_vm2, %v3074_v15, %v3066_v28  ;;  %3355 = vperm.xlu0 %4024, %v3902_v11  }
 0x690   : > { %v3089_v38 = vmul.f32 %v3079_v59, %v6576_v24  ;;  %v3090_v36 = vmul.f32 %v3083_v22, %v6577_v13 }
 0x692   : > { %v6260_v44 = vadd.f32 %v3089_v38, %v6185_v10  ;;  %v6263_v39 = vadd.f32 %v3090_v36, %v6187_v16 }
 0x694   : > { %3365 = vperm.xlu2 %4023, %v3904_v31   ;;  %3360 = vperm.xlu1 %4022, %v3903_v49   ;;  %v6582_v31 = vld [vmem:[#allocation8_spill] sm:$0xff] }
 0x696   : > { %v3068_v63 = vpop.permute.xlu0 %3067  ;;  %v3076_v55 = vpop.permute.xlu1 %3075 }
 0x697   : > { %3370 = vperm.xlu0 %4024, %v3905_v30   ;;  %v6583_v30 = vld [vmem:[#allocation12_spill] sm:$0xff] }
 0x69e   : > { %v3110_v5 = vpop.permute.xlu1 %3109 }
 0x69f   : > { %v3117_v58 = vsel %vm930_vm4, %v3102_v8, %v3110_v5  ;;  %v3121_v47 = vsel %vm930_vm4, %v3110_v5, %v3102_v8 }
 0x6a0   : > { %v3125_v12 = vmul.f32 %v3117_v58, %v6578_v19  ;;  %v3126_v7 = vmul.f32 %v3121_v47, %v6579_v62 }
 0x6a1   : > { %v3104_v37 = vpop.permute.xlu0 %3103  ;;  %v3142_v10 = vpop.permute.xlu2 %3141 }
 0x6a2   : > { %v3118_v32 = vsel %vm930_vm4, %v3104_v37, %v3112_v50  ;;  %v3122_v26 = vsel %vm930_vm4, %v3112_v50, %v3104_v37  ;;  %v3133_v28 = vadd.f32 %v3125_v12, %v6221_v61  ;;  %v3134_v59 = vadd.f32 %v3126_v7, %v6224_v20 }
 0x6a3   : > { %v3127_v51 = vmul.f32 %v3118_v32, %v6578_v19  ;;  %v3128_v42 = vmul.f32 %v3122_v26, %v6579_v62  ;;  %v3084_v32 = vsel %vm882_vm2, %v3076_v55, %v3068_v63 }
 0x6a5   : > { %v3135_v22 = vadd.f32 %v3127_v51, %v3095_v34  ;;  %v3136_v38 = vadd.f32 %v3128_v42, %v3096_v53  ;;  %v3092_v51 = vmul.f32 %v3084_v32, %v6577_v13 }
 0x6a9   : > { %v3106_v35 = vpop.permute.xlu0 %3105 }
 0x6ae   : > { %v3114_v41 = vpop.permute.xlu1 %3113  ;;  %v3152_v21 = vpop.permute.xlu2 %3151 }
 0x6af   : > { %v3119_v8 = vsel %vm930_vm4, %v3106_v35, %v3114_v41  ;;  %v3123_v50 = vsel %vm930_vm4, %v3114_v41, %v3106_v35 }
 0x6b1   : > { %v6268_v60 = vpop.permute.xlu0 %3107 }
 0x6b6   : > { %v6270_v46 = vpop.permute.xlu1 %3115  ;;  %v3146_v54 = vpop.permute.xlu2 %3145 }
 0x6be   : > { %v3150_v9 = vpop.permute.xlu1 %3149  ;;  %v6278_v56 = vpop.permute.xlu2 %3147 }
 0x6bf   : > { %v3157_v18 = vsel %vm978_vm6, %v3142_v10, %v3150_v9  ;;  %v3161_v33 = vsel %vm978_vm6, %v3150_v9, %v3142_v10 }
 0x6c0   : > { %v3165_v4 = vmul.f32 %v3157_v18, %v6580_v25  ;;  %v3166_v0 = vmul.f32 %v3161_v33, %v6581_v2  ;;  %v6584_v18 = vld [vmem:[#allocation18_spill] sm:$0xff] }
 0x6c1   : > { %v3144_v16 = vpop.permute.xlu0 %3143 }
 0x6c2   : > { %v3158_v17 = vsel %vm978_vm6, %v3144_v16, %v3152_v21  ;;  %v3162_v45 = vsel %vm978_vm6, %v3152_v21, %v3144_v16  ;;  %v3173_v5 = vadd.f32 %v3165_v4, %v3133_v28  ;;  %v3174_v10 = vadd.f32 %v3166_v0, %v3134_v59 }
 0x6c3   : > { %v3167_v11 = vmul.f32 %v3158_v17, %v6580_v25  ;;  %v3168_v15 = vmul.f32 %v3162_v45, %v6581_v2 }
 0x6c5   : > { %v3175_v16 = vadd.f32 %v3167_v11, %v3135_v22  ;;  %v3176_v21 = vadd.f32 %v3168_v15, %v3136_v38 }
 0x6c9   : > { %v3184_v36 = vpop.permute.xlu2 %3183 }
 0x6ce   : > { %v3154_v29 = vpop.permute.xlu0 %3153 }
 0x6cf   : > { %v3159_v20 = vsel %vm978_vm6, %v3146_v54, %v3154_v29  ;;  %v3163_v34 = vsel %vm978_vm6, %v3154_v29, %v3146_v54  ;;  %v3129_v29 = vmul.f32 %v3119_v8, %v6578_v19  ;;  %v3130_v54 = vmul.f32 %v3123_v50, %v6579_v62  ;;  %v6585_v50 = vld [vmem:[#allocation5_spill] sm:$0xff] }
 0x6d0   : > { %v3169_v7 = vmul.f32 %v3159_v20, %v6580_v25 }
 0x6d1   : > { %v3137_v42 = vadd.f32 %v3129_v29, %v6260_v44 }
 0x6d3   : > { %v3177_v13 = vadd.f32 %v3169_v7, %v3137_v42  ;;  %v6589_v42 = vld [vmem:[#allocation7_spill] sm:$0xff] }
 0x6d6   : > { %v6272_v14 = vpop.permute.xlu0 %3155 }
 0x6d7   : > { %v3160_v28 = vsel %vm978_vm6, %v6278_v56, %v6272_v14 }
 0x6d9   : > { %v3182_v40 = vpop.permute.xlu1 %3181 }
 0x6de   : > { %v3190_v52 = vpop.permute.xlu0 %3189 }
 0x6df   : > { %v3197_v27 = vsel %vm1026_vm8, %v3182_v40, %v3190_v52  ;;  %v3201_v48 = vsel %vm1026_vm8, %v3190_v52, %v3182_v40  ;;  %v3080_v40 = vsel %vm882_vm2, %v3068_v63, %v3076_v55  ;;  %v3170_v52 = vmul.f32 %v3163_v34, %v6581_v2 }
 0x6e0   : > { %v3205_v49 = vmul.f32 %v3197_v27, %v6582_v31  ;;  %v3206_v37 = vmul.f32 %v3201_v48, %v6583_v30  ;;  %v3091_v55 = vmul.f32 %v3080_v40, %v6576_v24  ;;  %v3138_v27 = vadd.f32 %v3130_v54, %v6263_v39  ;;  %v3194_v48 = vpop.permute.xlu2 %3193 }
 0x6e2   : > { %v3213_v58 = vadd.f32 %v3205_v49, %v3173_v5  ;;  %v3214_v47 = vadd.f32 %v3206_v37, %v3174_v10  ;;  %v3178_v44 = vadd.f32 %v3170_v52, %v3138_v27  ;;  %v3100_v49 = vadd.f32 %v3092_v51, %v6198_v1  ;;  %v6586_v10 = vld [vmem:[#allocation13_spill] sm:$0xff] }
 0x6e3   : > { %v3171_v37 = vmul.f32 %v3160_v28, %v6580_v25 }
 0x6e4   : > { %v6331_v33 = vadd.f32 %v3213_v58, %v6584_v18  ;;  %v6334_v17 = vadd.f32 %v3214_v47, %v5775_v43  ;;  %v3120_v43 = vsel %vm930_vm4, %v6268_v60, %v6270_v46  ;;  %v6587_v58 = vld [vmem:[#allocation6_spill] sm:$0xff] }
 0x6e6   : > { %v3192_v61 = vpop.permute.xlu1 %3191 }
 0x6e7   : > { %v3198_v53 = vsel %vm1026_vm8, %v3184_v36, %v3192_v61  ;;  %v3202_v9 = vsel %vm1026_vm8, %v3192_v61, %v3184_v36  ;;  %v3099_v36 = vadd.f32 %v3091_v55, %v6196_v23 }
 0x6e8   : > { %v3207_v35 = vmul.f32 %v3198_v53, %v6582_v31  ;;  %v3208_v41 = vmul.f32 %v3202_v9, %v6583_v30 }
 0x6ea   : > { %v3215_v26 = vadd.f32 %v3207_v35, %v3175_v16  ;;  %v3216_v12 = vadd.f32 %v3208_v41, %v3176_v21  ;;  %v6588_v35 = vld [vmem:[#allocation17_spill] sm:$0xff] }
 0x6ec   : > { %v3223_v45 = vadd.f32 %v3215_v26, %v5777_v6  ;;  %v3224_v63 = vadd.f32 %v3216_v12, %v5782_v3  ;;  %v3124_v6 = vsel %vm930_vm4, %v6270_v46, %v6268_v60  ;;  %v3164_v60 = vsel %vm978_vm6, %v6272_v14, %v6278_v56 }
 0x6ed   : > { %v3131_v46 = vmul.f32 %v3120_v43, %v6578_v19  ;;  %v3132_v59 = vmul.f32 %v3124_v6, %v6579_v62  ;;  %v3172_v8 = vmul.f32 %v3164_v60, %v6581_v2 }
 0x6ee   : > { %v3229_v4 = vadd.f32 %v3223_v45, %v6331_v33  ;;  %v3238_v0 = vadd.f32 %v3224_v63, %v6334_v17  ;;  %v3186_v11 = vpop.permute.xlu1 %3185 }
 0x6ef   : > { %v3199_v3 = vsel %vm1026_vm8, %v3186_v11, %v3194_v48  ;;  %v3203_v24 = vsel %vm1026_vm8, %v3194_v48, %v3186_v11  ;;  %v3139_v14 = vadd.f32 %v3131_v46, %v3099_v36  ;;  %v3140_v56 = vadd.f32 %v3132_v59, %v3100_v49 }
 0x6f0   : > { %v3209_v39 = vmul.f32 %v3199_v3, %v6582_v31  ;;  %v3210_v15 = vmul.f32 %v3203_v24, %v6583_v30 }
 0x6f1   : > { %v3188_v21 = vpop.permute.xlu0 %3187  ;;  %v3179_v1 = vadd.f32 %v3171_v37, %v3139_v14  ;;  %v3180_v25 = vadd.f32 %v3172_v8, %v3140_v56 }
 0x6f2   : > { %v3217_v22 = vadd.f32 %v3209_v39, %v3177_v13  ;;  %v3218_v38 = vadd.f32 %v3210_v15, %v3178_v44 }
 0x6f4   : > { %v3225_v5 = vadd.f32 %v3217_v22, %v6585_v50  ;;  %v3226_v16 = vadd.f32 %v3218_v38, %v6586_v10 }
 0x6f6   : > { %v3230_v19 = vadd.f32 %v3229_v4, %v3225_v5  ;;  %v3239_v61 = vadd.f32 %v3238_v0, %v3226_v16  ;;  %v3196_v62 = vpop.permute.xlu1 %3195 }
 0x6f7   : > { %v3200_v20 = vsel %vm1026_vm8, %v3188_v21, %v3196_v62  ;;  %v3204_v23 = vsel %vm1026_vm8, %v3196_v62, %v3188_v21 }
 0x6f8   : > { %v3211_v2 = vmul.f32 %v3200_v20, %v6582_v31  ;;  %v3212_v34 = vmul.f32 %v3204_v23, %v6583_v30 }
 0x6fa   : > { %v3219_v53 = vadd.f32 %v3211_v2, %v3179_v1  ;;  %v3220_v9 = vadd.f32 %v3212_v34, %v3180_v25  ;;  %v3323_v25 = vpop.permute.xlu2 %3322  ;;  %v3328_v2 = vpop.permute.xlu0 %3327 }
 0x6fc   : > { %v3227_v47 = vadd.f32 %v3219_v53, %v6587_v58  ;;  %v3228_v41 = vadd.f32 %v3220_v9, %v6588_v35 }
 0x6fe   : > { %v3231_v40 = vadd.f32 %v3230_v19, %v3227_v47  ;;  %v3240_v32 = vadd.f32 %v3239_v61, %v3228_v41 }
 0x700   : > { %v3232_v29 = vrot.slane %v3231_v40, 4  ;;  %v3241_v54 = vrot.slane %v3240_v32, 4 }
 0x702   : > { %v3233_v26 = vadd.f32 %v3232_v29, %v3231_v40  ;;  %v3242_v12 = vadd.f32 %v3241_v54, %v3240_v32  ;;  %v3333_v40 = vpop.permute.xlu1 %3332 }
 0x704   : > { %v3234_v57 = vrot.slane %v3233_v26, 2  ;;  %v3243_v7 = vrot.slane %v3242_v12, 2 }
 0x706   : > { %v3235_v52 = vadd.f32 %v3234_v57, %v3233_v26  ;;  %v3244_v18 = vadd.f32 %v3243_v7, %v3242_v12  ;;  %v3356_v57 = vpop.permute.xlu0 %3355 }
 0x708   : > { %v3236_v55 = vrot.slane %v3235_v52, 1  ;;  %v3245_v31 = vrot.slane %v3244_v18, 1 }
 0x70a   : > { %v3237_v51 = vadd.f32 %v3236_v55, %v3235_v52  ;;  %v3246_v30 = vadd.f32 %v3245_v31, %v3244_v18 }
 0x70c   : > { %v3247_v27 = vmul.f32 %v3237_v51, %v6589_v42  ;;  %v3248_v48 = vmul.f32 %v3246_v30, %v6589_v42 }
 0x70e   : > { %v6384_v4 = vsub.f32 %v3223_v45, %v3247_v27  ;;  %v6386_v0 = vsub.f32 %v3224_v63, %v3248_v48  ;;  %v6388_v11 = vsub.f32 %v3227_v47, %v3247_v27  ;;  %v6390_v43 = vsub.f32 %v3228_v41, %v3248_v48  ;;  %v3338_v41 = vpop.permute.xlu2 %3337 }
 0x70f   : > { %v6393_v6 = vsub.f32 %v6331_v33, %v3247_v27  ;;  %v6396_v3 = vsub.f32 %v6334_v17, %v3248_v48  ;;  %v3253_v24 = vsub.f32 %v3225_v5, %v3247_v27  ;;  %v6398_v13 = vsub.f32 %v3226_v16, %v3248_v48 }
 0x710   : > { %v3259_v44 = vmul.f32 %v6384_v4, %v6384_v4  ;;  %v3260_v45 = vmul.f32 %v6386_v0, %v6386_v0  ;;  %v3263_v60 = vmul.f32 %v6388_v11, %v6388_v11  ;;  %v3264_v46 = vmul.f32 %v6390_v43, %v6390_v43 }
 0x711   : > { %v3257_v63 = vmul.f32 %v6393_v6, %v6393_v6  ;;  %v3258_v39 = vmul.f32 %v6396_v3, %v6396_v3  ;;  %v3261_v33 = vmul.f32 %v3253_v24, %v3253_v24  ;;  %v3262_v17 = vmul.f32 %v6398_v13, %v6398_v13 }
 0x713   : > { %v3265_v15 = vadd.f32 %v3259_v44, %v3257_v63  ;;  %v3274_v28 = vadd.f32 %v3260_v45, %v3258_v39 }
 0x715   : > { %v3266_v59 = vadd.f32 %v3265_v15, %v3261_v33  ;;  %v3275_v22 = vadd.f32 %v3274_v28, %v3262_v17 }
 0x716   : > { %v3366_v33 = vpop.permute.xlu2 %3365 }
 0x717   : > { %v3267_v38 = vadd.f32 %v3266_v59, %v3263_v60  ;;  %v3276_v36 = vadd.f32 %v3275_v22, %v3264_v46 }
 0x719   : > { %v3268_v49 = vrot.slane %v3267_v38, 4  ;;  %v3277_v37 = vrot.slane %v3276_v36, 4 }
 0x71b   : > { %v3269_v8 = vadd.f32 %v3268_v49, %v3267_v38  ;;  %v3278_v50 = vadd.f32 %v3277_v37, %v3276_v36 }
 0x71d   : > { %v3270_v5 = vrot.slane %v3269_v8, 2  ;;  %v3279_v10 = vrot.slane %v3278_v50, 2 }
 0x71f   : > { %v3271_v16 = vadd.f32 %v3270_v5, %v3269_v8  ;;  %v3280_v21 = vadd.f32 %v3279_v10, %v3278_v50 }
 0x721   : > { %v3272_v14 = vrot.slane %v3271_v16, 1  ;;  %v3281_v56 = vrot.slane %v3280_v21, 1 }
 0x723   : > { %v3273_v19 = vadd.f32 %v3272_v14, %v3271_v16  ;;  %v3282_v61 = vadd.f32 %v3281_v56, %v3280_v21 }
 0x725   : > { %v3283_v62 = vmul.f32 %v3273_v19, %v6589_v42  ;;  %v3284_v20 = vmul.f32 %v3282_v61, %v6589_v42 }
 0x727   : > { %v3285_v23 = vadd.f32 1e-06, %v3283_v62  ;;  %v3286_v1 = vadd.f32 1e-06, %v3284_v20 }
 0x729   : > { %4099 = vrsqrt.f32 %v3285_v23  ;;  %vm3293_vm2 = vweird.f32 %v3285_v23  ;;  %vm3303_vm4 = vweird.f32 %v3286_v1 }
 0x72a   : > { %4101 = vrsqrt.f32 %v3286_v1 }
 0x72f   : > { %v4100_v34 = vpop.eup %4099 }
 0x730   : > { %v4102_v53 = vpop.eup %4101  ;;  %v3288_v9 = vmul.f32 %v4100_v34, %v3285_v23  ;;  %vm3294_vm0 = vweird.f32 %v4100_v34 }
 0x731   : > { %v3298_v58 = vmul.f32 %v4102_v53, %v3286_v1  ;;  %vm3304_vm1 = vweird.f32 %v4102_v53  ;;  %vm3295_vm3 = vmor %vm3293_vm2, %vm3294_vm0 }
 0x732   : > { %v3289_v47 = vmul.f32 %v4100_v34, %v3288_v9  ;;  %vm3305_vm5 = vmor %vm3303_vm4, %vm3304_vm1 }
 0x733   : > { %v3299_v35 = vmul.f32 %v4102_v53, %v3298_v58 }
 0x734   : > { %v3290_v32 = vmul.f32 0.5, %v3289_v47 }
 0x735   : > { %v3300_v29 = vmul.f32 0.5, %v3299_v35 }
 0x736   : > { %v3291_v54 = vsub.f32 1.5, %v3290_v32 }
 0x737   : > { %v3301_v26 = vsub.f32 1.5, %v3300_v29 }
 0x738   : > { %v3292_v12 = vmul.f32 %v4100_v34, %v3291_v54 }
 0x739   : > { %v3302_v7 = vmul.f32 %v4102_v53, %v3301_v26 }
 0x73a   : > { %v3296_v52 = vsel %vm3295_vm3, %v4100_v34, %v3292_v12 }
 0x73b   : > { %v3306_v18 = vsel %vm3305_vm5, %v4102_v53, %v3302_v7  ;;  %v3311_v55 = vmul.f32 %v3296_v52, %v3253_v24  ;;  %v3309_v31 = vmul.f32 %v3296_v52, %v6384_v4  ;;  %v3307_v51 = vmul.f32 %v3296_v52, %v6393_v6  ;;  %v3361_v4 = vpop.permute.xlu1 %3360 }
 0x73c   : > { %v3312_v30 = vmul.f32 %v3306_v18, %v6398_v13  ;;  %v3310_v42 = vmul.f32 %v3306_v18, %v6386_v0  ;;  %v3308_v27 = vmul.f32 %v3306_v18, %v6396_v3  ;;  %v3313_v48 = vmul.f32 %v3296_v52, %v6388_v11  ;;  %v3371_v3 = vpop.permute.xlu0 %3370 }
 0x73d   : > { %v3344_v44 = vmul.f32 %v3333_v40, %v3311_v55  ;;  %v3342_v45 = vmul.f32 %v3328_v2, %v3309_v31  ;;  %v3340_v63 = vmul.f32 %v3323_v25, %v3307_v51  ;;  %v3314_v39 = vmul.f32 %v3306_v18, %v6390_v43 }
 0x73e   : > { %v3345_v24 = vmul.f32 %v3333_v40, %v3312_v30  ;;  %v3343_v17 = vmul.f32 %v3328_v2, %v3310_v42  ;;  %v3341_v15 = vmul.f32 %v3323_v25, %v3308_v27  ;;  %v3346_v13 = vmul.f32 %v3338_v41, %v3313_v48 }
 0x73f   : > { %v3377_v6 = vadd.f32 %v3366_v33, %v3344_v44  ;;  %v3375_v28 = vadd.f32 %v3361_v4, %v3342_v45  ;;  %v3347_v46 = vmul.f32 %v3338_v41, %v3314_v39  ;;  %v3373_v11 = vadd.f32 %v3356_v57, %v3340_v63 }
 0x740   : > { %v3378_v60 = vadd.f32 %v3366_v33, %v3345_v24  ;;  %v3376_v0 = vadd.f32 %v3361_v4, %v3343_v17  ;;  %v3374_v43 = vadd.f32 %v3356_v57, %v3341_v15  ;;  %v3379_v59 = vadd.f32 %v3371_v3, %v3346_v13 }
 0x741   : > { %3385 = vst [vmem:[%s257_s16 + $0x20] sm:$0xff] %v3377_v6  ;;  %v3380_v22 = vadd.f32 %v3371_v3, %v3347_v46 }
 0x742   : > { %3386 = vst [vmem:[%s257_s16 + $0x28] sm:$0xff] %v3378_v60 }
 0x743   : > { %3383 = vst [vmem:[%s257_s16 + $0x10] sm:$0xff] %v3375_v28 }
 0x744   : > { %3384 = vst [vmem:[%s257_s16 + $0x18] sm:$0xff] %v3376_v0 }
 0x745   : > { %3381 = vst [vmem:[%s257_s16] sm:$0xff] %v3373_v11 }
 0x746   : > { %3382 = vst [vmem:[%s257_s16 + $0x8] sm:$0xff] %v3374_v43 }
 0x747   : > { %3387 = vst [vmem:[%s257_s16 + $0x30] sm:$0xff] %v3379_v59 }
 0x748   : > { %3388 = vst [vmem:[%s257_s16 + $0x38] sm:$0xff] %v3380_v22 }
 0x749   : > { %4138 = shalt.err (!%p4135_p3)
}
 0x74a   : > { %s4186_s17 = smov 256  }
 0x74b   : > { %3971 = dma.vmem_to_hbm [thread:$0]  (%p4260_p5), %s3403_s25, 1024, %s3405_s11, %s3390_s10, %s4186_s17, %s4186_s17, %s4177_s13  }
 0x74c PF: > { %p3977_p4 = scmp.ge.s32.totalorder %s4173_s24, 2  ;;  %s3419_s29 = sand.u32 1, %s4161_s21  }
 0x74d   : > { %s3420_s19 = scalar_lea.sflag [#allocation3], %s3419_s29 }
 0x74e   : > { %p3974_p7 = pnand %p3977_p4, %p4264_p6 }
 0x750   : > { %p3975_p8 = pneg %p3974_p7 }
 0x752   : > { %4156 = dma.done.wait (%p3975_p8), %s3420_s19, 1024  }
 0x753   : > { %4158 = vsyncadd (%p3975_p8), %s3420_s19, 4294966272  ;;  %p16_p9 = scmp.ge.s32.totalorder %s4247_s27, 4   ;;  %s6590_s21 = smov %s4165_s22 }
 0x754   : > { %s6591_s22 = smov %s4169_s23  ;;  %s6592_s23 = smov %s4258_s30 }
 0x755   : > { %s6593_s24 = smov %s4247_s27  ;;  %18 = sbr.rel (!%p16_p9) target bundleno = 3 (0x3), region = 95 }
 0x75a   :  { %3426 = vsyncpa [#allocation3], 1 }
 0x75b   :  { %3428 = vsyncpa [#allocation3 + $0x1], 1 }

</bundles_post_ra>
